<compile_context>
chip_gen: v7x
topology: tpu7x:2x2x1
jax: 0.10.0
libtpu: 0.0.40
codegen_flags: <defaults>
</compile_context>

<pallas_src>
import functools
import math

import jax
import jax.numpy as jnp
from jax import lax
from jax.experimental import pallas as pl
from jax.experimental.pallas import tpu as pltpu


# ----------------------------------------------------------------------------
# Fused kernel helpers
# ----------------------------------------------------------------------------
def _bf16_dot(a, b):
    """MXU matmul with bf16 inputs, f32 accumulation."""
    return jnp.dot(a.astype(jnp.bfloat16), b.astype(jnp.bfloat16),
                   preferred_element_type=jnp.float32)


def _layernorm(x, g, b, eps=1e-5):
    # PyTorch LayerNorm: biased variance, eps inside the sqrt.
    mu = jnp.mean(x, axis=-1, keepdims=True)
    xc = x - mu
    var = jnp.mean(xc * xc, axis=-1, keepdims=True)
    return xc * lax.rsqrt(var + eps) * g + b


# ----------------------------------------------------------------------------
# Fused kernel: one batch element per grid step, everything resident in VMEM.
# ----------------------------------------------------------------------------
def _vit_fused_kernel(
    x_ref, pos_ref, pw_ref, pb_ref,
    wq_ref, wk_ref, wv_ref, bq_ref, bk_ref, bv_ref,
    wo_ref, bo_ref,
    wff1_ref, bff1_ref, wff2_ref, bff2_ref,
    ln1g_ref, ln1b_ref, ln2g_ref, ln2b_ref,
    ng_ref, nb_ref, fcw_ref, fcb_ref,
    o_ref,
    *, depth, num_heads,
):
    P = x_ref.shape[1]
    Dh = wq_ref.shape[-1]
    E = wo_ref.shape[-1]
    scale = 1.0 / math.sqrt(Dh)

    # Patch embedding + positional embedding (dropout == identity in eval).
    x = _bf16_dot(x_ref[0], pw_ref[...]) + pb_ref[...] + pos_ref[0]      # (P, E)

    for d in range(depth):                         # static unroll over layers
        # --- multi-head self-attention via per-head weight slabs -------------
        attn = jnp.zeros((P, E), jnp.float32)
        for h in range(num_heads):
            i = d * num_heads + h
            q = _bf16_dot(x, wq_ref[i]) + bq_ref[i]                      # (P, Dh)
            k = _bf16_dot(x, wk_ref[i]) + bk_ref[i]                      # (P, Dh)
            v = _bf16_dot(x, wv_ref[i]) + bv_ref[i]                      # (P, Dh)
            s = lax.dot_general(
                q.astype(jnp.bfloat16), k.astype(jnp.bfloat16),
                (((1,), (1,)), ((), ())),
                preferred_element_type=jnp.float32) * scale              # (P, P)
            m = jnp.max(s, axis=-1, keepdims=True)
            p = jnp.exp(s - m)
            p = p * pl.reciprocal(jnp.sum(p, axis=-1, keepdims=True), approx=True)
            o_h = _bf16_dot(p, v)                                        # (P, Dh)
            attn = attn + _bf16_dot(o_h, wo_ref[i])                      # out_proj slice
        attn = attn + bo_ref[d]
        x = _layernorm(x + attn, ln1g_ref[d], ln1b_ref[d])               # post-norm

        # --- feed-forward (ReLU) + residual + post-norm -----------------------
        hdn = jnp.maximum(_bf16_dot(x, wff1_ref[d]) + bff1_ref[d], 0.0)  # (P, mlp)
        ff = _bf16_dot(hdn, wff2_ref[d]) + bff2_ref[d]                   # (P, E)
        x = _layernorm(x + ff, ln2g_ref[d], ln2b_ref[d])

    # --- final LayerNorm, mean over patches, lane-padded classifier head ------
    x = _layernorm(x, ng_ref[...], nb_ref[...])
    pooled = jnp.mean(x, axis=0, keepdims=True)                          # (1, E)
    o_ref[0] = _bf16_dot(pooled, fcw_ref[...]) + fcb_ref[...]            # (1, N_pad)


def _full_spec(shape):
    zeros = (0,) * len(shape)
    return pl.BlockSpec(shape, lambda b: zeros)


# ----------------------------------------------------------------------------
# Model forward (single pallas_call)
# ----------------------------------------------------------------------------
def vit_forward(x, packed, cfg):
    B, S = x.shape
    P = cfg["num_patches"]
    ps = cfg["patch_size"]
    E = cfg["embed_dim"]
    H = cfg["num_heads"]
    depth = cfg["depth"]
    mlp = cfg["mlp_dim"]
    ND, NP = cfg["num_distributions"], cfg["num_params"]
    out_dim = ND * NP
    Dh = E // H
    N_pad = packed["fc_w"].shape[1]

    # PatchEmbedding front-end: pad (if needed) and fold the signal into patches.
    if S < ps * P:
        x = jnp.pad(x, ((0, 0), (0, ps * P - S)))
    xp = x[:, :ps * P].reshape(B, P, ps)

    in_specs = [
        pl.BlockSpec((1, P, ps), lambda b: (b, 0, 0)),        # patches (per batch)
        _full_spec((1, P, E)),                                # pos_embed
        _full_spec((ps, E)), _full_spec((1, E)),              # patch proj w, b
        _full_spec((depth * H, E, Dh)),                       # wq (per head)
        _full_spec((depth * H, E, Dh)),                       # wk
        _full_spec((depth * H, E, Dh)),                       # wv
        _full_spec((depth * H, 1, Dh)),                       # bq
        _full_spec((depth * H, 1, Dh)),                       # bk
        _full_spec((depth * H, 1, Dh)),                       # bv
        _full_spec((depth * H, Dh, E)),                       # out_proj (per head)
        _full_spec((depth, 1, E)),                            # out_proj bias
        _full_spec((depth, E, mlp)), _full_spec((depth, 1, mlp)),   # ff1 w, b
        _full_spec((depth, mlp, E)), _full_spec((depth, 1, E)),     # ff2 w, b
        _full_spec((depth, 1, E)), _full_spec((depth, 1, E)),       # ln1 g, b
        _full_spec((depth, 1, E)), _full_spec((depth, 1, E)),       # ln2 g, b
        _full_spec((1, E)), _full_spec((1, E)),               # final norm g, b
        _full_spec((E, N_pad)), _full_spec((1, N_pad)),       # padded head w, b
    ]

    out = pl.pallas_call(
        functools.partial(_vit_fused_kernel, depth=depth, num_heads=H),
        out_shape=jax.ShapeDtypeStruct((B, 1, N_pad), jnp.float32),
        grid=(B,),
        in_specs=in_specs,
        out_specs=pl.BlockSpec((1, 1, N_pad), lambda b: (b, 0, 0)),
        compiler_params=pltpu.CompilerParams(
            dimension_semantics=("parallel",)),   # shard batch over v7x TCs
    )(
        xp, packed["pos"], packed["patch_w"], packed["patch_b"],
        packed["wq"], packed["wk"], packed["wv"],
        packed["bq"], packed["bk"], packed["bv"],
        packed["wo"], packed["bo"],
        packed["w_ff1"], packed["b_ff1"], packed["w_ff2"], packed["b_ff2"],
        packed["ln1_g"], packed["ln1_b"], packed["ln2_g"], packed["ln2_b"],
        packed["norm_g"], packed["norm_b"], packed["fc_w"], packed["fc_b"],
    )

    out = out.reshape(B, N_pad)[:, :out_dim]
    return out.reshape(B, ND, NP)


# ----------------------------------------------------------------------------
# Parameter initialization (deterministic, PyTorch-Linear-style uniform init)
# ----------------------------------------------------------------------------
def _linear_init(key, fan_in, fan_out):
    k1, k2 = jax.random.split(key)
    bound = 1.0 / math.sqrt(fan_in)
    w = jax.random.uniform(k1, (fan_in, fan_out), jnp.float32, -bound, bound)
    b = jax.random.uniform(k2, (fan_out,), jnp.float32, -bound, bound)
    return w, b


def init_params(key, cfg):
    E = cfg["embed_dim"]
    P = cfg["num_patches"]
    ps = cfg["patch_size"]
    mlp = cfg["mlp_dim"]
    depth = cfg["depth"]
    out_dim = cfg["num_distributions"] * cfg["num_params"]

    keys = jax.random.split(key, 2 + depth)
    params = {}
    params["patch_w"], params["patch_b"] = _linear_init(keys[0], ps, E)
    params["pos_embed"] = jnp.zeros((1, P, E), jnp.float32)  # as in __init__
    params["fc_w"], params["fc_b"] = _linear_init(keys[1], E, out_dim)
    params["norm_g"] = jnp.ones((E,), jnp.float32)
    params["norm_b"] = jnp.zeros((E,), jnp.float32)

    layers = []
    for d in range(depth):
        lk = jax.random.split(keys[2 + d], 4)
        lp = {}
        lp["w_in"], lp["b_in"] = _linear_init(lk[0], E, 3 * E)     # MHA in_proj
        lp["w_out"], lp["b_out"] = _linear_init(lk[1], E, E)       # MHA out_proj
        lp["w_ff1"], lp["b_ff1"] = _linear_init(lk[2], E, mlp)
        lp["w_ff2"], lp["b_ff2"] = _linear_init(lk[3], mlp, E)
        lp["ln1_g"] = jnp.ones((E,), jnp.float32)
        lp["ln1_b"] = jnp.zeros((E,), jnp.float32)
        lp["ln2_g"] = jnp.ones((E,), jnp.float32)
        lp["ln2_b"] = jnp.zeros((E,), jnp.float32)
        layers.append(lp)
    params["layers"] = layers
    return params


def pack_params(params, cfg):
    """Re-layout weights for the fused kernel: per-head q/k/v/out slabs, stacked
    per-layer tensors, 2-D biases, and a 128-lane-padded classifier head."""
    E = cfg["embed_dim"]
    H = cfg["num_heads"]
    depth = cfg["depth"]
    mlp = cfg["mlp_dim"]
    Dh = E // H
    out_dim = cfg["num_distributions"] * cfg["num_params"]
    N_pad = ((out_dim + 127) // 128) * 128

    layers = params["layers"]

    def per_head_w(lp, which):                     # (H, E, Dh)
        w = lp["w_in"][:, which * E:(which + 1) * E]
        return w.reshape(E, H, Dh).transpose(1, 0, 2)

    def per_head_b(lp, which):                     # (H, 1, Dh)
        return lp["b_in"][which * E:(which + 1) * E].reshape(H, 1, Dh)

    packed = dict(
        pos=params["pos_embed"],                                   # (1, P, E)
        patch_w=params["patch_w"],                                 # (ps, E)
        patch_b=params["patch_b"].reshape(1, E),
        wq=jnp.concatenate([per_head_w(lp, 0) for lp in layers], 0),
        wk=jnp.concatenate([per_head_w(lp, 1) for lp in layers], 0),
        wv=jnp.concatenate([per_head_w(lp, 2) for lp in layers], 0),
        bq=jnp.concatenate([per_head_b(lp, 0) for lp in layers], 0),
        bk=jnp.concatenate([per_head_b(lp, 1) for lp in layers], 0),
        bv=jnp.concatenate([per_head_b(lp, 2) for lp in layers], 0),
        wo=jnp.concatenate([lp["w_out"].reshape(H, Dh, E) for lp in layers], 0),
        bo=jnp.stack([lp["b_out"].reshape(1, E) for lp in layers], 0),
        w_ff1=jnp.stack([lp["w_ff1"] for lp in layers], 0),
        b_ff1=jnp.stack([lp["b_ff1"].reshape(1, mlp) for lp in layers], 0),
        w_ff2=jnp.stack([lp["w_ff2"] for lp in layers], 0),
        b_ff2=jnp.stack([lp["b_ff2"].reshape(1, E) for lp in layers], 0),
        ln1_g=jnp.stack([lp["ln1_g"].reshape(1, E) for lp in layers], 0),
        ln1_b=jnp.stack([lp["ln1_b"].reshape(1, E) for lp in layers], 0),
        ln2_g=jnp.stack([lp["ln2_g"].reshape(1, E) for lp in layers], 0),
        ln2_b=jnp.stack([lp["ln2_b"].reshape(1, E) for lp in layers], 0),
        norm_g=params["norm_g"].reshape(1, E),
        norm_b=params["norm_b"].reshape(1, E),
        fc_w=jnp.zeros((E, N_pad), jnp.float32).at[:, :out_dim].set(params["fc_w"]),
        fc_b=jnp.zeros((1, N_pad), jnp.float32).at[:, :out_dim].set(params["fc_b"]),
    )
    return packed


# ----------------------------------------------------------------------------
if __name__ == "__main__":
    cfg = dict(
        sequence_length=64,
        patch_size=8,
        embed_dim=32,
        depth=2,
        num_heads=4,
        mlp_dim=64,
        num_distributions=4,
        num_params=3,
    )
    cfg["num_patches"] = cfg["sequence_length"] // cfg["patch_size"]

    key = jax.random.PRNGKey(0)
    pkey, xkey = jax.random.split(key)
    params = init_params(pkey, cfg)
    packed = pack_params(params, cfg)

    batch = 2
    x = jax.random.normal(xkey, (batch, cfg["sequence_length"]), jnp.float32)

    # TODO(synk): nn.Dropout (stochastic training mode) not reproduced; eval-mode identity.
    fwd = jax.jit(functools.partial(vit_forward, cfg=cfg))
    out = jax.block_until_ready(fwd(x, packed))

    assert out.shape == (batch, cfg["num_distributions"], cfg["num_params"]), out.shape
    assert bool(jnp.all(jnp.isfinite(out)))
    print("KERNEL_OK")
</pallas_src>

<mosaic_0001>
module attributes {stable_mosaic.version = 11 : i64} {
  func.func @_vit_fused_kernel(%arg0: i32, %arg1: memref<1x8x8xf32, #tpu.memory_space<vmem>>, %arg2: memref<1x8x32xf32, #tpu.memory_space<vmem>>, %arg3: memref<8x32xf32, #tpu.memory_space<vmem>>, %arg4: memref<1x32xf32, #tpu.memory_space<vmem>>, %arg5: memref<8x32x8xf32, #tpu.memory_space<vmem>>, %arg6: memref<8x32x8xf32, #tpu.memory_space<vmem>>, %arg7: memref<8x32x8xf32, #tpu.memory_space<vmem>>, %arg8: memref<8x1x8xf32, #tpu.memory_space<vmem>>, %arg9: memref<8x1x8xf32, #tpu.memory_space<vmem>>, %arg10: memref<8x1x8xf32, #tpu.memory_space<vmem>>, %arg11: memref<8x8x32xf32, #tpu.memory_space<vmem>>, %arg12: memref<2x1x32xf32, #tpu.memory_space<vmem>>, %arg13: memref<2x32x64xf32, #tpu.memory_space<vmem>>, %arg14: memref<2x1x64xf32, #tpu.memory_space<vmem>>, %arg15: memref<2x64x32xf32, #tpu.memory_space<vmem>>, %arg16: memref<2x1x32xf32, #tpu.memory_space<vmem>>, %arg17: memref<2x1x32xf32, #tpu.memory_space<vmem>>, %arg18: memref<2x1x32xf32, #tpu.memory_space<vmem>>, %arg19: memref<2x1x32xf32, #tpu.memory_space<vmem>>, %arg20: memref<2x1x32xf32, #tpu.memory_space<vmem>>, %arg21: memref<1x32xf32, #tpu.memory_space<vmem>>, %arg22: memref<1x32xf32, #tpu.memory_space<vmem>>, %arg23: memref<32x128xf32, #tpu.memory_space<vmem>>, %arg24: memref<1x128xf32, #tpu.memory_space<vmem>>, %arg25: memref<1x1x128xf32, #tpu.memory_space<vmem>>) attributes {dimension_semantics = [#tpu.dimension_semantics<parallel>], iteration_bounds = array<i64: 2>, scalar_prefetch = 0 : i64, scratch_operands = 0 : i64, tpu.core_type = #tpu.core_type<tc>, window_params = [{transform_indices = @transform_0, window_bounds = array<i64: 1, 8, 8>}, {pipeline_mode = #tpu.pipeline_mode<synchronous>, transform_indices = @transform_1, window_bounds = array<i64: 1, 8, 32>}, {pipeline_mode = #tpu.pipeline_mode<synchronous>, transform_indices = @transform_2, window_bounds = array<i64: 8, 32>}, {pipeline_mode = #tpu.pipeline_mode<synchronous>, transform_indices = @transform_3, window_bounds = array<i64: 1, 32>}, {pipeline_mode = #tpu.pipeline_mode<synchronous>, transform_indices = @transform_4, window_bounds = array<i64: 8, 32, 8>}, {pipeline_mode = #tpu.pipeline_mode<synchronous>, transform_indices = @transform_5, window_bounds = array<i64: 8, 32, 8>}, {pipeline_mode = #tpu.pipeline_mode<synchronous>, transform_indices = @transform_6, window_bounds = array<i64: 8, 32, 8>}, {pipeline_mode = #tpu.pipeline_mode<synchronous>, transform_indices = @transform_7, window_bounds = array<i64: 8, 1, 8>}, {pipeline_mode = #tpu.pipeline_mode<synchronous>, transform_indices = @transform_8, window_bounds = array<i64: 8, 1, 8>}, {pipeline_mode = #tpu.pipeline_mode<synchronous>, transform_indices = @transform_9, window_bounds = array<i64: 8, 1, 8>}, {pipeline_mode = #tpu.pipeline_mode<synchronous>, transform_indices = @transform_10, window_bounds = array<i64: 8, 8, 32>}, {pipeline_mode = #tpu.pipeline_mode<synchronous>, transform_indices = @transform_11, window_bounds = array<i64: 2, 1, 32>}, {pipeline_mode = #tpu.pipeline_mode<synchronous>, transform_indices = @transform_12, window_bounds = array<i64: 2, 32, 64>}, {pipeline_mode = #tpu.pipeline_mode<synchronous>, transform_indices = @transform_13, window_bounds = array<i64: 2, 1, 64>}, {pipeline_mode = #tpu.pipeline_mode<synchronous>, transform_indices = @transform_14, window_bounds = array<i64: 2, 64, 32>}, {pipeline_mode = #tpu.pipeline_mode<synchronous>, transform_indices = @transform_15, window_bounds = array<i64: 2, 1, 32>}, {pipeline_mode = #tpu.pipeline_mode<synchronous>, transform_indices = @transform_16, window_bounds = array<i64: 2, 1, 32>}, {pipeline_mode = #tpu.pipeline_mode<synchronous>, transform_indices = @transform_17, window_bounds = array<i64: 2, 1, 32>}, {pipeline_mode = #tpu.pipeline_mode<synchronous>, transform_indices = @transform_18, window_bounds = array<i64: 2, 1, 32>}, {pipeline_mode = #tpu.pipeline_mode<synchronous>, transform_indices = @transform_19, window_bounds = array<i64: 2, 1, 32>}, {pipeline_mode = #tpu.pipeline_mode<synchronous>, transform_indices = @transform_20, window_bounds = array<i64: 1, 32>}, {pipeline_mode = #tpu.pipeline_mode<synchronous>, transform_indices = @transform_21, window_bounds = array<i64: 1, 32>}, {pipeline_mode = #tpu.pipeline_mode<synchronous>, transform_indices = @transform_22, window_bounds = array<i64: 32, 128>}, {pipeline_mode = #tpu.pipeline_mode<synchronous>, transform_indices = @transform_23, window_bounds = array<i64: 1, 128>}, {transform_indices = @transform_24, window_bounds = array<i64: 1, 1, 128>}]} {
    %c0 = arith.constant 0 : index
    %c0_0 = arith.constant 0 : index
    %c0_1 = arith.constant 0 : index
    %0 = vector.load %arg1[%c0, %c0_0, %c0_1] : memref<1x8x8xf32, #tpu.memory_space<vmem>>, vector<1x8x8xf32>
    %1 = vector.shape_cast %0 : vector<1x8x8xf32> to vector<8x8xf32>
    %c0_2 = arith.constant 0 : index
    %c0_3 = arith.constant 0 : index
    %2 = vector.load %arg3[%c0_2, %c0_3] : memref<8x32xf32, #tpu.memory_space<vmem>>, vector<8x32xf32>
    %3 = arith.truncf %1 : vector<8x8xf32> to vector<8x8xbf16>
    %4 = arith.truncf %2 : vector<8x32xf32> to vector<8x32xbf16>
    %cst = arith.constant dense<0.000000e+00> : vector<8x32xf32>
    %5 = tpu.matmul %3, %4, %cst {dimension_numbers = #tpu.dot_dimension_numbers<[1], [0], [0], [1], [0, 0, 1, 1], [], []>} : vector<8x8xbf16>, vector<8x32xbf16>, vector<8x32xf32> -> vector<8x32xf32>
    %c0_4 = arith.constant 0 : index
    %c0_5 = arith.constant 0 : index
    %6 = vector.load %arg4[%c0_4, %c0_5] : memref<1x32xf32, #tpu.memory_space<vmem>>, vector<1x32xf32>
    %7 = vector.broadcast %6 : vector<1x32xf32> to vector<8x32xf32>
    %8 = arith.addf %5, %7 : vector<8x32xf32>
    %c0_6 = arith.constant 0 : index
    %c0_7 = arith.constant 0 : index
    %c0_8 = arith.constant 0 : index
    %9 = vector.load %arg2[%c0_6, %c0_7, %c0_8] : memref<1x8x32xf32, #tpu.memory_space<vmem>>, vector<1x8x32xf32>
    %10 = vector.shape_cast %9 : vector<1x8x32xf32> to vector<8x32xf32>
    %11 = arith.addf %8, %10 : vector<8x32xf32>
    %cst_9 = arith.constant 0.000000e+00 : f32
    %12 = vector.broadcast %cst_9 : f32 to vector<8x32xf32>
    %c0_10 = arith.constant 0 : index
    %c0_11 = arith.constant 0 : index
    %c0_12 = arith.constant 0 : index
    %13 = vector.load %arg5[%c0_10, %c0_11, %c0_12] : memref<8x32x8xf32, #tpu.memory_space<vmem>>, vector<1x32x8xf32>
    %14 = vector.shape_cast %13 : vector<1x32x8xf32> to vector<32x8xf32>
    %15 = arith.truncf %11 : vector<8x32xf32> to vector<8x32xbf16>
    %16 = arith.truncf %14 : vector<32x8xf32> to vector<32x8xbf16>
    %cst_13 = arith.constant dense<0.000000e+00> : vector<8x8xf32>
    %17 = tpu.matmul %15, %16, %cst_13 {dimension_numbers = #tpu.dot_dimension_numbers<[1], [0], [0], [1], [0, 0, 1, 1], [], []>} : vector<8x32xbf16>, vector<32x8xbf16>, vector<8x8xf32> -> vector<8x8xf32>
    %c0_14 = arith.constant 0 : index
    %c0_15 = arith.constant 0 : index
    %c0_16 = arith.constant 0 : index
    %18 = vector.load %arg8[%c0_14, %c0_15, %c0_16] : memref<8x1x8xf32, #tpu.memory_space<vmem>>, vector<1x1x8xf32>
    %19 = vector.shape_cast %18 : vector<1x1x8xf32> to vector<1x8xf32>
    %20 = vector.broadcast %19 : vector<1x8xf32> to vector<8x8xf32>
    %21 = arith.addf %17, %20 : vector<8x8xf32>
    %c0_17 = arith.constant 0 : index
    %c0_18 = arith.constant 0 : index
    %c0_19 = arith.constant 0 : index
    %22 = vector.load %arg6[%c0_17, %c0_18, %c0_19] : memref<8x32x8xf32, #tpu.memory_space<vmem>>, vector<1x32x8xf32>
    %23 = vector.shape_cast %22 : vector<1x32x8xf32> to vector<32x8xf32>
    %24 = arith.truncf %11 : vector<8x32xf32> to vector<8x32xbf16>
    %25 = arith.truncf %23 : vector<32x8xf32> to vector<32x8xbf16>
    %cst_20 = arith.constant dense<0.000000e+00> : vector<8x8xf32>
    %26 = tpu.matmul %24, %25, %cst_20 {dimension_numbers = #tpu.dot_dimension_numbers<[1], [0], [0], [1], [0, 0, 1, 1], [], []>} : vector<8x32xbf16>, vector<32x8xbf16>, vector<8x8xf32> -> vector<8x8xf32>
    %c0_21 = arith.constant 0 : index
    %c0_22 = arith.constant 0 : index
    %c0_23 = arith.constant 0 : index
    %27 = vector.load %arg9[%c0_21, %c0_22, %c0_23] : memref<8x1x8xf32, #tpu.memory_space<vmem>>, vector<1x1x8xf32>
    %28 = vector.shape_cast %27 : vector<1x1x8xf32> to vector<1x8xf32>
    %29 = vector.broadcast %28 : vector<1x8xf32> to vector<8x8xf32>
    %30 = arith.addf %26, %29 : vector<8x8xf32>
    %c0_24 = arith.constant 0 : index
    %c0_25 = arith.constant 0 : index
    %c0_26 = arith.constant 0 : index
    %31 = vector.load %arg7[%c0_24, %c0_25, %c0_26] : memref<8x32x8xf32, #tpu.memory_space<vmem>>, vector<1x32x8xf32>
    %32 = vector.shape_cast %31 : vector<1x32x8xf32> to vector<32x8xf32>
    %33 = arith.truncf %11 : vector<8x32xf32> to vector<8x32xbf16>
    %34 = arith.truncf %32 : vector<32x8xf32> to vector<32x8xbf16>
    %cst_27 = arith.constant dense<0.000000e+00> : vector<8x8xf32>
    %35 = tpu.matmul %33, %34, %cst_27 {dimension_numbers = #tpu.dot_dimension_numbers<[1], [0], [0], [1], [0, 0, 1, 1], [], []>} : vector<8x32xbf16>, vector<32x8xbf16>, vector<8x8xf32> -> vector<8x8xf32>
    %c0_28 = arith.constant 0 : index
    %c0_29 = arith.constant 0 : index
    %c0_30 = arith.constant 0 : index
    %36 = vector.load %arg10[%c0_28, %c0_29, %c0_30] : memref<8x1x8xf32, #tpu.memory_space<vmem>>, vector<1x1x8xf32>
    %37 = vector.shape_cast %36 : vector<1x1x8xf32> to vector<1x8xf32>
    %38 = vector.broadcast %37 : vector<1x8xf32> to vector<8x8xf32>
    %39 = arith.addf %35, %38 : vector<8x8xf32>
    %40 = arith.truncf %21 : vector<8x8xf32> to vector<8x8xbf16>
    %41 = arith.truncf %30 : vector<8x8xf32> to vector<8x8xbf16>
    %cst_31 = arith.constant dense<0.000000e+00> : vector<8x8xf32>
    %42 = tpu.matmul %40, %41, %cst_31 {dimension_numbers = #tpu.dot_dimension_numbers<[1], [1], [0], [0], [0, 0, 1, 0], [], []>} : vector<8x8xbf16>, vector<8x8xbf16>, vector<8x8xf32> -> vector<8x8xf32>
    %cst_32 = arith.constant 0.353553385 : f32
    %43 = vector.broadcast %cst_32 : f32 to vector<8x8xf32>
    %44 = arith.mulf %42, %43 : vector<8x8xf32>
    %cst_33 = arith.constant dense<0xFF800000> : vector<8xf32>
    %45 = vector.multi_reduction <maximumf>, %44, %cst_33 [1] : vector<8x8xf32> to vector<8xf32>
    %46 = vector.shape_cast %45 : vector<8xf32> to vector<8x1xf32>
    %47 = vector.broadcast %46 : vector<8x1xf32> to vector<8x8xf32>
    %48 = arith.subf %44, %47 : vector<8x8xf32>
    %49 = math.exp %48 : vector<8x8xf32>
    %cst_34 = arith.constant dense<0.000000e+00> : vector<8xf32>
    %50 = vector.multi_reduction <add>, %49, %cst_34 [1] : vector<8x8xf32> to vector<8xf32>
    %51 = vector.shape_cast %50 : vector<8xf32> to vector<8x1xf32>
    %52 = tpu.reciprocal %51 {approx = true} : vector<8x1xf32> -> vector<8x1xf32>
    %53 = vector.broadcast %52 : vector<8x1xf32> to vector<8x8xf32>
    %54 = arith.mulf %49, %53 : vector<8x8xf32>
    %55 = arith.truncf %54 : vector<8x8xf32> to vector<8x8xbf16>
    %56 = arith.truncf %39 : vector<8x8xf32> to vector<8x8xbf16>
    %cst_35 = arith.constant dense<0.000000e+00> : vector<8x8xf32>
    %57 = tpu.matmul %55, %56, %cst_35 {dimension_numbers = #tpu.dot_dimension_numbers<[1], [0], [0], [1], [0, 0, 1, 1], [], []>} : vector<8x8xbf16>, vector<8x8xbf16>, vector<8x8xf32> -> vector<8x8xf32>
    %c0_36 = arith.constant 0 : index
    %c0_37 = arith.constant 0 : index
    %c0_38 = arith.constant 0 : index
    %58 = vector.load %arg11[%c0_36, %c0_37, %c0_38] : memref<8x8x32xf32, #tpu.memory_space<vmem>>, vector<1x8x32xf32>
    %59 = vector.shape_cast %58 : vector<1x8x32xf32> to vector<8x32xf32>
    %60 = arith.truncf %57 : vector<8x8xf32> to vector<8x8xbf16>
    %61 = arith.truncf %59 : vector<8x32xf32> to vector<8x32xbf16>
    %cst_39 = arith.constant dense<0.000000e+00> : vector<8x32xf32>
    %62 = tpu.matmul %60, %61, %cst_39 {dimension_numbers = #tpu.dot_dimension_numbers<[1], [0], [0], [1], [0, 0, 1, 1], [], []>} : vector<8x8xbf16>, vector<8x32xbf16>, vector<8x32xf32> -> vector<8x32xf32>
    %63 = arith.addf %12, %62 : vector<8x32xf32>
    %c1 = arith.constant 1 : index
    %c0_40 = arith.constant 0 : index
    %c0_41 = arith.constant 0 : index
    %64 = vector.load %arg5[%c1, %c0_40, %c0_41] : memref<8x32x8xf32, #tpu.memory_space<vmem>>, vector<1x32x8xf32>
    %65 = vector.shape_cast %64 : vector<1x32x8xf32> to vector<32x8xf32>
    %66 = arith.truncf %11 : vector<8x32xf32> to vector<8x32xbf16>
    %67 = arith.truncf %65 : vector<32x8xf32> to vector<32x8xbf16>
    %cst_42 = arith.constant dense<0.000000e+00> : vector<8x8xf32>
    %68 = tpu.matmul %66, %67, %cst_42 {dimension_numbers = #tpu.dot_dimension_numbers<[1], [0], [0], [1], [0, 0, 1, 1], [], []>} : vector<8x32xbf16>, vector<32x8xbf16>, vector<8x8xf32> -> vector<8x8xf32>
    %c1_43 = arith.constant 1 : index
    %c0_44 = arith.constant 0 : index
    %c0_45 = arith.constant 0 : index
    %69 = vector.load %arg8[%c1_43, %c0_44, %c0_45] : memref<8x1x8xf32, #tpu.memory_space<vmem>>, vector<1x1x8xf32>
    %70 = vector.shape_cast %69 : vector<1x1x8xf32> to vector<1x8xf32>
    %71 = vector.broadcast %70 : vector<1x8xf32> to vector<8x8xf32>
    %72 = arith.addf %68, %71 : vector<8x8xf32>
    %c1_46 = arith.constant 1 : index
    %c0_47 = arith.constant 0 : index
    %c0_48 = arith.constant 0 : index
    %73 = vector.load %arg6[%c1_46, %c0_47, %c0_48] : memref<8x32x8xf32, #tpu.memory_space<vmem>>, vector<1x32x8xf32>
    %74 = vector.shape_cast %73 : vector<1x32x8xf32> to vector<32x8xf32>
    %75 = arith.truncf %11 : vector<8x32xf32> to vector<8x32xbf16>
    %76 = arith.truncf %74 : vector<32x8xf32> to vector<32x8xbf16>
    %cst_49 = arith.constant dense<0.000000e+00> : vector<8x8xf32>
    %77 = tpu.matmul %75, %76, %cst_49 {dimension_numbers = #tpu.dot_dimension_numbers<[1], [0], [0], [1], [0, 0, 1, 1], [], []>} : vector<8x32xbf16>, vector<32x8xbf16>, vector<8x8xf32> -> vector<8x8xf32>
    %c1_50 = arith.constant 1 : index
    %c0_51 = arith.constant 0 : index
    %c0_52 = arith.constant 0 : index
    %78 = vector.load %arg9[%c1_50, %c0_51, %c0_52] : memref<8x1x8xf32, #tpu.memory_space<vmem>>, vector<1x1x8xf32>
    %79 = vector.shape_cast %78 : vector<1x1x8xf32> to vector<1x8xf32>
    %80 = vector.broadcast %79 : vector<1x8xf32> to vector<8x8xf32>
    %81 = arith.addf %77, %80 : vector<8x8xf32>
    %c1_53 = arith.constant 1 : index
    %c0_54 = arith.constant 0 : index
    %c0_55 = arith.constant 0 : index
    %82 = vector.load %arg7[%c1_53, %c0_54, %c0_55] : memref<8x32x8xf32, #tpu.memory_space<vmem>>, vector<1x32x8xf32>
    %83 = vector.shape_cast %82 : vector<1x32x8xf32> to vector<32x8xf32>
    %84 = arith.truncf %11 : vector<8x32xf32> to vector<8x32xbf16>
    %85 = arith.truncf %83 : vector<32x8xf32> to vector<32x8xbf16>
    %cst_56 = arith.constant dense<0.000000e+00> : vector<8x8xf32>
    %86 = tpu.matmul %84, %85, %cst_56 {dimension_numbers = #tpu.dot_dimension_numbers<[1], [0], [0], [1], [0, 0, 1, 1], [], []>} : vector<8x32xbf16>, vector<32x8xbf16>, vector<8x8xf32> -> vector<8x8xf32>
    %c1_57 = arith.constant 1 : index
    %c0_58 = arith.constant 0 : index
    %c0_59 = arith.constant 0 : index
    %87 = vector.load %arg10[%c1_57, %c0_58, %c0_59] : memref<8x1x8xf32, #tpu.memory_space<vmem>>, vector<1x1x8xf32>
    %88 = vector.shape_cast %87 : vector<1x1x8xf32> to vector<1x8xf32>
    %89 = vector.broadcast %88 : vector<1x8xf32> to vector<8x8xf32>
    %90 = arith.addf %86, %89 : vector<8x8xf32>
    %91 = arith.truncf %72 : vector<8x8xf32> to vector<8x8xbf16>
    %92 = arith.truncf %81 : vector<8x8xf32> to vector<8x8xbf16>
    %cst_60 = arith.constant dense<0.000000e+00> : vector<8x8xf32>
    %93 = tpu.matmul %91, %92, %cst_60 {dimension_numbers = #tpu.dot_dimension_numbers<[1], [1], [0], [0], [0, 0, 1, 0], [], []>} : vector<8x8xbf16>, vector<8x8xbf16>, vector<8x8xf32> -> vector<8x8xf32>
    %cst_61 = arith.constant 0.353553385 : f32
    %94 = vector.broadcast %cst_61 : f32 to vector<8x8xf32>
    %95 = arith.mulf %93, %94 : vector<8x8xf32>
    %cst_62 = arith.constant dense<0xFF800000> : vector<8xf32>
    %96 = vector.multi_reduction <maximumf>, %95, %cst_62 [1] : vector<8x8xf32> to vector<8xf32>
    %97 = vector.shape_cast %96 : vector<8xf32> to vector<8x1xf32>
    %98 = vector.broadcast %97 : vector<8x1xf32> to vector<8x8xf32>
    %99 = arith.subf %95, %98 : vector<8x8xf32>
    %100 = math.exp %99 : vector<8x8xf32>
    %cst_63 = arith.constant dense<0.000000e+00> : vector<8xf32>
    %101 = vector.multi_reduction <add>, %100, %cst_63 [1] : vector<8x8xf32> to vector<8xf32>
    %102 = vector.shape_cast %101 : vector<8xf32> to vector<8x1xf32>
    %103 = tpu.reciprocal %102 {approx = true} : vector<8x1xf32> -> vector<8x1xf32>
    %104 = vector.broadcast %103 : vector<8x1xf32> to vector<8x8xf32>
    %105 = arith.mulf %100, %104 : vector<8x8xf32>
    %106 = arith.truncf %105 : vector<8x8xf32> to vector<8x8xbf16>
    %107 = arith.truncf %90 : vector<8x8xf32> to vector<8x8xbf16>
    %cst_64 = arith.constant dense<0.000000e+00> : vector<8x8xf32>
    %108 = tpu.matmul %106, %107, %cst_64 {dimension_numbers = #tpu.dot_dimension_numbers<[1], [0], [0], [1], [0, 0, 1, 1], [], []>} : vector<8x8xbf16>, vector<8x8xbf16>, vector<8x8xf32> -> vector<8x8xf32>
    %c1_65 = arith.constant 1 : index
    %c0_66 = arith.constant 0 : index
    %c0_67 = arith.constant 0 : index
    %109 = vector.load %arg11[%c1_65, %c0_66, %c0_67] : memref<8x8x32xf32, #tpu.memory_space<vmem>>, vector<1x8x32xf32>
    %110 = vector.shape_cast %109 : vector<1x8x32xf32> to vector<8x32xf32>
    %111 = arith.truncf %108 : vector<8x8xf32> to vector<8x8xbf16>
    %112 = arith.truncf %110 : vector<8x32xf32> to vector<8x32xbf16>
    %cst_68 = arith.constant dense<0.000000e+00> : vector<8x32xf32>
    %113 = tpu.matmul %111, %112, %cst_68 {dimension_numbers = #tpu.dot_dimension_numbers<[1], [0], [0], [1], [0, 0, 1, 1], [], []>} : vector<8x8xbf16>, vector<8x32xbf16>, vector<8x32xf32> -> vector<8x32xf32>
    %114 = arith.addf %63, %113 : vector<8x32xf32>
    %c2 = arith.constant 2 : index
    %c0_69 = arith.constant 0 : index
    %c0_70 = arith.constant 0 : index
    %115 = vector.load %arg5[%c2, %c0_69, %c0_70] : memref<8x32x8xf32, #tpu.memory_space<vmem>>, vector<1x32x8xf32>
    %116 = vector.shape_cast %115 : vector<1x32x8xf32> to vector<32x8xf32>
    %117 = arith.truncf %11 : vector<8x32xf32> to vector<8x32xbf16>
    %118 = arith.truncf %116 : vector<32x8xf32> to vector<32x8xbf16>
    %cst_71 = arith.constant dense<0.000000e+00> : vector<8x8xf32>
    %119 = tpu.matmul %117, %118, %cst_71 {dimension_numbers = #tpu.dot_dimension_numbers<[1], [0], [0], [1], [0, 0, 1, 1], [], []>} : vector<8x32xbf16>, vector<32x8xbf16>, vector<8x8xf32> -> vector<8x8xf32>
    %c2_72 = arith.constant 2 : index
    %c0_73 = arith.constant 0 : index
    %c0_74 = arith.constant 0 : index
    %120 = vector.load %arg8[%c2_72, %c0_73, %c0_74] : memref<8x1x8xf32, #tpu.memory_space<vmem>>, vector<1x1x8xf32>
    %121 = vector.shape_cast %120 : vector<1x1x8xf32> to vector<1x8xf32>
    %122 = vector.broadcast %121 : vector<1x8xf32> to vector<8x8xf32>
    %123 = arith.addf %119, %122 : vector<8x8xf32>
    %c2_75 = arith.constant 2 : index
    %c0_76 = arith.constant 0 : index
    %c0_77 = arith.constant 0 : index
    %124 = vector.load %arg6[%c2_75, %c0_76, %c0_77] : memref<8x32x8xf32, #tpu.memory_space<vmem>>, vector<1x32x8xf32>
    %125 = vector.shape_cast %124 : vector<1x32x8xf32> to vector<32x8xf32>
    %126 = arith.truncf %11 : vector<8x32xf32> to vector<8x32xbf16>
    %127 = arith.truncf %125 : vector<32x8xf32> to vector<32x8xbf16>
    %cst_78 = arith.constant dense<0.000000e+00> : vector<8x8xf32>
    %128 = tpu.matmul %126, %127, %cst_78 {dimension_numbers = #tpu.dot_dimension_numbers<[1], [0], [0], [1], [0, 0, 1, 1], [], []>} : vector<8x32xbf16>, vector<32x8xbf16>, vector<8x8xf32> -> vector<8x8xf32>
    %c2_79 = arith.constant 2 : index
    %c0_80 = arith.constant 0 : index
    %c0_81 = arith.constant 0 : index
    %129 = vector.load %arg9[%c2_79, %c0_80, %c0_81] : memref<8x1x8xf32, #tpu.memory_space<vmem>>, vector<1x1x8xf32>
    %130 = vector.shape_cast %129 : vector<1x1x8xf32> to vector<1x8xf32>
    %131 = vector.broadcast %130 : vector<1x8xf32> to vector<8x8xf32>
    %132 = arith.addf %128, %131 : vector<8x8xf32>
    %c2_82 = arith.constant 2 : index
    %c0_83 = arith.constant 0 : index
    %c0_84 = arith.constant 0 : index
    %133 = vector.load %arg7[%c2_82, %c0_83, %c0_84] : memref<8x32x8xf32, #tpu.memory_space<vmem>>, vector<1x32x8xf32>
    %134 = vector.shape_cast %133 : vector<1x32x8xf32> to vector<32x8xf32>
    %135 = arith.truncf %11 : vector<8x32xf32> to vector<8x32xbf16>
    %136 = arith.truncf %134 : vector<32x8xf32> to vector<32x8xbf16>
    %cst_85 = arith.constant dense<0.000000e+00> : vector<8x8xf32>
    %137 = tpu.matmul %135, %136, %cst_85 {dimension_numbers = #tpu.dot_dimension_numbers<[1], [0], [0], [1], [0, 0, 1, 1], [], []>} : vector<8x32xbf16>, vector<32x8xbf16>, vector<8x8xf32> -> vector<8x8xf32>
    %c2_86 = arith.constant 2 : index
    %c0_87 = arith.constant 0 : index
    %c0_88 = arith.constant 0 : index
    %138 = vector.load %arg10[%c2_86, %c0_87, %c0_88] : memref<8x1x8xf32, #tpu.memory_space<vmem>>, vector<1x1x8xf32>
    %139 = vector.shape_cast %138 : vector<1x1x8xf32> to vector<1x8xf32>
    %140 = vector.broadcast %139 : vector<1x8xf32> to vector<8x8xf32>
    %141 = arith.addf %137, %140 : vector<8x8xf32>
    %142 = arith.truncf %123 : vector<8x8xf32> to vector<8x8xbf16>
    %143 = arith.truncf %132 : vector<8x8xf32> to vector<8x8xbf16>
    %cst_89 = arith.constant dense<0.000000e+00> : vector<8x8xf32>
    %144 = tpu.matmul %142, %143, %cst_89 {dimension_numbers = #tpu.dot_dimension_numbers<[1], [1], [0], [0], [0, 0, 1, 0], [], []>} : vector<8x8xbf16>, vector<8x8xbf16>, vector<8x8xf32> -> vector<8x8xf32>
    %cst_90 = arith.constant 0.353553385 : f32
    %145 = vector.broadcast %cst_90 : f32 to vector<8x8xf32>
    %146 = arith.mulf %144, %145 : vector<8x8xf32>
    %cst_91 = arith.constant dense<0xFF800000> : vector<8xf32>
    %147 = vector.multi_reduction <maximumf>, %146, %cst_91 [1] : vector<8x8xf32> to vector<8xf32>
    %148 = vector.shape_cast %147 : vector<8xf32> to vector<8x1xf32>
    %149 = vector.broadcast %148 : vector<8x1xf32> to vector<8x8xf32>
    %150 = arith.subf %146, %149 : vector<8x8xf32>
    %151 = math.exp %150 : vector<8x8xf32>
    %cst_92 = arith.constant dense<0.000000e+00> : vector<8xf32>
    %152 = vector.multi_reduction <add>, %151, %cst_92 [1] : vector<8x8xf32> to vector<8xf32>
    %153 = vector.shape_cast %152 : vector<8xf32> to vector<8x1xf32>
    %154 = tpu.reciprocal %153 {approx = true} : vector<8x1xf32> -> vector<8x1xf32>
    %155 = vector.broadcast %154 : vector<8x1xf32> to vector<8x8xf32>
    %156 = arith.mulf %151, %155 : vector<8x8xf32>
    %157 = arith.truncf %156 : vector<8x8xf32> to vector<8x8xbf16>
    %158 = arith.truncf %141 : vector<8x8xf32> to vector<8x8xbf16>
    %cst_93 = arith.constant dense<0.000000e+00> : vector<8x8xf32>
    %159 = tpu.matmul %157, %158, %cst_93 {dimension_numbers = #tpu.dot_dimension_numbers<[1], [0], [0], [1], [0, 0, 1, 1], [], []>} : vector<8x8xbf16>, vector<8x8xbf16>, vector<8x8xf32> -> vector<8x8xf32>
    %c2_94 = arith.constant 2 : index
    %c0_95 = arith.constant 0 : index
    %c0_96 = arith.constant 0 : index
    %160 = vector.load %arg11[%c2_94, %c0_95, %c0_96] : memref<8x8x32xf32, #tpu.memory_space<vmem>>, vector<1x8x32xf32>
    %161 = vector.shape_cast %160 : vector<1x8x32xf32> to vector<8x32xf32>
    %162 = arith.truncf %159 : vector<8x8xf32> to vector<8x8xbf16>
    %163 = arith.truncf %161 : vector<8x32xf32> to vector<8x32xbf16>
    %cst_97 = arith.constant dense<0.000000e+00> : vector<8x32xf32>
    %164 = tpu.matmul %162, %163, %cst_97 {dimension_numbers = #tpu.dot_dimension_numbers<[1], [0], [0], [1], [0, 0, 1, 1], [], []>} : vector<8x8xbf16>, vector<8x32xbf16>, vector<8x32xf32> -> vector<8x32xf32>
    %165 = arith.addf %114, %164 : vector<8x32xf32>
    %c3 = arith.constant 3 : index
    %c0_98 = arith.constant 0 : index
    %c0_99 = arith.constant 0 : index
    %166 = vector.load %arg5[%c3, %c0_98, %c0_99] : memref<8x32x8xf32, #tpu.memory_space<vmem>>, vector<1x32x8xf32>
    %167 = vector.shape_cast %166 : vector<1x32x8xf32> to vector<32x8xf32>
    %168 = arith.truncf %11 : vector<8x32xf32> to vector<8x32xbf16>
    %169 = arith.truncf %167 : vector<32x8xf32> to vector<32x8xbf16>
    %cst_100 = arith.constant dense<0.000000e+00> : vector<8x8xf32>
    %170 = tpu.matmul %168, %169, %cst_100 {dimension_numbers = #tpu.dot_dimension_numbers<[1], [0], [0], [1], [0, 0, 1, 1], [], []>} : vector<8x32xbf16>, vector<32x8xbf16>, vector<8x8xf32> -> vector<8x8xf32>
    %c3_101 = arith.constant 3 : index
    %c0_102 = arith.constant 0 : index
    %c0_103 = arith.constant 0 : index
    %171 = vector.load %arg8[%c3_101, %c0_102, %c0_103] : memref<8x1x8xf32, #tpu.memory_space<vmem>>, vector<1x1x8xf32>
    %172 = vector.shape_cast %171 : vector<1x1x8xf32> to vector<1x8xf32>
    %173 = vector.broadcast %172 : vector<1x8xf32> to vector<8x8xf32>
    %174 = arith.addf %170, %173 : vector<8x8xf32>
    %c3_104 = arith.constant 3 : index
    %c0_105 = arith.constant 0 : index
    %c0_106 = arith.constant 0 : index
    %175 = vector.load %arg6[%c3_104, %c0_105, %c0_106] : memref<8x32x8xf32, #tpu.memory_space<vmem>>, vector<1x32x8xf32>
    %176 = vector.shape_cast %175 : vector<1x32x8xf32> to vector<32x8xf32>
    %177 = arith.truncf %11 : vector<8x32xf32> to vector<8x32xbf16>
    %178 = arith.truncf %176 : vector<32x8xf32> to vector<32x8xbf16>
    %cst_107 = arith.constant dense<0.000000e+00> : vector<8x8xf32>
    %179 = tpu.matmul %177, %178, %cst_107 {dimension_numbers = #tpu.dot_dimension_numbers<[1], [0], [0], [1], [0, 0, 1, 1], [], []>} : vector<8x32xbf16>, vector<32x8xbf16>, vector<8x8xf32> -> vector<8x8xf32>
    %c3_108 = arith.constant 3 : index
    %c0_109 = arith.constant 0 : index
    %c0_110 = arith.constant 0 : index
    %180 = vector.load %arg9[%c3_108, %c0_109, %c0_110] : memref<8x1x8xf32, #tpu.memory_space<vmem>>, vector<1x1x8xf32>
    %181 = vector.shape_cast %180 : vector<1x1x8xf32> to vector<1x8xf32>
    %182 = vector.broadcast %181 : vector<1x8xf32> to vector<8x8xf32>
    %183 = arith.addf %179, %182 : vector<8x8xf32>
    %c3_111 = arith.constant 3 : index
    %c0_112 = arith.constant 0 : index
    %c0_113 = arith.constant 0 : index
    %184 = vector.load %arg7[%c3_111, %c0_112, %c0_113] : memref<8x32x8xf32, #tpu.memory_space<vmem>>, vector<1x32x8xf32>
    %185 = vector.shape_cast %184 : vector<1x32x8xf32> to vector<32x8xf32>
    %186 = arith.truncf %11 : vector<8x32xf32> to vector<8x32xbf16>
    %187 = arith.truncf %185 : vector<32x8xf32> to vector<32x8xbf16>
    %cst_114 = arith.constant dense<0.000000e+00> : vector<8x8xf32>
    %188 = tpu.matmul %186, %187, %cst_114 {dimension_numbers = #tpu.dot_dimension_numbers<[1], [0], [0], [1], [0, 0, 1, 1], [], []>} : vector<8x32xbf16>, vector<32x8xbf16>, vector<8x8xf32> -> vector<8x8xf32>
    %c3_115 = arith.constant 3 : index
    %c0_116 = arith.constant 0 : index
    %c0_117 = arith.constant 0 : index
    %189 = vector.load %arg10[%c3_115, %c0_116, %c0_117] : memref<8x1x8xf32, #tpu.memory_space<vmem>>, vector<1x1x8xf32>
    %190 = vector.shape_cast %189 : vector<1x1x8xf32> to vector<1x8xf32>
    %191 = vector.broadcast %190 : vector<1x8xf32> to vector<8x8xf32>
    %192 = arith.addf %188, %191 : vector<8x8xf32>
    %193 = arith.truncf %174 : vector<8x8xf32> to vector<8x8xbf16>
    %194 = arith.truncf %183 : vector<8x8xf32> to vector<8x8xbf16>
    %cst_118 = arith.constant dense<0.000000e+00> : vector<8x8xf32>
    %195 = tpu.matmul %193, %194, %cst_118 {dimension_numbers = #tpu.dot_dimension_numbers<[1], [1], [0], [0], [0, 0, 1, 0], [], []>} : vector<8x8xbf16>, vector<8x8xbf16>, vector<8x8xf32> -> vector<8x8xf32>
    %cst_119 = arith.constant 0.353553385 : f32
    %196 = vector.broadcast %cst_119 : f32 to vector<8x8xf32>
    %197 = arith.mulf %195, %196 : vector<8x8xf32>
    %cst_120 = arith.constant dense<0xFF800000> : vector<8xf32>
    %198 = vector.multi_reduction <maximumf>, %197, %cst_120 [1] : vector<8x8xf32> to vector<8xf32>
    %199 = vector.shape_cast %198 : vector<8xf32> to vector<8x1xf32>
    %200 = vector.broadcast %199 : vector<8x1xf32> to vector<8x8xf32>
    %201 = arith.subf %197, %200 : vector<8x8xf32>
    %202 = math.exp %201 : vector<8x8xf32>
    %cst_121 = arith.constant dense<0.000000e+00> : vector<8xf32>
    %203 = vector.multi_reduction <add>, %202, %cst_121 [1] : vector<8x8xf32> to vector<8xf32>
    %204 = vector.shape_cast %203 : vector<8xf32> to vector<8x1xf32>
    %205 = tpu.reciprocal %204 {approx = true} : vector<8x1xf32> -> vector<8x1xf32>
    %206 = vector.broadcast %205 : vector<8x1xf32> to vector<8x8xf32>
    %207 = arith.mulf %202, %206 : vector<8x8xf32>
    %208 = arith.truncf %207 : vector<8x8xf32> to vector<8x8xbf16>
    %209 = arith.truncf %192 : vector<8x8xf32> to vector<8x8xbf16>
    %cst_122 = arith.constant dense<0.000000e+00> : vector<8x8xf32>
    %210 = tpu.matmul %208, %209, %cst_122 {dimension_numbers = #tpu.dot_dimension_numbers<[1], [0], [0], [1], [0, 0, 1, 1], [], []>} : vector<8x8xbf16>, vector<8x8xbf16>, vector<8x8xf32> -> vector<8x8xf32>
    %c3_123 = arith.constant 3 : index
    %c0_124 = arith.constant 0 : index
    %c0_125 = arith.constant 0 : index
    %211 = vector.load %arg11[%c3_123, %c0_124, %c0_125] : memref<8x8x32xf32, #tpu.memory_space<vmem>>, vector<1x8x32xf32>
    %212 = vector.shape_cast %211 : vector<1x8x32xf32> to vector<8x32xf32>
    %213 = arith.truncf %210 : vector<8x8xf32> to vector<8x8xbf16>
    %214 = arith.truncf %212 : vector<8x32xf32> to vector<8x32xbf16>
    %cst_126 = arith.constant dense<0.000000e+00> : vector<8x32xf32>
    %215 = tpu.matmul %213, %214, %cst_126 {dimension_numbers = #tpu.dot_dimension_numbers<[1], [0], [0], [1], [0, 0, 1, 1], [], []>} : vector<8x8xbf16>, vector<8x32xbf16>, vector<8x32xf32> -> vector<8x32xf32>
    %216 = arith.addf %165, %215 : vector<8x32xf32>
    %c0_127 = arith.constant 0 : index
    %c0_128 = arith.constant 0 : index
    %c0_129 = arith.constant 0 : index
    %217 = vector.load %arg12[%c0_127, %c0_128, %c0_129] : memref<2x1x32xf32, #tpu.memory_space<vmem>>, vector<1x1x32xf32>
    %218 = vector.shape_cast %217 : vector<1x1x32xf32> to vector<1x32xf32>
    %219 = vector.broadcast %218 : vector<1x32xf32> to vector<8x32xf32>
    %220 = arith.addf %216, %219 : vector<8x32xf32>
    %221 = arith.addf %11, %220 : vector<8x32xf32>
    %c0_130 = arith.constant 0 : index
    %c0_131 = arith.constant 0 : index
    %c0_132 = arith.constant 0 : index
    %222 = vector.load %arg17[%c0_130, %c0_131, %c0_132] : memref<2x1x32xf32, #tpu.memory_space<vmem>>, vector<1x1x32xf32>
    %223 = vector.shape_cast %222 : vector<1x1x32xf32> to vector<1x32xf32>
    %c0_133 = arith.constant 0 : index
    %c0_134 = arith.constant 0 : index
    %c0_135 = arith.constant 0 : index
    %224 = vector.load %arg18[%c0_133, %c0_134, %c0_135] : memref<2x1x32xf32, #tpu.memory_space<vmem>>, vector<1x1x32xf32>
    %225 = vector.shape_cast %224 : vector<1x1x32xf32> to vector<1x32xf32>
    %cst_136 = arith.constant dense<0.000000e+00> : vector<8xf32>
    %226 = vector.multi_reduction <add>, %221, %cst_136 [1] : vector<8x32xf32> to vector<8xf32>
    %227 = vector.shape_cast %226 : vector<8xf32> to vector<8x1xf32>
    %cst_137 = arith.constant 3.200000e+01 : f32
    %228 = vector.broadcast %cst_137 : f32 to vector<8x1xf32>
    %229 = arith.divf %227, %228 : vector<8x1xf32>
    %230 = vector.broadcast %229 : vector<8x1xf32> to vector<8x32xf32>
    %231 = arith.subf %221, %230 : vector<8x32xf32>
    %232 = arith.mulf %231, %231 : vector<8x32xf32>
    %cst_138 = arith.constant dense<0.000000e+00> : vector<8xf32>
    %233 = vector.multi_reduction <add>, %232, %cst_138 [1] : vector<8x32xf32> to vector<8xf32>
    %234 = vector.shape_cast %233 : vector<8xf32> to vector<8x1xf32>
    %cst_139 = arith.constant 3.200000e+01 : f32
    %235 = vector.broadcast %cst_139 : f32 to vector<8x1xf32>
    %236 = arith.divf %234, %235 : vector<8x1xf32>
    %cst_140 = arith.constant 9.99999974E-6 : f32
    %237 = vector.broadcast %cst_140 : f32 to vector<8x1xf32>
    %238 = arith.addf %236, %237 : vector<8x1xf32>
    %239 = math.rsqrt %238 : vector<8x1xf32>
    %240 = vector.broadcast %239 : vector<8x1xf32> to vector<8x32xf32>
    %241 = arith.mulf %231, %240 : vector<8x32xf32>
    %242 = vector.broadcast %223 : vector<1x32xf32> to vector<8x32xf32>
    %243 = arith.mulf %241, %242 : vector<8x32xf32>
    %244 = vector.broadcast %225 : vector<1x32xf32> to vector<8x32xf32>
    %245 = arith.addf %243, %244 : vector<8x32xf32>
    %c0_141 = arith.constant 0 : index
    %c0_142 = arith.constant 0 : index
    %c0_143 = arith.constant 0 : index
    %246 = vector.load %arg13[%c0_141, %c0_142, %c0_143] : memref<2x32x64xf32, #tpu.memory_space<vmem>>, vector<1x32x64xf32>
    %247 = vector.shape_cast %246 : vector<1x32x64xf32> to vector<32x64xf32>
    %248 = arith.truncf %245 : vector<8x32xf32> to vector<8x32xbf16>
    %249 = arith.truncf %247 : vector<32x64xf32> to vector<32x64xbf16>
    %cst_144 = arith.constant dense<0.000000e+00> : vector<8x64xf32>
    %250 = tpu.matmul %248, %249, %cst_144 {dimension_numbers = #tpu.dot_dimension_numbers<[1], [0], [0], [1], [0, 0, 1, 1], [], []>} : vector<8x32xbf16>, vector<32x64xbf16>, vector<8x64xf32> -> vector<8x64xf32>
    %c0_145 = arith.constant 0 : index
    %c0_146 = arith.constant 0 : index
    %c0_147 = arith.constant 0 : index
    %251 = vector.load %arg14[%c0_145, %c0_146, %c0_147] : memref<2x1x64xf32, #tpu.memory_space<vmem>>, vector<1x1x64xf32>
    %252 = vector.shape_cast %251 : vector<1x1x64xf32> to vector<1x64xf32>
    %253 = vector.broadcast %252 : vector<1x64xf32> to vector<8x64xf32>
    %254 = arith.addf %250, %253 : vector<8x64xf32>
    %cst_148 = arith.constant 0.000000e+00 : f32
    %255 = vector.broadcast %cst_148 : f32 to vector<8x64xf32>
    %256 = arith.maximumf %254, %255 : vector<8x64xf32>
    %c0_149 = arith.constant 0 : index
    %c0_150 = arith.constant 0 : index
    %c0_151 = arith.constant 0 : index
    %257 = vector.load %arg15[%c0_149, %c0_150, %c0_151] : memref<2x64x32xf32, #tpu.memory_space<vmem>>, vector<1x64x32xf32>
    %258 = vector.shape_cast %257 : vector<1x64x32xf32> to vector<64x32xf32>
    %259 = arith.truncf %256 : vector<8x64xf32> to vector<8x64xbf16>
    %260 = arith.truncf %258 : vector<64x32xf32> to vector<64x32xbf16>
    %cst_152 = arith.constant dense<0.000000e+00> : vector<8x32xf32>
    %261 = tpu.matmul %259, %260, %cst_152 {dimension_numbers = #tpu.dot_dimension_numbers<[1], [0], [0], [1], [0, 0, 1, 1], [], []>} : vector<8x64xbf16>, vector<64x32xbf16>, vector<8x32xf32> -> vector<8x32xf32>
    %c0_153 = arith.constant 0 : index
    %c0_154 = arith.constant 0 : index
    %c0_155 = arith.constant 0 : index
    %262 = vector.load %arg16[%c0_153, %c0_154, %c0_155] : memref<2x1x32xf32, #tpu.memory_space<vmem>>, vector<1x1x32xf32>
    %263 = vector.shape_cast %262 : vector<1x1x32xf32> to vector<1x32xf32>
    %264 = vector.broadcast %263 : vector<1x32xf32> to vector<8x32xf32>
    %265 = arith.addf %261, %264 : vector<8x32xf32>
    %266 = arith.addf %245, %265 : vector<8x32xf32>
    %c0_156 = arith.constant 0 : index
    %c0_157 = arith.constant 0 : index
    %c0_158 = arith.constant 0 : index
    %267 = vector.load %arg19[%c0_156, %c0_157, %c0_158] : memref<2x1x32xf32, #tpu.memory_space<vmem>>, vector<1x1x32xf32>
    %268 = vector.shape_cast %267 : vector<1x1x32xf32> to vector<1x32xf32>
    %c0_159 = arith.constant 0 : index
    %c0_160 = arith.constant 0 : index
    %c0_161 = arith.constant 0 : index
    %269 = vector.load %arg20[%c0_159, %c0_160, %c0_161] : memref<2x1x32xf32, #tpu.memory_space<vmem>>, vector<1x1x32xf32>
    %270 = vector.shape_cast %269 : vector<1x1x32xf32> to vector<1x32xf32>
    %cst_162 = arith.constant dense<0.000000e+00> : vector<8xf32>
    %271 = vector.multi_reduction <add>, %266, %cst_162 [1] : vector<8x32xf32> to vector<8xf32>
    %272 = vector.shape_cast %271 : vector<8xf32> to vector<8x1xf32>
    %cst_163 = arith.constant 3.200000e+01 : f32
    %273 = vector.broadcast %cst_163 : f32 to vector<8x1xf32>
    %274 = arith.divf %272, %273 : vector<8x1xf32>
    %275 = vector.broadcast %274 : vector<8x1xf32> to vector<8x32xf32>
    %276 = arith.subf %266, %275 : vector<8x32xf32>
    %277 = arith.mulf %276, %276 : vector<8x32xf32>
    %cst_164 = arith.constant dense<0.000000e+00> : vector<8xf32>
    %278 = vector.multi_reduction <add>, %277, %cst_164 [1] : vector<8x32xf32> to vector<8xf32>
    %279 = vector.shape_cast %278 : vector<8xf32> to vector<8x1xf32>
    %cst_165 = arith.constant 3.200000e+01 : f32
    %280 = vector.broadcast %cst_165 : f32 to vector<8x1xf32>
    %281 = arith.divf %279, %280 : vector<8x1xf32>
    %cst_166 = arith.constant 9.99999974E-6 : f32
    %282 = vector.broadcast %cst_166 : f32 to vector<8x1xf32>
    %283 = arith.addf %281, %282 : vector<8x1xf32>
    %284 = math.rsqrt %283 : vector<8x1xf32>
    %285 = vector.broadcast %284 : vector<8x1xf32> to vector<8x32xf32>
    %286 = arith.mulf %276, %285 : vector<8x32xf32>
    %287 = vector.broadcast %268 : vector<1x32xf32> to vector<8x32xf32>
    %288 = arith.mulf %286, %287 : vector<8x32xf32>
    %289 = vector.broadcast %270 : vector<1x32xf32> to vector<8x32xf32>
    %290 = arith.addf %288, %289 : vector<8x32xf32>
    %cst_167 = arith.constant 0.000000e+00 : f32
    %291 = vector.broadcast %cst_167 : f32 to vector<8x32xf32>
    %c4 = arith.constant 4 : index
    %c0_168 = arith.constant 0 : index
    %c0_169 = arith.constant 0 : index
    %292 = vector.load %arg5[%c4, %c0_168, %c0_169] : memref<8x32x8xf32, #tpu.memory_space<vmem>>, vector<1x32x8xf32>
    %293 = vector.shape_cast %292 : vector<1x32x8xf32> to vector<32x8xf32>
    %294 = arith.truncf %290 : vector<8x32xf32> to vector<8x32xbf16>
    %295 = arith.truncf %293 : vector<32x8xf32> to vector<32x8xbf16>
    %cst_170 = arith.constant dense<0.000000e+00> : vector<8x8xf32>
    %296 = tpu.matmul %294, %295, %cst_170 {dimension_numbers = #tpu.dot_dimension_numbers<[1], [0], [0], [1], [0, 0, 1, 1], [], []>} : vector<8x32xbf16>, vector<32x8xbf16>, vector<8x8xf32> -> vector<8x8xf32>
    %c4_171 = arith.constant 4 : index
    %c0_172 = arith.constant 0 : index
    %c0_173 = arith.constant 0 : index
    %297 = vector.load %arg8[%c4_171, %c0_172, %c0_173] : memref<8x1x8xf32, #tpu.memory_space<vmem>>, vector<1x1x8xf32>
    %298 = vector.shape_cast %297 : vector<1x1x8xf32> to vector<1x8xf32>
    %299 = vector.broadcast %298 : vector<1x8xf32> to vector<8x8xf32>
    %300 = arith.addf %296, %299 : vector<8x8xf32>
    %c4_174 = arith.constant 4 : index
    %c0_175 = arith.constant 0 : index
    %c0_176 = arith.constant 0 : index
    %301 = vector.load %arg6[%c4_174, %c0_175, %c0_176] : memref<8x32x8xf32, #tpu.memory_space<vmem>>, vector<1x32x8xf32>
    %302 = vector.shape_cast %301 : vector<1x32x8xf32> to vector<32x8xf32>
    %303 = arith.truncf %290 : vector<8x32xf32> to vector<8x32xbf16>
    %304 = arith.truncf %302 : vector<32x8xf32> to vector<32x8xbf16>
    %cst_177 = arith.constant dense<0.000000e+00> : vector<8x8xf32>
    %305 = tpu.matmul %303, %304, %cst_177 {dimension_numbers = #tpu.dot_dimension_numbers<[1], [0], [0], [1], [0, 0, 1, 1], [], []>} : vector<8x32xbf16>, vector<32x8xbf16>, vector<8x8xf32> -> vector<8x8xf32>
    %c4_178 = arith.constant 4 : index
    %c0_179 = arith.constant 0 : index
    %c0_180 = arith.constant 0 : index
    %306 = vector.load %arg9[%c4_178, %c0_179, %c0_180] : memref<8x1x8xf32, #tpu.memory_space<vmem>>, vector<1x1x8xf32>
    %307 = vector.shape_cast %306 : vector<1x1x8xf32> to vector<1x8xf32>
    %308 = vector.broadcast %307 : vector<1x8xf32> to vector<8x8xf32>
    %309 = arith.addf %305, %308 : vector<8x8xf32>
    %c4_181 = arith.constant 4 : index
    %c0_182 = arith.constant 0 : index
    %c0_183 = arith.constant 0 : index
    %310 = vector.load %arg7[%c4_181, %c0_182, %c0_183] : memref<8x32x8xf32, #tpu.memory_space<vmem>>, vector<1x32x8xf32>
    %311 = vector.shape_cast %310 : vector<1x32x8xf32> to vector<32x8xf32>
    %312 = arith.truncf %290 : vector<8x32xf32> to vector<8x32xbf16>
    %313 = arith.truncf %311 : vector<32x8xf32> to vector<32x8xbf16>
    %cst_184 = arith.constant dense<0.000000e+00> : vector<8x8xf32>
    %314 = tpu.matmul %312, %313, %cst_184 {dimension_numbers = #tpu.dot_dimension_numbers<[1], [0], [0], [1], [0, 0, 1, 1], [], []>} : vector<8x32xbf16>, vector<32x8xbf16>, vector<8x8xf32> -> vector<8x8xf32>
    %c4_185 = arith.constant 4 : index
    %c0_186 = arith.constant 0 : index
    %c0_187 = arith.constant 0 : index
    %315 = vector.load %arg10[%c4_185, %c0_186, %c0_187] : memref<8x1x8xf32, #tpu.memory_space<vmem>>, vector<1x1x8xf32>
    %316 = vector.shape_cast %315 : vector<1x1x8xf32> to vector<1x8xf32>
    %317 = vector.broadcast %316 : vector<1x8xf32> to vector<8x8xf32>
    %318 = arith.addf %314, %317 : vector<8x8xf32>
    %319 = arith.truncf %300 : vector<8x8xf32> to vector<8x8xbf16>
    %320 = arith.truncf %309 : vector<8x8xf32> to vector<8x8xbf16>
    %cst_188 = arith.constant dense<0.000000e+00> : vector<8x8xf32>
    %321 = tpu.matmul %319, %320, %cst_188 {dimension_numbers = #tpu.dot_dimension_numbers<[1], [1], [0], [0], [0, 0, 1, 0], [], []>} : vector<8x8xbf16>, vector<8x8xbf16>, vector<8x8xf32> -> vector<8x8xf32>
    %cst_189 = arith.constant 0.353553385 : f32
    %322 = vector.broadcast %cst_189 : f32 to vector<8x8xf32>
    %323 = arith.mulf %321, %322 : vector<8x8xf32>
    %cst_190 = arith.constant dense<0xFF800000> : vector<8xf32>
    %324 = vector.multi_reduction <maximumf>, %323, %cst_190 [1] : vector<8x8xf32> to vector<8xf32>
    %325 = vector.shape_cast %324 : vector<8xf32> to vector<8x1xf32>
    %326 = vector.broadcast %325 : vector<8x1xf32> to vector<8x8xf32>
    %327 = arith.subf %323, %326 : vector<8x8xf32>
    %328 = math.exp %327 : vector<8x8xf32>
    %cst_191 = arith.constant dense<0.000000e+00> : vector<8xf32>
    %329 = vector.multi_reduction <add>, %328, %cst_191 [1] : vector<8x8xf32> to vector<8xf32>
    %330 = vector.shape_cast %329 : vector<8xf32> to vector<8x1xf32>
    %331 = tpu.reciprocal %330 {approx = true} : vector<8x1xf32> -> vector<8x1xf32>
    %332 = vector.broadcast %331 : vector<8x1xf32> to vector<8x8xf32>
    %333 = arith.mulf %328, %332 : vector<8x8xf32>
    %334 = arith.truncf %333 : vector<8x8xf32> to vector<8x8xbf16>
    %335 = arith.truncf %318 : vector<8x8xf32> to vector<8x8xbf16>
    %cst_192 = arith.constant dense<0.000000e+00> : vector<8x8xf32>
    %336 = tpu.matmul %334, %335, %cst_192 {dimension_numbers = #tpu.dot_dimension_numbers<[1], [0], [0], [1], [0, 0, 1, 1], [], []>} : vector<8x8xbf16>, vector<8x8xbf16>, vector<8x8xf32> -> vector<8x8xf32>
    %c4_193 = arith.constant 4 : index
    %c0_194 = arith.constant 0 : index
    %c0_195 = arith.constant 0 : index
    %337 = vector.load %arg11[%c4_193, %c0_194, %c0_195] : memref<8x8x32xf32, #tpu.memory_space<vmem>>, vector<1x8x32xf32>
    %338 = vector.shape_cast %337 : vector<1x8x32xf32> to vector<8x32xf32>
    %339 = arith.truncf %336 : vector<8x8xf32> to vector<8x8xbf16>
    %340 = arith.truncf %338 : vector<8x32xf32> to vector<8x32xbf16>
    %cst_196 = arith.constant dense<0.000000e+00> : vector<8x32xf32>
    %341 = tpu.matmul %339, %340, %cst_196 {dimension_numbers = #tpu.dot_dimension_numbers<[1], [0], [0], [1], [0, 0, 1, 1], [], []>} : vector<8x8xbf16>, vector<8x32xbf16>, vector<8x32xf32> -> vector<8x32xf32>
    %342 = arith.addf %291, %341 : vector<8x32xf32>
    %c5 = arith.constant 5 : index
    %c0_197 = arith.constant 0 : index
    %c0_198 = arith.constant 0 : index
    %343 = vector.load %arg5[%c5, %c0_197, %c0_198] : memref<8x32x8xf32, #tpu.memory_space<vmem>>, vector<1x32x8xf32>
    %344 = vector.shape_cast %343 : vector<1x32x8xf32> to vector<32x8xf32>
    %345 = arith.truncf %290 : vector<8x32xf32> to vector<8x32xbf16>
    %346 = arith.truncf %344 : vector<32x8xf32> to vector<32x8xbf16>
    %cst_199 = arith.constant dense<0.000000e+00> : vector<8x8xf32>
    %347 = tpu.matmul %345, %346, %cst_199 {dimension_numbers = #tpu.dot_dimension_numbers<[1], [0], [0], [1], [0, 0, 1, 1], [], []>} : vector<8x32xbf16>, vector<32x8xbf16>, vector<8x8xf32> -> vector<8x8xf32>
    %c5_200 = arith.constant 5 : index
    %c0_201 = arith.constant 0 : index
    %c0_202 = arith.constant 0 : index
    %348 = vector.load %arg8[%c5_200, %c0_201, %c0_202] : memref<8x1x8xf32, #tpu.memory_space<vmem>>, vector<1x1x8xf32>
    %349 = vector.shape_cast %348 : vector<1x1x8xf32> to vector<1x8xf32>
    %350 = vector.broadcast %349 : vector<1x8xf32> to vector<8x8xf32>
    %351 = arith.addf %347, %350 : vector<8x8xf32>
    %c5_203 = arith.constant 5 : index
    %c0_204 = arith.constant 0 : index
    %c0_205 = arith.constant 0 : index
    %352 = vector.load %arg6[%c5_203, %c0_204, %c0_205] : memref<8x32x8xf32, #tpu.memory_space<vmem>>, vector<1x32x8xf32>
    %353 = vector.shape_cast %352 : vector<1x32x8xf32> to vector<32x8xf32>
    %354 = arith.truncf %290 : vector<8x32xf32> to vector<8x32xbf16>
    %355 = arith.truncf %353 : vector<32x8xf32> to vector<32x8xbf16>
    %cst_206 = arith.constant dense<0.000000e+00> : vector<8x8xf32>
    %356 = tpu.matmul %354, %355, %cst_206 {dimension_numbers = #tpu.dot_dimension_numbers<[1], [0], [0], [1], [0, 0, 1, 1], [], []>} : vector<8x32xbf16>, vector<32x8xbf16>, vector<8x8xf32> -> vector<8x8xf32>
    %c5_207 = arith.constant 5 : index
    %c0_208 = arith.constant 0 : index
    %c0_209 = arith.constant 0 : index
    %357 = vector.load %arg9[%c5_207, %c0_208, %c0_209] : memref<8x1x8xf32, #tpu.memory_space<vmem>>, vector<1x1x8xf32>
    %358 = vector.shape_cast %357 : vector<1x1x8xf32> to vector<1x8xf32>
    %359 = vector.broadcast %358 : vector<1x8xf32> to vector<8x8xf32>
    %360 = arith.addf %356, %359 : vector<8x8xf32>
    %c5_210 = arith.constant 5 : index
    %c0_211 = arith.constant 0 : index
    %c0_212 = arith.constant 0 : index
    %361 = vector.load %arg7[%c5_210, %c0_211, %c0_212] : memref<8x32x8xf32, #tpu.memory_space<vmem>>, vector<1x32x8xf32>
    %362 = vector.shape_cast %361 : vector<1x32x8xf32> to vector<32x8xf32>
    %363 = arith.truncf %290 : vector<8x32xf32> to vector<8x32xbf16>
    %364 = arith.truncf %362 : vector<32x8xf32> to vector<32x8xbf16>
    %cst_213 = arith.constant dense<0.000000e+00> : vector<8x8xf32>
    %365 = tpu.matmul %363, %364, %cst_213 {dimension_numbers = #tpu.dot_dimension_numbers<[1], [0], [0], [1], [0, 0, 1, 1], [], []>} : vector<8x32xbf16>, vector<32x8xbf16>, vector<8x8xf32> -> vector<8x8xf32>
    %c5_214 = arith.constant 5 : index
    %c0_215 = arith.constant 0 : index
    %c0_216 = arith.constant 0 : index
    %366 = vector.load %arg10[%c5_214, %c0_215, %c0_216] : memref<8x1x8xf32, #tpu.memory_space<vmem>>, vector<1x1x8xf32>
    %367 = vector.shape_cast %366 : vector<1x1x8xf32> to vector<1x8xf32>
    %368 = vector.broadcast %367 : vector<1x8xf32> to vector<8x8xf32>
    %369 = arith.addf %365, %368 : vector<8x8xf32>
    %370 = arith.truncf %351 : vector<8x8xf32> to vector<8x8xbf16>
    %371 = arith.truncf %360 : vector<8x8xf32> to vector<8x8xbf16>
    %cst_217 = arith.constant dense<0.000000e+00> : vector<8x8xf32>
    %372 = tpu.matmul %370, %371, %cst_217 {dimension_numbers = #tpu.dot_dimension_numbers<[1], [1], [0], [0], [0, 0, 1, 0], [], []>} : vector<8x8xbf16>, vector<8x8xbf16>, vector<8x8xf32> -> vector<8x8xf32>
    %cst_218 = arith.constant 0.353553385 : f32
    %373 = vector.broadcast %cst_218 : f32 to vector<8x8xf32>
    %374 = arith.mulf %372, %373 : vector<8x8xf32>
    %cst_219 = arith.constant dense<0xFF800000> : vector<8xf32>
    %375 = vector.multi_reduction <maximumf>, %374, %cst_219 [1] : vector<8x8xf32> to vector<8xf32>
    %376 = vector.shape_cast %375 : vector<8xf32> to vector<8x1xf32>
    %377 = vector.broadcast %376 : vector<8x1xf32> to vector<8x8xf32>
    %378 = arith.subf %374, %377 : vector<8x8xf32>
    %379 = math.exp %378 : vector<8x8xf32>
    %cst_220 = arith.constant dense<0.000000e+00> : vector<8xf32>
    %380 = vector.multi_reduction <add>, %379, %cst_220 [1] : vector<8x8xf32> to vector<8xf32>
    %381 = vector.shape_cast %380 : vector<8xf32> to vector<8x1xf32>
    %382 = tpu.reciprocal %381 {approx = true} : vector<8x1xf32> -> vector<8x1xf32>
    %383 = vector.broadcast %382 : vector<8x1xf32> to vector<8x8xf32>
    %384 = arith.mulf %379, %383 : vector<8x8xf32>
    %385 = arith.truncf %384 : vector<8x8xf32> to vector<8x8xbf16>
    %386 = arith.truncf %369 : vector<8x8xf32> to vector<8x8xbf16>
    %cst_221 = arith.constant dense<0.000000e+00> : vector<8x8xf32>
    %387 = tpu.matmul %385, %386, %cst_221 {dimension_numbers = #tpu.dot_dimension_numbers<[1], [0], [0], [1], [0, 0, 1, 1], [], []>} : vector<8x8xbf16>, vector<8x8xbf16>, vector<8x8xf32> -> vector<8x8xf32>
    %c5_222 = arith.constant 5 : index
    %c0_223 = arith.constant 0 : index
    %c0_224 = arith.constant 0 : index
    %388 = vector.load %arg11[%c5_222, %c0_223, %c0_224] : memref<8x8x32xf32, #tpu.memory_space<vmem>>, vector<1x8x32xf32>
    %389 = vector.shape_cast %388 : vector<1x8x32xf32> to vector<8x32xf32>
    %390 = arith.truncf %387 : vector<8x8xf32> to vector<8x8xbf16>
    %391 = arith.truncf %389 : vector<8x32xf32> to vector<8x32xbf16>
    %cst_225 = arith.constant dense<0.000000e+00> : vector<8x32xf32>
    %392 = tpu.matmul %390, %391, %cst_225 {dimension_numbers = #tpu.dot_dimension_numbers<[1], [0], [0], [1], [0, 0, 1, 1], [], []>} : vector<8x8xbf16>, vector<8x32xbf16>, vector<8x32xf32> -> vector<8x32xf32>
    %393 = arith.addf %342, %392 : vector<8x32xf32>
    %c6 = arith.constant 6 : index
    %c0_226 = arith.constant 0 : index
    %c0_227 = arith.constant 0 : index
    %394 = vector.load %arg5[%c6, %c0_226, %c0_227] : memref<8x32x8xf32, #tpu.memory_space<vmem>>, vector<1x32x8xf32>
    %395 = vector.shape_cast %394 : vector<1x32x8xf32> to vector<32x8xf32>
    %396 = arith.truncf %290 : vector<8x32xf32> to vector<8x32xbf16>
    %397 = arith.truncf %395 : vector<32x8xf32> to vector<32x8xbf16>
    %cst_228 = arith.constant dense<0.000000e+00> : vector<8x8xf32>
    %398 = tpu.matmul %396, %397, %cst_228 {dimension_numbers = #tpu.dot_dimension_numbers<[1], [0], [0], [1], [0, 0, 1, 1], [], []>} : vector<8x32xbf16>, vector<32x8xbf16>, vector<8x8xf32> -> vector<8x8xf32>
    %c6_229 = arith.constant 6 : index
    %c0_230 = arith.constant 0 : index
    %c0_231 = arith.constant 0 : index
    %399 = vector.load %arg8[%c6_229, %c0_230, %c0_231] : memref<8x1x8xf32, #tpu.memory_space<vmem>>, vector<1x1x8xf32>
    %400 = vector.shape_cast %399 : vector<1x1x8xf32> to vector<1x8xf32>
    %401 = vector.broadcast %400 : vector<1x8xf32> to vector<8x8xf32>
    %402 = arith.addf %398, %401 : vector<8x8xf32>
    %c6_232 = arith.constant 6 : index
    %c0_233 = arith.constant 0 : index
    %c0_234 = arith.constant 0 : index
    %403 = vector.load %arg6[%c6_232, %c0_233, %c0_234] : memref<8x32x8xf32, #tpu.memory_space<vmem>>, vector<1x32x8xf32>
    %404 = vector.shape_cast %403 : vector<1x32x8xf32> to vector<32x8xf32>
    %405 = arith.truncf %290 : vector<8x32xf32> to vector<8x32xbf16>
    %406 = arith.truncf %404 : vector<32x8xf32> to vector<32x8xbf16>
    %cst_235 = arith.constant dense<0.000000e+00> : vector<8x8xf32>
    %407 = tpu.matmul %405, %406, %cst_235 {dimension_numbers = #tpu.dot_dimension_numbers<[1], [0], [0], [1], [0, 0, 1, 1], [], []>} : vector<8x32xbf16>, vector<32x8xbf16>, vector<8x8xf32> -> vector<8x8xf32>
    %c6_236 = arith.constant 6 : index
    %c0_237 = arith.constant 0 : index
    %c0_238 = arith.constant 0 : index
    %408 = vector.load %arg9[%c6_236, %c0_237, %c0_238] : memref<8x1x8xf32, #tpu.memory_space<vmem>>, vector<1x1x8xf32>
    %409 = vector.shape_cast %408 : vector<1x1x8xf32> to vector<1x8xf32>
    %410 = vector.broadcast %409 : vector<1x8xf32> to vector<8x8xf32>
    %411 = arith.addf %407, %410 : vector<8x8xf32>
    %c6_239 = arith.constant 6 : index
    %c0_240 = arith.constant 0 : index
    %c0_241 = arith.constant 0 : index
    %412 = vector.load %arg7[%c6_239, %c0_240, %c0_241] : memref<8x32x8xf32, #tpu.memory_space<vmem>>, vector<1x32x8xf32>
    %413 = vector.shape_cast %412 : vector<1x32x8xf32> to vector<32x8xf32>
    %414 = arith.truncf %290 : vector<8x32xf32> to vector<8x32xbf16>
    %415 = arith.truncf %413 : vector<32x8xf32> to vector<32x8xbf16>
    %cst_242 = arith.constant dense<0.000000e+00> : vector<8x8xf32>
    %416 = tpu.matmul %414, %415, %cst_242 {dimension_numbers = #tpu.dot_dimension_numbers<[1], [0], [0], [1], [0, 0, 1, 1], [], []>} : vector<8x32xbf16>, vector<32x8xbf16>, vector<8x8xf32> -> vector<8x8xf32>
    %c6_243 = arith.constant 6 : index
    %c0_244 = arith.constant 0 : index
    %c0_245 = arith.constant 0 : index
    %417 = vector.load %arg10[%c6_243, %c0_244, %c0_245] : memref<8x1x8xf32, #tpu.memory_space<vmem>>, vector<1x1x8xf32>
    %418 = vector.shape_cast %417 : vector<1x1x8xf32> to vector<1x8xf32>
    %419 = vector.broadcast %418 : vector<1x8xf32> to vector<8x8xf32>
    %420 = arith.addf %416, %419 : vector<8x8xf32>
    %421 = arith.truncf %402 : vector<8x8xf32> to vector<8x8xbf16>
    %422 = arith.truncf %411 : vector<8x8xf32> to vector<8x8xbf16>
    %cst_246 = arith.constant dense<0.000000e+00> : vector<8x8xf32>
    %423 = tpu.matmul %421, %422, %cst_246 {dimension_numbers = #tpu.dot_dimension_numbers<[1], [1], [0], [0], [0, 0, 1, 0], [], []>} : vector<8x8xbf16>, vector<8x8xbf16>, vector<8x8xf32> -> vector<8x8xf32>
    %cst_247 = arith.constant 0.353553385 : f32
    %424 = vector.broadcast %cst_247 : f32 to vector<8x8xf32>
    %425 = arith.mulf %423, %424 : vector<8x8xf32>
    %cst_248 = arith.constant dense<0xFF800000> : vector<8xf32>
    %426 = vector.multi_reduction <maximumf>, %425, %cst_248 [1] : vector<8x8xf32> to vector<8xf32>
    %427 = vector.shape_cast %426 : vector<8xf32> to vector<8x1xf32>
    %428 = vector.broadcast %427 : vector<8x1xf32> to vector<8x8xf32>
    %429 = arith.subf %425, %428 : vector<8x8xf32>
    %430 = math.exp %429 : vector<8x8xf32>
    %cst_249 = arith.constant dense<0.000000e+00> : vector<8xf32>
    %431 = vector.multi_reduction <add>, %430, %cst_249 [1] : vector<8x8xf32> to vector<8xf32>
    %432 = vector.shape_cast %431 : vector<8xf32> to vector<8x1xf32>
    %433 = tpu.reciprocal %432 {approx = true} : vector<8x1xf32> -> vector<8x1xf32>
    %434 = vector.broadcast %433 : vector<8x1xf32> to vector<8x8xf32>
    %435 = arith.mulf %430, %434 : vector<8x8xf32>
    %436 = arith.truncf %435 : vector<8x8xf32> to vector<8x8xbf16>
    %437 = arith.truncf %420 : vector<8x8xf32> to vector<8x8xbf16>
    %cst_250 = arith.constant dense<0.000000e+00> : vector<8x8xf32>
    %438 = tpu.matmul %436, %437, %cst_250 {dimension_numbers = #tpu.dot_dimension_numbers<[1], [0], [0], [1], [0, 0, 1, 1], [], []>} : vector<8x8xbf16>, vector<8x8xbf16>, vector<8x8xf32> -> vector<8x8xf32>
    %c6_251 = arith.constant 6 : index
    %c0_252 = arith.constant 0 : index
    %c0_253 = arith.constant 0 : index
    %439 = vector.load %arg11[%c6_251, %c0_252, %c0_253] : memref<8x8x32xf32, #tpu.memory_space<vmem>>, vector<1x8x32xf32>
    %440 = vector.shape_cast %439 : vector<1x8x32xf32> to vector<8x32xf32>
    %441 = arith.truncf %438 : vector<8x8xf32> to vector<8x8xbf16>
    %442 = arith.truncf %440 : vector<8x32xf32> to vector<8x32xbf16>
    %cst_254 = arith.constant dense<0.000000e+00> : vector<8x32xf32>
    %443 = tpu.matmul %441, %442, %cst_254 {dimension_numbers = #tpu.dot_dimension_numbers<[1], [0], [0], [1], [0, 0, 1, 1], [], []>} : vector<8x8xbf16>, vector<8x32xbf16>, vector<8x32xf32> -> vector<8x32xf32>
    %444 = arith.addf %393, %443 : vector<8x32xf32>
    %c7 = arith.constant 7 : index
    %c0_255 = arith.constant 0 : index
    %c0_256 = arith.constant 0 : index
    %445 = vector.load %arg5[%c7, %c0_255, %c0_256] : memref<8x32x8xf32, #tpu.memory_space<vmem>>, vector<1x32x8xf32>
    %446 = vector.shape_cast %445 : vector<1x32x8xf32> to vector<32x8xf32>
    %447 = arith.truncf %290 : vector<8x32xf32> to vector<8x32xbf16>
    %448 = arith.truncf %446 : vector<32x8xf32> to vector<32x8xbf16>
    %cst_257 = arith.constant dense<0.000000e+00> : vector<8x8xf32>
    %449 = tpu.matmul %447, %448, %cst_257 {dimension_numbers = #tpu.dot_dimension_numbers<[1], [0], [0], [1], [0, 0, 1, 1], [], []>} : vector<8x32xbf16>, vector<32x8xbf16>, vector<8x8xf32> -> vector<8x8xf32>
    %c7_258 = arith.constant 7 : index
    %c0_259 = arith.constant 0 : index
    %c0_260 = arith.constant 0 : index
    %450 = vector.load %arg8[%c7_258, %c0_259, %c0_260] : memref<8x1x8xf32, #tpu.memory_space<vmem>>, vector<1x1x8xf32>
    %451 = vector.shape_cast %450 : vector<1x1x8xf32> to vector<1x8xf32>
    %452 = vector.broadcast %451 : vector<1x8xf32> to vector<8x8xf32>
    %453 = arith.addf %449, %452 : vector<8x8xf32>
    %c7_261 = arith.constant 7 : index
    %c0_262 = arith.constant 0 : index
    %c0_263 = arith.constant 0 : index
    %454 = vector.load %arg6[%c7_261, %c0_262, %c0_263] : memref<8x32x8xf32, #tpu.memory_space<vmem>>, vector<1x32x8xf32>
    %455 = vector.shape_cast %454 : vector<1x32x8xf32> to vector<32x8xf32>
    %456 = arith.truncf %290 : vector<8x32xf32> to vector<8x32xbf16>
    %457 = arith.truncf %455 : vector<32x8xf32> to vector<32x8xbf16>
    %cst_264 = arith.constant dense<0.000000e+00> : vector<8x8xf32>
    %458 = tpu.matmul %456, %457, %cst_264 {dimension_numbers = #tpu.dot_dimension_numbers<[1], [0], [0], [1], [0, 0, 1, 1], [], []>} : vector<8x32xbf16>, vector<32x8xbf16>, vector<8x8xf32> -> vector<8x8xf32>
    %c7_265 = arith.constant 7 : index
    %c0_266 = arith.constant 0 : index
    %c0_267 = arith.constant 0 : index
    %459 = vector.load %arg9[%c7_265, %c0_266, %c0_267] : memref<8x1x8xf32, #tpu.memory_space<vmem>>, vector<1x1x8xf32>
    %460 = vector.shape_cast %459 : vector<1x1x8xf32> to vector<1x8xf32>
    %461 = vector.broadcast %460 : vector<1x8xf32> to vector<8x8xf32>
    %462 = arith.addf %458, %461 : vector<8x8xf32>
    %c7_268 = arith.constant 7 : index
    %c0_269 = arith.constant 0 : index
    %c0_270 = arith.constant 0 : index
    %463 = vector.load %arg7[%c7_268, %c0_269, %c0_270] : memref<8x32x8xf32, #tpu.memory_space<vmem>>, vector<1x32x8xf32>
    %464 = vector.shape_cast %463 : vector<1x32x8xf32> to vector<32x8xf32>
    %465 = arith.truncf %290 : vector<8x32xf32> to vector<8x32xbf16>
    %466 = arith.truncf %464 : vector<32x8xf32> to vector<32x8xbf16>
    %cst_271 = arith.constant dense<0.000000e+00> : vector<8x8xf32>
    %467 = tpu.matmul %465, %466, %cst_271 {dimension_numbers = #tpu.dot_dimension_numbers<[1], [0], [0], [1], [0, 0, 1, 1], [], []>} : vector<8x32xbf16>, vector<32x8xbf16>, vector<8x8xf32> -> vector<8x8xf32>
    %c7_272 = arith.constant 7 : index
    %c0_273 = arith.constant 0 : index
    %c0_274 = arith.constant 0 : index
    %468 = vector.load %arg10[%c7_272, %c0_273, %c0_274] : memref<8x1x8xf32, #tpu.memory_space<vmem>>, vector<1x1x8xf32>
    %469 = vector.shape_cast %468 : vector<1x1x8xf32> to vector<1x8xf32>
    %470 = vector.broadcast %469 : vector<1x8xf32> to vector<8x8xf32>
    %471 = arith.addf %467, %470 : vector<8x8xf32>
    %472 = arith.truncf %453 : vector<8x8xf32> to vector<8x8xbf16>
    %473 = arith.truncf %462 : vector<8x8xf32> to vector<8x8xbf16>
    %cst_275 = arith.constant dense<0.000000e+00> : vector<8x8xf32>
    %474 = tpu.matmul %472, %473, %cst_275 {dimension_numbers = #tpu.dot_dimension_numbers<[1], [1], [0], [0], [0, 0, 1, 0], [], []>} : vector<8x8xbf16>, vector<8x8xbf16>, vector<8x8xf32> -> vector<8x8xf32>
    %cst_276 = arith.constant 0.353553385 : f32
    %475 = vector.broadcast %cst_276 : f32 to vector<8x8xf32>
    %476 = arith.mulf %474, %475 : vector<8x8xf32>
    %cst_277 = arith.constant dense<0xFF800000> : vector<8xf32>
    %477 = vector.multi_reduction <maximumf>, %476, %cst_277 [1] : vector<8x8xf32> to vector<8xf32>
    %478 = vector.shape_cast %477 : vector<8xf32> to vector<8x1xf32>
    %479 = vector.broadcast %478 : vector<8x1xf32> to vector<8x8xf32>
    %480 = arith.subf %476, %479 : vector<8x8xf32>
    %481 = math.exp %480 : vector<8x8xf32>
    %cst_278 = arith.constant dense<0.000000e+00> : vector<8xf32>
    %482 = vector.multi_reduction <add>, %481, %cst_278 [1] : vector<8x8xf32> to vector<8xf32>
    %483 = vector.shape_cast %482 : vector<8xf32> to vector<8x1xf32>
    %484 = tpu.reciprocal %483 {approx = true} : vector<8x1xf32> -> vector<8x1xf32>
    %485 = vector.broadcast %484 : vector<8x1xf32> to vector<8x8xf32>
    %486 = arith.mulf %481, %485 : vector<8x8xf32>
    %487 = arith.truncf %486 : vector<8x8xf32> to vector<8x8xbf16>
    %488 = arith.truncf %471 : vector<8x8xf32> to vector<8x8xbf16>
    %cst_279 = arith.constant dense<0.000000e+00> : vector<8x8xf32>
    %489 = tpu.matmul %487, %488, %cst_279 {dimension_numbers = #tpu.dot_dimension_numbers<[1], [0], [0], [1], [0, 0, 1, 1], [], []>} : vector<8x8xbf16>, vector<8x8xbf16>, vector<8x8xf32> -> vector<8x8xf32>
    %c7_280 = arith.constant 7 : index
    %c0_281 = arith.constant 0 : index
    %c0_282 = arith.constant 0 : index
    %490 = vector.load %arg11[%c7_280, %c0_281, %c0_282] : memref<8x8x32xf32, #tpu.memory_space<vmem>>, vector<1x8x32xf32>
    %491 = vector.shape_cast %490 : vector<1x8x32xf32> to vector<8x32xf32>
    %492 = arith.truncf %489 : vector<8x8xf32> to vector<8x8xbf16>
    %493 = arith.truncf %491 : vector<8x32xf32> to vector<8x32xbf16>
    %cst_283 = arith.constant dense<0.000000e+00> : vector<8x32xf32>
    %494 = tpu.matmul %492, %493, %cst_283 {dimension_numbers = #tpu.dot_dimension_numbers<[1], [0], [0], [1], [0, 0, 1, 1], [], []>} : vector<8x8xbf16>, vector<8x32xbf16>, vector<8x32xf32> -> vector<8x32xf32>
    %495 = arith.addf %444, %494 : vector<8x32xf32>
    %c1_284 = arith.constant 1 : index
    %c0_285 = arith.constant 0 : index
    %c0_286 = arith.constant 0 : index
    %496 = vector.load %arg12[%c1_284, %c0_285, %c0_286] : memref<2x1x32xf32, #tpu.memory_space<vmem>>, vector<1x1x32xf32>
    %497 = vector.shape_cast %496 : vector<1x1x32xf32> to vector<1x32xf32>
    %498 = vector.broadcast %497 : vector<1x32xf32> to vector<8x32xf32>
    %499 = arith.addf %495, %498 : vector<8x32xf32>
    %500 = arith.addf %290, %499 : vector<8x32xf32>
    %c1_287 = arith.constant 1 : index
    %c0_288 = arith.constant 0 : index
    %c0_289 = arith.constant 0 : index
    %501 = vector.load %arg17[%c1_287, %c0_288, %c0_289] : memref<2x1x32xf32, #tpu.memory_space<vmem>>, vector<1x1x32xf32>
    %502 = vector.shape_cast %501 : vector<1x1x32xf32> to vector<1x32xf32>
    %c1_290 = arith.constant 1 : index
    %c0_291 = arith.constant 0 : index
    %c0_292 = arith.constant 0 : index
    %503 = vector.load %arg18[%c1_290, %c0_291, %c0_292] : memref<2x1x32xf32, #tpu.memory_space<vmem>>, vector<1x1x32xf32>
    %504 = vector.shape_cast %503 : vector<1x1x32xf32> to vector<1x32xf32>
    %cst_293 = arith.constant dense<0.000000e+00> : vector<8xf32>
    %505 = vector.multi_reduction <add>, %500, %cst_293 [1] : vector<8x32xf32> to vector<8xf32>
    %506 = vector.shape_cast %505 : vector<8xf32> to vector<8x1xf32>
    %cst_294 = arith.constant 3.200000e+01 : f32
    %507 = vector.broadcast %cst_294 : f32 to vector<8x1xf32>
    %508 = arith.divf %506, %507 : vector<8x1xf32>
    %509 = vector.broadcast %508 : vector<8x1xf32> to vector<8x32xf32>
    %510 = arith.subf %500, %509 : vector<8x32xf32>
    %511 = arith.mulf %510, %510 : vector<8x32xf32>
    %cst_295 = arith.constant dense<0.000000e+00> : vector<8xf32>
    %512 = vector.multi_reduction <add>, %511, %cst_295 [1] : vector<8x32xf32> to vector<8xf32>
    %513 = vector.shape_cast %512 : vector<8xf32> to vector<8x1xf32>
    %cst_296 = arith.constant 3.200000e+01 : f32
    %514 = vector.broadcast %cst_296 : f32 to vector<8x1xf32>
    %515 = arith.divf %513, %514 : vector<8x1xf32>
    %cst_297 = arith.constant 9.99999974E-6 : f32
    %516 = vector.broadcast %cst_297 : f32 to vector<8x1xf32>
    %517 = arith.addf %515, %516 : vector<8x1xf32>
    %518 = math.rsqrt %517 : vector<8x1xf32>
    %519 = vector.broadcast %518 : vector<8x1xf32> to vector<8x32xf32>
    %520 = arith.mulf %510, %519 : vector<8x32xf32>
    %521 = vector.broadcast %502 : vector<1x32xf32> to vector<8x32xf32>
    %522 = arith.mulf %520, %521 : vector<8x32xf32>
    %523 = vector.broadcast %504 : vector<1x32xf32> to vector<8x32xf32>
    %524 = arith.addf %522, %523 : vector<8x32xf32>
    %c1_298 = arith.constant 1 : index
    %c0_299 = arith.constant 0 : index
    %c0_300 = arith.constant 0 : index
    %525 = vector.load %arg13[%c1_298, %c0_299, %c0_300] : memref<2x32x64xf32, #tpu.memory_space<vmem>>, vector<1x32x64xf32>
    %526 = vector.shape_cast %525 : vector<1x32x64xf32> to vector<32x64xf32>
    %527 = arith.truncf %524 : vector<8x32xf32> to vector<8x32xbf16>
    %528 = arith.truncf %526 : vector<32x64xf32> to vector<32x64xbf16>
    %cst_301 = arith.constant dense<0.000000e+00> : vector<8x64xf32>
    %529 = tpu.matmul %527, %528, %cst_301 {dimension_numbers = #tpu.dot_dimension_numbers<[1], [0], [0], [1], [0, 0, 1, 1], [], []>} : vector<8x32xbf16>, vector<32x64xbf16>, vector<8x64xf32> -> vector<8x64xf32>
    %c1_302 = arith.constant 1 : index
    %c0_303 = arith.constant 0 : index
    %c0_304 = arith.constant 0 : index
    %530 = vector.load %arg14[%c1_302, %c0_303, %c0_304] : memref<2x1x64xf32, #tpu.memory_space<vmem>>, vector<1x1x64xf32>
    %531 = vector.shape_cast %530 : vector<1x1x64xf32> to vector<1x64xf32>
    %532 = vector.broadcast %531 : vector<1x64xf32> to vector<8x64xf32>
    %533 = arith.addf %529, %532 : vector<8x64xf32>
    %cst_305 = arith.constant 0.000000e+00 : f32
    %534 = vector.broadcast %cst_305 : f32 to vector<8x64xf32>
    %535 = arith.maximumf %533, %534 : vector<8x64xf32>
    %c1_306 = arith.constant 1 : index
    %c0_307 = arith.constant 0 : index
    %c0_308 = arith.constant 0 : index
    %536 = vector.load %arg15[%c1_306, %c0_307, %c0_308] : memref<2x64x32xf32, #tpu.memory_space<vmem>>, vector<1x64x32xf32>
    %537 = vector.shape_cast %536 : vector<1x64x32xf32> to vector<64x32xf32>
    %538 = arith.truncf %535 : vector<8x64xf32> to vector<8x64xbf16>
    %539 = arith.truncf %537 : vector<64x32xf32> to vector<64x32xbf16>
    %cst_309 = arith.constant dense<0.000000e+00> : vector<8x32xf32>
    %540 = tpu.matmul %538, %539, %cst_309 {dimension_numbers = #tpu.dot_dimension_numbers<[1], [0], [0], [1], [0, 0, 1, 1], [], []>} : vector<8x64xbf16>, vector<64x32xbf16>, vector<8x32xf32> -> vector<8x32xf32>
    %c1_310 = arith.constant 1 : index
    %c0_311 = arith.constant 0 : index
    %c0_312 = arith.constant 0 : index
    %541 = vector.load %arg16[%c1_310, %c0_311, %c0_312] : memref<2x1x32xf32, #tpu.memory_space<vmem>>, vector<1x1x32xf32>
    %542 = vector.shape_cast %541 : vector<1x1x32xf32> to vector<1x32xf32>
    %543 = vector.broadcast %542 : vector<1x32xf32> to vector<8x32xf32>
    %544 = arith.addf %540, %543 : vector<8x32xf32>
    %545 = arith.addf %524, %544 : vector<8x32xf32>
    %c1_313 = arith.constant 1 : index
    %c0_314 = arith.constant 0 : index
    %c0_315 = arith.constant 0 : index
    %546 = vector.load %arg19[%c1_313, %c0_314, %c0_315] : memref<2x1x32xf32, #tpu.memory_space<vmem>>, vector<1x1x32xf32>
    %547 = vector.shape_cast %546 : vector<1x1x32xf32> to vector<1x32xf32>
    %c1_316 = arith.constant 1 : index
    %c0_317 = arith.constant 0 : index
    %c0_318 = arith.constant 0 : index
    %548 = vector.load %arg20[%c1_316, %c0_317, %c0_318] : memref<2x1x32xf32, #tpu.memory_space<vmem>>, vector<1x1x32xf32>
    %549 = vector.shape_cast %548 : vector<1x1x32xf32> to vector<1x32xf32>
    %cst_319 = arith.constant dense<0.000000e+00> : vector<8xf32>
    %550 = vector.multi_reduction <add>, %545, %cst_319 [1] : vector<8x32xf32> to vector<8xf32>
    %551 = vector.shape_cast %550 : vector<8xf32> to vector<8x1xf32>
    %cst_320 = arith.constant 3.200000e+01 : f32
    %552 = vector.broadcast %cst_320 : f32 to vector<8x1xf32>
    %553 = arith.divf %551, %552 : vector<8x1xf32>
    %554 = vector.broadcast %553 : vector<8x1xf32> to vector<8x32xf32>
    %555 = arith.subf %545, %554 : vector<8x32xf32>
    %556 = arith.mulf %555, %555 : vector<8x32xf32>
    %cst_321 = arith.constant dense<0.000000e+00> : vector<8xf32>
    %557 = vector.multi_reduction <add>, %556, %cst_321 [1] : vector<8x32xf32> to vector<8xf32>
    %558 = vector.shape_cast %557 : vector<8xf32> to vector<8x1xf32>
    %cst_322 = arith.constant 3.200000e+01 : f32
    %559 = vector.broadcast %cst_322 : f32 to vector<8x1xf32>
    %560 = arith.divf %558, %559 : vector<8x1xf32>
    %cst_323 = arith.constant 9.99999974E-6 : f32
    %561 = vector.broadcast %cst_323 : f32 to vector<8x1xf32>
    %562 = arith.addf %560, %561 : vector<8x1xf32>
    %563 = math.rsqrt %562 : vector<8x1xf32>
    %564 = vector.broadcast %563 : vector<8x1xf32> to vector<8x32xf32>
    %565 = arith.mulf %555, %564 : vector<8x32xf32>
    %566 = vector.broadcast %547 : vector<1x32xf32> to vector<8x32xf32>
    %567 = arith.mulf %565, %566 : vector<8x32xf32>
    %568 = vector.broadcast %549 : vector<1x32xf32> to vector<8x32xf32>
    %569 = arith.addf %567, %568 : vector<8x32xf32>
    %c0_324 = arith.constant 0 : index
    %c0_325 = arith.constant 0 : index
    %570 = vector.load %arg21[%c0_324, %c0_325] : memref<1x32xf32, #tpu.memory_space<vmem>>, vector<1x32xf32>
    %c0_326 = arith.constant 0 : index
    %c0_327 = arith.constant 0 : index
    %571 = vector.load %arg22[%c0_326, %c0_327] : memref<1x32xf32, #tpu.memory_space<vmem>>, vector<1x32xf32>
    %cst_328 = arith.constant dense<0.000000e+00> : vector<8xf32>
    %572 = vector.multi_reduction <add>, %569, %cst_328 [1] : vector<8x32xf32> to vector<8xf32>
    %573 = vector.shape_cast %572 : vector<8xf32> to vector<8x1xf32>
    %cst_329 = arith.constant 3.200000e+01 : f32
    %574 = vector.broadcast %cst_329 : f32 to vector<8x1xf32>
    %575 = arith.divf %573, %574 : vector<8x1xf32>
    %576 = vector.broadcast %575 : vector<8x1xf32> to vector<8x32xf32>
    %577 = arith.subf %569, %576 : vector<8x32xf32>
    %578 = arith.mulf %577, %577 : vector<8x32xf32>
    %cst_330 = arith.constant dense<0.000000e+00> : vector<8xf32>
    %579 = vector.multi_reduction <add>, %578, %cst_330 [1] : vector<8x32xf32> to vector<8xf32>
    %580 = vector.shape_cast %579 : vector<8xf32> to vector<8x1xf32>
    %cst_331 = arith.constant 3.200000e+01 : f32
    %581 = vector.broadcast %cst_331 : f32 to vector<8x1xf32>
    %582 = arith.divf %580, %581 : vector<8x1xf32>
    %cst_332 = arith.constant 9.99999974E-6 : f32
    %583 = vector.broadcast %cst_332 : f32 to vector<8x1xf32>
    %584 = arith.addf %582, %583 : vector<8x1xf32>
    %585 = math.rsqrt %584 : vector<8x1xf32>
    %586 = vector.broadcast %585 : vector<8x1xf32> to vector<8x32xf32>
    %587 = arith.mulf %577, %586 : vector<8x32xf32>
    %588 = vector.broadcast %570 : vector<1x32xf32> to vector<8x32xf32>
    %589 = arith.mulf %587, %588 : vector<8x32xf32>
    %590 = vector.broadcast %571 : vector<1x32xf32> to vector<8x32xf32>
    %591 = arith.addf %589, %590 : vector<8x32xf32>
    %cst_333 = arith.constant dense<0.000000e+00> : vector<32xf32>
    %592 = vector.multi_reduction <add>, %591, %cst_333 [0] : vector<8x32xf32> to vector<32xf32>
    %593 = vector.shape_cast %592 : vector<32xf32> to vector<1x32xf32>
    %cst_334 = arith.constant 8.000000e+00 : f32
    %594 = vector.broadcast %cst_334 : f32 to vector<1x32xf32>
    %595 = arith.divf %593, %594 : vector<1x32xf32>
    %c0_335 = arith.constant 0 : index
    %c0_336 = arith.constant 0 : index
    %596 = vector.load %arg23[%c0_335, %c0_336] : memref<32x128xf32, #tpu.memory_space<vmem>>, vector<32x128xf32>
    %597 = arith.truncf %595 : vector<1x32xf32> to vector<1x32xbf16>
    %598 = arith.truncf %596 : vector<32x128xf32> to vector<32x128xbf16>
    %cst_337 = arith.constant dense<0.000000e+00> : vector<1x128xf32>
    %599 = tpu.matmul %597, %598, %cst_337 {dimension_numbers = #tpu.dot_dimension_numbers<[1], [0], [0], [1], [0, 0, 1, 1], [], []>} : vector<1x32xbf16>, vector<32x128xbf16>, vector<1x128xf32> -> vector<1x128xf32>
    %c0_338 = arith.constant 0 : index
    %c0_339 = arith.constant 0 : index
    %600 = vector.load %arg24[%c0_338, %c0_339] : memref<1x128xf32, #tpu.memory_space<vmem>>, vector<1x128xf32>
    %601 = arith.addf %599, %600 : vector<1x128xf32>
    %c0_340 = arith.constant 0 : index
    %c0_341 = arith.constant 0 : index
    %c0_342 = arith.constant 0 : index
    %602 = vector.load %arg25[%c0_340, %c0_341, %c0_342] : memref<1x1x128xf32, #tpu.memory_space<vmem>>, vector<1x1x128xf32>
    %603 = vector.shape_cast %602 : vector<1x1x128xf32> to vector<1x128xf32>
    %604 = vector.shape_cast %601 : vector<1x128xf32> to vector<1x1x128xf32>
    tpu.vector_store %arg25[%c0_340, %c0_341, %c0_342], %604 {strides = array<i32>} : memref<1x1x128xf32, #tpu.memory_space<vmem>>, vector<1x1x128xf32>,
    return
  }
  func.func @transform_0(%arg0: i32) -> (i32, i32, i32) {
    %c0_i32 = arith.constant 0 : i32
    %c0_i32_0 = arith.constant 0 : i32
    %c0_i32_1 = arith.constant 0 : i32
    return %arg0, %c0_i32, %c0_i32_0 : i32, i32, i32
  }
  func.func @transform_1(%arg0: i32) -> (i32, i32, i32) {
    %c0_i32 = arith.constant 0 : i32
    %c0_i32_0 = arith.constant 0 : i32
    %c0_i32_1 = arith.constant 0 : i32
    %c0_i32_2 = arith.constant 0 : i32
    return %c0_i32, %c0_i32_0, %c0_i32_1 : i32, i32, i32
  }
  func.func @transform_2(%arg0: i32) -> (i32, i32) {
    %c0_i32 = arith.constant 0 : i32
    %c0_i32_0 = arith.constant 0 : i32
    %c0_i32_1 = arith.constant 0 : i32
    return %c0_i32, %c0_i32_0 : i32, i32
  }
  func.func @transform_3(%arg0: i32) -> (i32, i32) {
    %c0_i32 = arith.constant 0 : i32
    %c0_i32_0 = arith.constant 0 : i32
    %c0_i32_1 = arith.constant 0 : i32
    return %c0_i32, %c0_i32_0 : i32, i32
  }
  func.func @transform_4(%arg0: i32) -> (i32, i32, i32) {
    %c0_i32 = arith.constant 0 : i32
    %c0_i32_0 = arith.constant 0 : i32
    %c0_i32_1 = arith.constant 0 : i32
    %c0_i32_2 = arith.constant 0 : i32
    return %c0_i32, %c0_i32_0, %c0_i32_1 : i32, i32, i32
  }
  func.func @transform_5(%arg0: i32) -> (i32, i32, i32) {
    %c0_i32 = arith.constant 0 : i32
    %c0_i32_0 = arith.constant 0 : i32
    %c0_i32_1 = arith.constant 0 : i32
    %c0_i32_2 = arith.constant 0 : i32
    return %c0_i32, %c0_i32_0, %c0_i32_1 : i32, i32, i32
  }
  func.func @transform_6(%arg0: i32) -> (i32, i32, i32) {
    %c0_i32 = arith.constant 0 : i32
    %c0_i32_0 = arith.constant 0 : i32
    %c0_i32_1 = arith.constant 0 : i32
    %c0_i32_2 = arith.constant 0 : i32
    return %c0_i32, %c0_i32_0, %c0_i32_1 : i32, i32, i32
  }
  func.func @transform_7(%arg0: i32) -> (i32, i32, i32) {
    %c0_i32 = arith.constant 0 : i32
    %c0_i32_0 = arith.constant 0 : i32
    %c0_i32_1 = arith.constant 0 : i32
    %c0_i32_2 = arith.constant 0 : i32
    return %c0_i32, %c0_i32_0, %c0_i32_1 : i32, i32, i32
  }
  func.func @transform_8(%arg0: i32) -> (i32, i32, i32) {
    %c0_i32 = arith.constant 0 : i32
    %c0_i32_0 = arith.constant 0 : i32
    %c0_i32_1 = arith.constant 0 : i32
    %c0_i32_2 = arith.constant 0 : i32
    return %c0_i32, %c0_i32_0, %c0_i32_1 : i32, i32, i32
  }
  func.func @transform_9(%arg0: i32) -> (i32, i32, i32) {
    %c0_i32 = arith.constant 0 : i32
    %c0_i32_0 = arith.constant 0 : i32
    %c0_i32_1 = arith.constant 0 : i32
    %c0_i32_2 = arith.constant 0 : i32
    return %c0_i32, %c0_i32_0, %c0_i32_1 : i32, i32, i32
  }
  func.func @transform_10(%arg0: i32) -> (i32, i32, i32) {
    %c0_i32 = arith.constant 0 : i32
    %c0_i32_0 = arith.constant 0 : i32
    %c0_i32_1 = arith.constant 0 : i32
    %c0_i32_2 = arith.constant 0 : i32
    return %c0_i32, %c0_i32_0, %c0_i32_1 : i32, i32, i32
  }
  func.func @transform_11(%arg0: i32) -> (i32, i32, i32) {
    %c0_i32 = arith.constant 0 : i32
    %c0_i32_0 = arith.constant 0 : i32
    %c0_i32_1 = arith.constant 0 : i32
    %c0_i32_2 = arith.constant 0 : i32
    return %c0_i32, %c0_i32_0, %c0_i32_1 : i32, i32, i32
  }
  func.func @transform_12(%arg0: i32) -> (i32, i32, i32) {
    %c0_i32 = arith.constant 0 : i32
    %c0_i32_0 = arith.constant 0 : i32
    %c0_i32_1 = arith.constant 0 : i32
    %c0_i32_2 = arith.constant 0 : i32
    return %c0_i32, %c0_i32_0, %c0_i32_1 : i32, i32, i32
  }
  func.func @transform_13(%arg0: i32) -> (i32, i32, i32) {
    %c0_i32 = arith.constant 0 : i32
    %c0_i32_0 = arith.constant 0 : i32
    %c0_i32_1 = arith.constant 0 : i32
    %c0_i32_2 = arith.constant 0 : i32
    return %c0_i32, %c0_i32_0, %c0_i32_1 : i32, i32, i32
  }
  func.func @transform_14(%arg0: i32) -> (i32, i32, i32) {
    %c0_i32 = arith.constant 0 : i32
    %c0_i32_0 = arith.constant 0 : i32
    %c0_i32_1 = arith.constant 0 : i32
    %c0_i32_2 = arith.constant 0 : i32
    return %c0_i32, %c0_i32_0, %c0_i32_1 : i32, i32, i32
  }
  func.func @transform_15(%arg0: i32) -> (i32, i32, i32) {
    %c0_i32 = arith.constant 0 : i32
    %c0_i32_0 = arith.constant 0 : i32
    %c0_i32_1 = arith.constant 0 : i32
    %c0_i32_2 = arith.constant 0 : i32
    return %c0_i32, %c0_i32_0, %c0_i32_1 : i32, i32, i32
  }
  func.func @transform_16(%arg0: i32) -> (i32, i32, i32) {
    %c0_i32 = arith.constant 0 : i32
    %c0_i32_0 = arith.constant 0 : i32
    %c0_i32_1 = arith.constant 0 : i32
    %c0_i32_2 = arith.constant 0 : i32
    return %c0_i32, %c0_i32_0, %c0_i32_1 : i32, i32, i32
  }
  func.func @transform_17(%arg0: i32) -> (i32, i32, i32) {
    %c0_i32 = arith.constant 0 : i32
    %c0_i32_0 = arith.constant 0 : i32
    %c0_i32_1 = arith.constant 0 : i32
    %c0_i32_2 = arith.constant 0 : i32
    return %c0_i32, %c0_i32_0, %c0_i32_1 : i32, i32, i32
  }
  func.func @transform_18(%arg0: i32) -> (i32, i32, i32) {
    %c0_i32 = arith.constant 0 : i32
    %c0_i32_0 = arith.constant 0 : i32
    %c0_i32_1 = arith.constant 0 : i32
    %c0_i32_2 = arith.constant 0 : i32
    return %c0_i32, %c0_i32_0, %c0_i32_1 : i32, i32, i32
  }
  func.func @transform_19(%arg0: i32) -> (i32, i32, i32) {
    %c0_i32 = arith.constant 0 : i32
    %c0_i32_0 = arith.constant 0 : i32
    %c0_i32_1 = arith.constant 0 : i32
    %c0_i32_2 = arith.constant 0 : i32
    return %c0_i32, %c0_i32_0, %c0_i32_1 : i32, i32, i32
  }
  func.func @transform_20(%arg0: i32) -> (i32, i32) {
    %c0_i32 = arith.constant 0 : i32
    %c0_i32_0 = arith.constant 0 : i32
    %c0_i32_1 = arith.constant 0 : i32
    return %c0_i32, %c0_i32_0 : i32, i32
  }
  func.func @transform_21(%arg0: i32) -> (i32, i32) {
    %c0_i32 = arith.constant 0 : i32
    %c0_i32_0 = arith.constant 0 : i32
    %c0_i32_1 = arith.constant 0 : i32
    return %c0_i32, %c0_i32_0 : i32, i32
  }
  func.func @transform_22(%arg0: i32) -> (i32, i32) {
    %c0_i32 = arith.constant 0 : i32
    %c0_i32_0 = arith.constant 0 : i32
    %c0_i32_1 = arith.constant 0 : i32
    return %c0_i32, %c0_i32_0 : i32, i32
  }
  func.func @transform_23(%arg0: i32) -> (i32, i32) {
    %c0_i32 = arith.constant 0 : i32
    %c0_i32_0 = arith.constant 0 : i32
    %c0_i32_1 = arith.constant 0 : i32
    return %c0_i32, %c0_i32_0 : i32, i32
  }
  func.func @transform_24(%arg0: i32) -> (i32, i32, i32) {
    %c0_i32 = arith.constant 0 : i32
    %c0_i32_0 = arith.constant 0 : i32
    %c0_i32_1 = arith.constant 0 : i32
    return %arg0, %c0_i32, %c0_i32_0 : i32, i32, i32
  }
}

</mosaic_0001>

<bundles_post_ra>
// kernel: vit_forward.1
= control target key start
LH: loop header
LB: loop body
LE: loop exit
PB: predicated region body
PF: predicated region fallthrough
CT: control target
= control target key end

     0   :  { %s5755_s0 = inlined_call_operand.vmem [shape: f32[2,8,8], index: 0, kind: input, shape index: {}]   ;;  %s5756_s1 = inlined_call_operand.vmem [shape: f32[1,8,32], index: 1, kind: input, shape index: {}]   ;;  %s5757_s2 = inlined_call_operand.vmem [shape: f32[8,32], index: 2, kind: input, shape index: {}]   ;;  %s5758_s3 = inlined_call_operand.vmem [shape: f32[1,32], index: 3, kind: input, shape index: {}]   ;;  %s5759_s4 = inlined_call_operand.vmem [shape: f32[8,32,8], index: 4, kind: input, shape index: {}]   ;;  %s5760_s5 = inlined_call_operand.vmem [shape: f32[8,32,8], index: 5, kind: input, shape index: {}]   ;;  %s5761_s6 = inlined_call_operand.vmem [shape: f32[8,32,8], index: 6, kind: input, shape index: {}]   ;;  %s5762_s7 = inlined_call_operand.vmem [shape: f32[8,1,8], index: 7, kind: input, shape index: {}]   ;;  %s5763_s8 = inlined_call_operand.vmem [shape: f32[8,1,8], index: 8, kind: input, shape index: {}]   ;;  %s5764_s9 = inlined_call_operand.vmem [shape: f32[8,1,8], index: 9, kind: input, shape index: {}]   ;;  %s5765_s10 = inlined_call_operand.vmem [shape: f32[8,8,32], index: 10, kind: input, shape index: {}]   ;;  %s5766_s11 = inlined_call_operand.vmem [shape: f32[2,1,32], index: 11, kind: input, shape index: {}]   ;;  %s5767_s12 = inlined_call_operand.vmem [shape: f32[2,32,64], index: 12, kind: input, shape index: {}]   ;;  %s5768_s13 = inlined_call_operand.vmem [shape: f32[2,1,64], index: 13, kind: input, shape index: {}]   ;;  %s5769_s14 = inlined_call_operand.vmem [shape: f32[2,64,32], index: 14, kind: input, shape index: {}]   ;;  %s5770_s15 = inlined_call_operand.vmem [shape: f32[2,1,32], index: 15, kind: input, shape index: {}]   ;;  %s5771_s16 = inlined_call_operand.vmem [shape: f32[2,1,32], index: 16, kind: input, shape index: {}]   ;;  %s5772_s17 = inlined_call_operand.vmem [shape: f32[2,1,32], index: 17, kind: input, shape index: {}]   ;;  %s5773_s18 = inlined_call_operand.vmem [shape: f32[2,1,32], index: 18, kind: input, shape index: {}]   ;;  %s5774_s19 = inlined_call_operand.vmem [shape: f32[2,1,32], index: 19, kind: input, shape index: {}]   ;;  %s5775_s20 = inlined_call_operand.vmem [shape: f32[1,32], index: 20, kind: input, shape index: {}]   ;;  %s5776_s21 = inlined_call_operand.vmem [shape: f32[1,32], index: 21, kind: input, shape index: {}]   ;;  %s5777_s22 = inlined_call_operand.vmem [shape: f32[32,128], index: 22, kind: input, shape index: {}]   ;;  %s5778_s23 = inlined_call_operand.vmem [shape: f32[1,128], index: 23, kind: input, shape index: {}]   ;;  %s5779_s24 = inlined_call_operand.vmem [shape: f32[2,1,128], index: 24, kind: output, shape index: {}]  }
   0x1   :  { %5786 = sst [smem:[#allocation3_spill]] %s5755_s0 }
   0x2   :  { %5787 = sst [smem:[#allocation4_spill]] %s5756_s1 }
   0x3   :  { %5788 = sst [smem:[#allocation5_spill]] %s5757_s2 }
   0x4   :  { %5789 = sst [smem:[#allocation6_spill]] %s5758_s3 }
   0x5   :  { %5790 = sst [smem:[#allocation7_spill]] %s5759_s4 }
   0x6   :  { %5791 = sst [smem:[#allocation8_spill]] %s5760_s5  ;;  %s4861_s5 = smov 0  }
   0x7   :  { %5792 = sst [smem:[#allocation9_spill]] %s5761_s6 }
   0x8   :  { %5793 = sst [smem:[#allocation10_spill]] %s5762_s7 }
   0x9   :  { %5794 = sst [smem:[#allocation11_spill]] %s5763_s8 }
   0xa   :  { %5795 = sst [smem:[#allocation12_spill]] %s5779_s24 }
   0xb LB: > { %5796 = sst [smem:[#allocation2_spill]] %s4732_s5  ;;  %s3909_s26 = sadd.s32 4294967295, %s4732_s5   ;;  %s4732_s5 = sphi %s4861_s5, %s34_s5  }
   0xc   : > { %p3913_p0 = scmp.ge.s32.totalorder %s4732_s5, 1  ;;  %p661_p1 = scmp.lt.s32.totalorder %s4732_s5, 3 }
   0xe   : > { %p662_p2 = pnand %p3913_p0, %p661_p1 }
   0xf   : > { %s5797_s6 = sld [smem:[#allocation5_spill]] (!%p662_p2)  ;;  %vm747_vm0 = vcmask (!%p662_p2), 1043456   ;;  %p724_p3 = scmp.lt.s32.totalorder (!%p662_p2), %s3909_s26, 1  ;;  %v4734_v1 = vmov (!%p662_p2), 0.0   ;;  %vm4735_vm1 = vmmov (!%p662_p2), 0   ;;  %vm743_vm2 = vcmask (!%p662_p2), 64512  }
  0x10   : > { %665 = sbr.rel (%p662_p2) target bundleno = 10710 (0x29d6), region = 116  ;;  %4284 = vmatprep.subr.bf16.mxu0 (!%p662_p2), %v4734_v1  ;;  %4286 = vmatprep.mubr.msk.bf16.mxu0 (!%p662_p2), %vm4735_vm1, %v4734_v1  ;;  %s5798_s7 = sld [smem:[#allocation3_spill]] (!%p662_p2)  ;;  %vm807_vm3 = vcmask (!%p662_p2), 261120   ;;  %v3921_v46 = vld [vmem:[%s5764_s9] ss:$0 sm:$0xff] (!%p662_p2)  ;;  %vm2202_vm4 = vcmask (!%p662_p2), 523264  }
  0x11   : > { %4290 = vmatprep.subr.bf16.mxu1 (!%p662_p2), %v4734_v1  ;;  %4294 = vmatprep.mubr.msk.bf16.mxu1 (!%p662_p2), %vm4735_vm1, %v4734_v1  ;;  %s5799_s8 = sld [smem:[#allocation7_spill]] (!%p662_p2)  ;;  %s5801_s29 = sld [smem:[#allocation6_spill]] (!%p662_p2) }
  0x12   : > { %s5803_s4 = sld [smem:[#allocation9_spill]] (!%p662_p2)  ;;  %s5804_s3 = sld [smem:[#allocation11_spill]] (!%p662_p2) }
  0x13   : > { %s5805_s27 = sld [smem:[#allocation10_spill]] (!%p662_p2)  ;;  %s5806_s5 = sld [smem:[#allocation12_spill]] (!%p662_p2) }
  0x15   : > { %v733_v0 = vld [vmem:[%s5797_s6] sm:$0xff] (!%p662_p2)  ;;  %s5800_s6 = sld [smem:[#allocation8_spill]] (!%p662_p2) }
  0x16   : > { %v735_v2 = vpack.c.bf16 (!%p662_p2), %v733_v0, %v733_v0 }
  0x17   : > { %s5809_s26 = smov (!%p724_p3, %s3909_s26), 1  ;;  %v793_v6 = vld [vmem:[%s5799_s8] sm:$0xff]  ;;  %v794_v7 = vld [vmem:[%s5799_s8 + $0x8] sm:$0xff]  ;;  %v795_v12 = vld [vmem:[%s5799_s8 + $0x10] sm:$0xff] }
  0x18   : > { %v749_v3 = vsel %vm747_vm0, %v735_v2, 0  ;;  %s3914_s2 = sshll.u32 %s5809_s26, 3  ;;  %v798_v9 = vpack.c.bf16 %v794_v7, %v793_v6  ;;  %v796_v13 = vld [vmem:[%s5799_s8 + $0x18] sm:$0xff]  ;;  %v3915_v18 = vld [vmem:[%s5801_s29] ss:$0 sm:$0xff]  ;;  %v905_v24 = vld [vmem:[%s5803_s4 + $0x8] sm:$0xff] }
  0x19   : > { %4285 = vmatpush3.bf16.msra.mxu0 %v749_v3  ;;  %s727_s30 = scalar_lea.vmem %s5798_s7, %s3914_s2  ;;  %v799_v14 = vpack.c.bf16 %v796_v13, %v795_v12  ;;  %v904_v23 = vld [vmem:[%s5803_s4] sm:$0xff]  ;;  %v906_v30 = vld [vmem:[%s5803_s4 + $0x10] sm:$0xff]  ;;  %v907_v31 = vld [vmem:[%s5803_s4 + $0x18] sm:$0xff] }
  0x1a   : > { %4298 = vmatprep.subr.bf16.mxu0 %v4734_v1  ;;  %v732_v4 = vld [vmem:[%s727_s30] sm:$0xff]  ;;  %4291 = vmatpush3.bf16.msra.mxu1 %v798_v9  ;;  %s5802_s30 = sld [smem:[#allocation4_spill]]  ;;  %v908_v28 = vpack.c.bf16 %v905_v24, %v904_v23  ;;  %v909_v32 = vpack.c.bf16 %v907_v31, %v906_v30  ;;  %v3926_v49 = vld [vmem:[%s5799_s8 + $0x28] sm:$0xff]  ;;  %v3927_v58 = vld [vmem:[%s5799_s8 + $0x30] sm:$0xff] }
  0x1b   : > { %v734_v5 = vpack.c.bf16 %v732_v4, %v732_v4  ;;  %v851_v8 = vld [vmem:[%s5800_s6] sm:$0xff]  ;;  %v852_v10 = vld [vmem:[%s5800_s6 + $0x8] sm:$0xff]  ;;  %4292 = vmatprep.subr.bf16.mxu1 %v4734_v1  ;;  %v853_v15 = vld [vmem:[%s5800_s6 + $0x10] sm:$0xff] }
  0x1c   : > { %v855_v11 = vpack.c.bf16 %v852_v10, %v851_v8  ;;  %v854_v16 = vld [vmem:[%s5800_s6 + $0x18] sm:$0xff]  ;;  %v3919_v33 = vld [vmem:[%s5804_s3] ss:$0 sm:$0xff]  ;;  %v3940_v63 = vld [vmem:[%s5803_s4 + $0x28] sm:$0xff] }
  0x1d   : > { %4287 = vmatmul.mubr.msk.bf16.vlgmr.msra.gmra.mrb[0].mxu0 %vm743_vm2, %v734_v5  ;;  %v856_v17 = vpack.c.bf16 %v854_v16, %v853_v15  ;;  %v3917_v44 = vld [vmem:[%s5805_s27] ss:$0 sm:$0xff]  ;;  %v3928_v59 = vld [vmem:[%s5799_s8 + $0x38] sm:$0xff]  ;;  %v3941_v2 = vld [vmem:[%s5803_s4 + $0x30] sm:$0xff] }
  0x1e   : > { %4302 = vmatprep.mubr.msk.bf16.mxu0 %vm4735_vm1, %v4734_v1  ;;  %4299 = vmatpush3.bf16.msra.mxu0 %v855_v11  ;;  %v3925_v48 = vld [vmem:[%s5799_s8 + $0x20] sm:$0xff]  ;;  %v1074_v61 = vpack.c.bf16 %v3928_v59, %v3927_v58  ;;  %v3942_v3 = vld [vmem:[%s5803_s4 + $0x38] sm:$0xff] }
  0x1f   : > { %4300 = vmatprep.subr.bf16.mxu0 %v4734_v1  ;;  %4293 = vmatpush3.bf16.msra.mxu1 %v799_v14  ;;  %v1073_v54 = vpack.c.bf16 %v3926_v49, %v3925_v48  ;;  %v3939_v62 = vld [vmem:[%s5803_s4 + $0x20] sm:$0xff]  ;;  %v1184_v4 = vpack.c.bf16 %v3942_v3, %v3941_v2  ;;  %v3948_v3 = vld [vmem:[%s5765_s10 + $0x8] sm:$0xff] }
  0x20   : > { %4306 = vmatprep.subr.bf16.mxu1 %v4734_v1  ;;  %v791_v20 = vld [vmem:[%s5802_s30] sm:$0xff]  ;;  %v1183_v0 = vpack.c.bf16 %v3940_v63, %v3939_v62  ;;  %s730_s30 = scalar_lea.vmem %s5806_s5, %s5809_s26 }
  0x21   : > { %v3944_v15 = vld [vmem:[%s5764_s9 + $0x1] ss:$0 sm:$0xff] }
  0x22   : > { %4301 = vmatpush3.bf16.msra.mxu0 %v856_v17  ;;  %v3932_v31 = vld [vmem:[%s5800_s6 + $0x20] sm:$0xff] }
  0x23   : > { %4314 = vmatprep.subr.bf16.mxu0 %v4734_v1 }
  0xf0   : > { %v785_v19 = vpop.f32.mrb[0].mxu0 }
  0xf1   : > { %v786_v21 = vadd.f32 %v3915_v18, %v785_v19  ;;  %v4288_v22 = vpop.f32.mrb[1].mxu0 }
  0xf2   : > { %v788_v25 = vpop.f32.mrb[2].mxu0 }
  0xf3   : > { %v4929_v26 = vadd.f32 %v791_v20, %v786_v21  ;;  %v4289_v27 = vpop.f32.mrb[3].mxu0 }
  0xf5   : > { %v4933_v29 = vpack.c.bf16 %v4929_v26, %v4929_v26 }
  0xf7   : > { %4295 = vmatmul.mubr.msk.bf16.vlgmr.msra.gmra.mrb[0].mxu1 %vm807_vm3, %v4933_v29  ;;  %4303 = vmatmul.mubr.msk.bf16.vlgmr.msra.gmra.mrb[4].mxu0 %vm807_vm3, %v4933_v29 }
  0xf8   : > { %4307 = vmatpush3.bf16.msra.mxu1 %v908_v28  ;;  %4310 = vmatprep.mubr.msk.bf16.mxu1 %vm4735_vm1, %v4734_v1 }
  0xf9   : > { %4308 = vmatprep.subr.bf16.mxu1 %v4734_v1  ;;  %4316 = vmatprep.mubr.msk.bf16.mxu0 %vm4735_vm1, %v4734_v1 }
  0xfc   : > { %4309 = vmatpush3.bf16.msra.mxu1 %v909_v32  ;;  %v3933_v32 = vld [vmem:[%s5800_s6 + $0x28] sm:$0xff] }
  0xfd   : > { %4320 = vmatprep.subr.bf16.mxu1 %v4734_v1 }
  0xff   : > { %4311 = vmatmul.mubr.msk.bf16.vlgmr.msra.gmra.mrb[4].mxu1 %vm807_vm3, %v4933_v29 }
 0x100   : > { %4322 = vmatprep.mubr.msk.bf16.mxu1 %vm4735_vm1, %v4734_v1 }
 0x1ca   : > { %v845_v34 = vpop.f32.mrb[0].mxu1  ;;  %v898_v35 = vpop.f32.mrb[4].mxu0 }
 0x1cb   : > { %v899_v36 = vadd.f32 %v3919_v33, %v898_v35  ;;  %v4296_v37 = vpop.f32.mrb[1].mxu1  ;;  %v4304_v38 = vpop.f32.mrb[5].mxu0  ;;  %v846_v47 = vadd.f32 %v3917_v44, %v845_v34  ;;  %v1128_v35 = vpack.c.bf16 %v3933_v32, %v3932_v31  ;;  %v3937_v44 = vld [vmem:[%s5804_s3 + $0x1] ss:$0 sm:$0xff] }
 0x1cc   : > { %v848_v39 = vpop.f32.mrb[2].mxu1  ;;  %v901_v40 = vpop.f32.mrb[6].mxu0  ;;  %v3934_v37 = vld [vmem:[%s5800_s6 + $0x30] sm:$0xff]  ;;  %v3935_v38 = vld [vmem:[%s5800_s6 + $0x38] sm:$0xff] }
 0x1cd   : > { %v958_v41 = vpack.c.bf16 %v899_v36, %v899_v36  ;;  %v4297_v42 = vpop.f32.mrb[3].mxu1  ;;  %v4305_v43 = vpop.f32.mrb[7].mxu0  ;;  %v957_v55 = vpack.c.bf16 %v846_v47, %v846_v47  ;;  %v1129_v39 = vpack.c.bf16 %v3935_v38, %v3934_v37  ;;  %v3967_v38 = vld [vmem:[%s5803_s4 + $0x50] sm:$0xff] }
 0x1cf   : > { %v963_v45 = vsel %vm743_vm2, %v958_v41, 0 }
 0x1d0   : > { %4315 = vmatpush3.bf16.xpose.msra.mxu0 %v963_v45 }
 0x1d1   : > { %4326 = vmatprep.subr.bf16.mxu0 %v4734_v1 }
 0x1d2   : > { %v951_v50 = vpop.f32.mrb[4].mxu1 }
 0x1d3   : > { %v952_v51 = vadd.f32 %v3921_v46, %v951_v50  ;;  %v4312_v52 = vpop.f32.mrb[5].mxu1 }
 0x1d4   : > { %v954_v53 = vpop.f32.mrb[6].mxu1 }
 0x1d5   : > { %v1018_v56 = vpack.c.bf16 %v952_v51, %v952_v51  ;;  %v4313_v57 = vpop.f32.mrb[7].mxu1  ;;  %v3930_v51 = vld [vmem:[%s5805_s27 + $0x1] ss:$0 sm:$0xff] }
 0x1d7   : > { %v1023_v60 = vsel %vm747_vm0, %v1018_v56, 0  ;;  %4317 = vmatmul.mubr.msk.bf16.vlgmr.msra.gmra.mrb[8].mxu0 %vm743_vm2, %v957_v55 }
 0x1d8   : > { %4321 = vmatpush3.bf16.msra.mxu1 %v1023_v60  ;;  %4327 = vmatpush3.bf16.msra.mxu0 %v1073_v54 }
 0x1d9   : > { %4328 = vmatprep.subr.bf16.mxu0 %v4734_v1  ;;  %4330 = vmatprep.mubr.msk.bf16.mxu0 %vm4735_vm1, %v4734_v1 }
 0x1da   : > { %4334 = vmatprep.subr.bf16.mxu1 %v4734_v1 }
 0x1dc   : > { %4329 = vmatpush3.bf16.msra.mxu0 %v1074_v61 }
 0x1dd   : > { %4342 = vmatprep.subr.bf16.mxu0 %v4734_v1 }
 0x1df   : > { %4331 = vmatmul.mubr.msk.bf16.vlgmr.msra.gmra.mrb[12].mxu0 %vm807_vm3, %v4933_v29 }
 0x1e0   : > { %4343 = vmatpush3.bf16.msra.mxu0 %v1183_v0  ;;  %4346 = vmatprep.mubr.msk.bf16.mxu0 %vm4735_vm1, %v4734_v1 }
 0x1e1   : > { %4344 = vmatprep.subr.bf16.mxu0 %v4734_v1 }
 0x1e4   : > { %4345 = vmatpush3.bf16.msra.mxu0 %v1184_v4  ;;  %v1344_v4 = vpack.c.bf16 %v3948_v3, %v3948_v3 }
 0x1e5   : > { %4356 = vmatprep.subr.bf16.mxu0 %v4734_v1 }
 0x1e7   : > { %4347 = vmatmul.mubr.msk.bf16.vlgmr.msra.gmra.mrb[16].mxu0 %vm807_vm3, %v4933_v29 }
 0x1e8   : > { %4358 = vmatprep.mubr.msk.bf16.mxu0 %vm4735_vm1, %v4734_v1 }
 0x2aa   : > { %v999_v5 = vpop.f32.mrb[8].mxu0 }
 0x2ab   : > { %v1005_v6 = vmul.f32 0.35355338, %v999_v5  ;;  %v4318_v7 = vpop.f32.mrb[9].mxu0  ;;  %v1349_v5 = vsel %vm747_vm0, %v1344_v4, 0 }
 0x2ac   : > { %v1002_v8 = vpop.f32.mrb[10].mxu0  ;;  %v1065_v7 = vld [vmem:[%s5765_s10] sm:$0xff] }
 0x2ad   : > { %v4319_v9 = vpop.f32.mrb[11].mxu0  ;;  %v1006_v10 = vsel %vm743_vm2, %v1005_v6, -inf  ;;  %v1067_v8 = vpack.c.bf16 %v1065_v7, %v1065_v7 }
 0x2ae   : > { %1007 = vmax.xlane.f32.xlu0 %v1006_v10 }
 0x2b2   : > { %v1117_v11 = vpop.f32.mrb[12].mxu0 }
 0x2b3   : > { %v4332_v12 = vpop.f32.mrb[13].mxu0  ;;  %v1118_v53 = vadd.f32 %v3930_v51, %v1117_v11 }
 0x2b4   : > { %v1120_v13 = vpop.f32.mrb[14].mxu0  ;;  %v1395_v12 = vsel %vm747_vm0, %v1067_v8, 0 }
 0x2b5   : > { %v4333_v14 = vpop.f32.mrb[15].mxu0  ;;  %v1233_v54 = vpack.c.bf16 %v1118_v53, %v1118_v53  ;;  %v3958_v13 = vld [vmem:[%s5800_s6 + $0x40] sm:$0xff] }
 0x2b6   : > { %v3959_v14 = vld [vmem:[%s5800_s6 + $0x48] sm:$0xff] }
 0x2ba   : > { %v1227_v16 = vpop.f32.mrb[16].mxu0 }
 0x2bb   : > { %v1228_v17 = vadd.f32 %v3944_v15, %v1227_v16  ;;  %v4348_v18 = vpop.f32.mrb[17].mxu0  ;;  %v1497_v15 = vpack.c.bf16 %v3959_v14, %v3958_v13 }
 0x2bc   : > { %v1230_v19 = vpop.f32.mrb[18].mxu0  ;;  %v3961_v18 = vld [vmem:[%s5800_s6 + $0x58] sm:$0xff] }
 0x2bd   : > { %v1294_v20 = vpack.c.bf16 %v1228_v17, %v1228_v17  ;;  %v4349_v21 = vpop.f32.mrb[19].mxu0  ;;  %v3960_v17 = vld [vmem:[%s5800_s6 + $0x50] sm:$0xff] }
 0x2be   : > { %v1498_v19 = vpack.c.bf16 %v3961_v18, %v3960_v17  ;;  %v3952_v21 = vld [vmem:[%s5799_s8 + $0x48] sm:$0xff] }
 0x2bf   : > { %v1299_v22 = vsel %vm747_vm0, %v1294_v20, 0  ;;  %v3951_v20 = vld [vmem:[%s5799_s8 + $0x40] sm:$0xff] }
 0x2c0   : > { %4357 = vmatpush3.bf16.msra.mxu0 %v1299_v22 }
 0x2c1   : > { %4368 = vmatprep.subr.bf16.mxu0 %v4734_v1 }
 0x33b   : > { %v1008_v23 = vpop.xlane.xlu0 %1007 }
 0x33c   : > { %v1009_v24 = vsub.f32 %v1005_v6, %v1008_v23  ;;  %v1442_v23 = vpack.c.bf16 %v3952_v21, %v3951_v20 }
 0x33e   : > { %v1010_v25 = vmul.f32 1.442695, %v1009_v24 }
 0x340   : > { %4684 = vpow2.f32 %v1010_v25 }
 0x34a   : > { %v4685_v27 = vpop.eup %4684 }
 0x34b   : > { %v1012_v28 = vsel %vm743_vm2, %v4685_v27, 0.0 }
 0x34c   : > { %1013 = vadd.xlane.f32.xlu0 %v1012_v28  ;;  %v3954_v28 = vld [vmem:[%s5799_s8 + $0x58] sm:$0xff] }
 0x3d9   : > { %v1014_v30 = vpop.xlane.xlu0 %1013 }
 0x3da   : > { %4686 = vrcp.f32 %v1014_v30 }
 0x3e4   : > { %v4687_v33 = vpop.eup %4686 }
 0x3e5   : > { %v1016_v34 = vmul.f32 %v4687_v33, %v4685_v27  ;;  %v3953_v27 = vld [vmem:[%s5799_s8 + $0x50] sm:$0xff]  ;;  %v3965_v33 = vld [vmem:[%s5803_s4 + $0x40] sm:$0xff] }
 0x3e6   : > { %v1443_v32 = vpack.c.bf16 %v3954_v28, %v3953_v27 }
 0x3e7   : > { %v1017_v36 = vpack.c.bf16 %v1016_v34, %v1016_v34  ;;  %v3966_v34 = vld [vmem:[%s5803_s4 + $0x48] sm:$0xff] }
 0x3e9   : > { %4323 = vmatmul.mubr.msk.bf16.vlgmr.msra.gmra.mrb[8].mxu1 %vm743_vm2, %v1017_v36  ;;  %v1552_v36 = vpack.c.bf16 %v3966_v34, %v3965_v33  ;;  %v3990_v34 = vld [vmem:[%s5803_s4 + $0x60] sm:$0xff] }
 0x3ea   : > { %4335 = vmatpush3.bf16.msra.mxu1 %v1128_v35  ;;  %4338 = vmatprep.mubr.msk.bf16.mxu1 %vm4735_vm1, %v4734_v1 }
 0x3eb   : > { %4336 = vmatprep.subr.bf16.mxu1 %v4734_v1 }
 0x3ee   : > { %4337 = vmatpush3.bf16.msra.mxu1 %v1129_v39  ;;  %v3968_v39 = vld [vmem:[%s5803_s4 + $0x58] sm:$0xff] }
 0x3ef   : > { %4350 = vmatprep.subr.bf16.mxu1 %v4734_v1 }
 0x3f1   : > { %4339 = vmatmul.mubr.msk.bf16.vlgmr.msra.gmra.mrb[12].mxu1 %vm807_vm3, %v4933_v29 }
 0x3f2   : > { %4352 = vmatprep.mubr.msk.bf16.mxu1 %vm4735_vm1, %v4734_v1 }
 0x4bc   : > { %v1059_v40 = vpop.f32.mrb[8].mxu1 }
 0x4bd   : > { %v4324_v41 = vpop.f32.mrb[9].mxu1  ;;  %v1066_v16 = vpack.c.bf16 %v1059_v40, %v1059_v40 }
 0x4be   : > { %v1062_v42 = vpop.f32.mrb[10].mxu1 }
 0x4bf   : > { %v4325_v43 = vpop.f32.mrb[11].mxu1  ;;  %v1553_v42 = vpack.c.bf16 %v3968_v39, %v3967_v38  ;;  %v3993_v38 = vld [vmem:[%s5803_s4 + $0x78] sm:$0xff] }
 0x4c0   : > { %v3963_v43 = vld [vmem:[%s5804_s3 + $0x2] ss:$0 sm:$0xff] }
 0x4c4   : > { %v1172_v45 = vpop.f32.mrb[12].mxu1 }
 0x4c5   : > { %v1173_v46 = vadd.f32 %v3937_v44, %v1172_v45  ;;  %v4340_v47 = vpop.f32.mrb[13].mxu1 }
 0x4c6   : > { %v1175_v48 = vpop.f32.mrb[14].mxu1 }
 0x4c7   : > { %v1234_v49 = vpack.c.bf16 %v1173_v46, %v1173_v46  ;;  %v4341_v50 = vpop.f32.mrb[15].mxu1 }
 0x4c9   : > { %v1239_v52 = vsel %vm743_vm2, %v1234_v49, 0 }
 0x4ca   : > { %4351 = vmatpush3.bf16.xpose.msra.mxu1 %v1239_v52 }
 0x4cb   : > { %4362 = vmatprep.subr.bf16.mxu1 %v4734_v1 }
 0x4d1   : > { %4353 = vmatmul.mubr.msk.bf16.vlgmr.msra.gmra.mrb[16].mxu1 %vm743_vm2, %v1233_v54 }
 0x4d2   : > { %4364 = vmatprep.mubr.msk.bf16.mxu1 %vm4735_vm1, %v4734_v1  ;;  %4363 = vmatpush3.bf16.msra.mxu1 %v1349_v5 }
 0x4d3   : > { %4374 = vmatprep.subr.bf16.mxu1 %v4734_v1 }
 0x5a4   : > { %v1275_v55 = vpop.f32.mrb[16].mxu1 }
 0x5a5   : > { %v1281_v56 = vmul.f32 0.35355338, %v1275_v55  ;;  %v4354_v57 = vpop.f32.mrb[17].mxu1 }
 0x5a6   : > { %v1278_v58 = vpop.f32.mrb[18].mxu1 }
 0x5a7   : > { %v4355_v59 = vpop.f32.mrb[19].mxu1  ;;  %v1282_v60 = vsel %vm743_vm2, %v1281_v56, -inf }
 0x5a8   : > { %1283 = vmax.xlane.f32.xlu1 %v1282_v60 }
 0x635   : > { %v1284_v61 = vpop.xlane.xlu1 %1283 }
 0x636   : > { %v1285_v62 = vsub.f32 %v1281_v56, %v1284_v61  ;;  %v3956_v56 = vld [vmem:[%s5805_s27 + $0x2] ss:$0 sm:$0xff] }
 0x638   : > { %v1286_v63 = vmul.f32 1.442695, %v1285_v62 }
 0x63a   : > { %4688 = vpow2.f32 %v1286_v63  ;;  %v3970_v63 = vld [vmem:[%s5764_s9 + $0x2] ss:$0 sm:$0xff] }
 0x644   : > { %v4689_v0 = vpop.eup %4688 }
 0x645   : > { %v1288_v2 = vsel %vm743_vm2, %v4689_v0, 0.0 }
 0x646   : > { %1289 = vadd.xlane.f32.xlu1 %v1288_v2 }
 0x6d3   : > { %v1290_v6 = vpop.xlane.xlu1 %1289 }
 0x6d4   : > { %4690 = vrcp.f32 %v1290_v6 }
 0x6de   : > { %v4691_v9 = vpop.eup %4690 }
 0x6df   : > { %v1292_v10 = vmul.f32 %v4691_v9, %v4689_v0 }
 0x6e1   : > { %v1293_v11 = vpack.c.bf16 %v1292_v10, %v1292_v10 }
 0x6e3   : > { %4359 = vmatmul.mubr.msk.bf16.vlgmr.msra.gmra.mrb[20].mxu0 %vm743_vm2, %v1293_v11 }
 0x6e4   : > { %4369 = vmatpush3.bf16.msra.mxu0 %v1395_v12  ;;  %4370 = vmatprep.mubr.msk.bf16.mxu0 %vm4735_vm1, %v4734_v1 }
 0x6e5   : > { %4382 = vmatprep.subr.bf16.mxu0 %v4734_v1 }
 0x6eb   : > { %4371 = vmatmul.mubr.msk.bf16.vlgmr.msra.gmra.mrb[24].mxu0 %vm743_vm2, %v1066_v16 }
 0x6ec   : > { %4383 = vmatpush3.bf16.msra.mxu0 %v1497_v15  ;;  %4386 = vmatprep.mubr.msk.bf16.mxu0 %vm4735_vm1, %v4734_v1 }
 0x6ed   : > { %4384 = vmatprep.subr.bf16.mxu0 %v4734_v1 }
 0x6f0   : > { %4385 = vmatpush3.bf16.msra.mxu0 %v1498_v19  ;;  %v3974_v19 = vld [vmem:[%s5765_s10 + $0x10] sm:$0xff] }
 0x6f1   : > { %4398 = vmatprep.subr.bf16.mxu0 %v4734_v1  ;;  %v1713_v20 = vpack.c.bf16 %v3974_v19, %v3974_v19 }
 0x6f3   : > { %4387 = vmatmul.mubr.msk.bf16.vlgmr.msra.gmra.mrb[28].mxu0 %vm807_vm3, %v4933_v29  ;;  %v1718_v21 = vsel %vm747_vm0, %v1713_v20, 0 }
 0x6f4   : > { %4400 = vmatprep.mubr.msk.bf16.mxu0 %vm4735_vm1, %v4734_v1 }
 0x7b6   : > { %v1335_v22 = vpop.f32.mrb[20].mxu0 }
 0x7b7   : > { %v1343_v24 = vpack.c.bf16 %v1335_v22, %v1335_v22  ;;  %v4360_v25 = vpop.f32.mrb[21].mxu0 }
 0x7b8   : > { %v1338_v30 = vpop.f32.mrb[22].mxu0 }
 0x7b9   : > { %v4361_v31 = vpop.f32.mrb[23].mxu0  ;;  %4365 = vmatmul.mubr.msk.bf16.vlgmr.msra.gmra.mrb[20].mxu1 %vm743_vm2, %v1343_v24  ;;  %v3977_v24 = vld [vmem:[%s5799_s8 + $0x68] sm:$0xff] }
 0x7ba   : > { %4375 = vmatpush3.bf16.msra.mxu1 %v1442_v23  ;;  %4378 = vmatprep.mubr.msk.bf16.mxu1 %vm4735_vm1, %v4734_v1  ;;  %v3976_v23 = vld [vmem:[%s5799_s8 + $0x60] sm:$0xff]  ;;  %v3978_v31 = vld [vmem:[%s5799_s8 + $0x70] sm:$0xff] }
 0x7bb   : > { %4376 = vmatprep.subr.bf16.mxu1 %v4734_v1  ;;  %v1766_v28 = vpack.c.bf16 %v3977_v24, %v3976_v23 }
 0x7be   : > { %v1431_v35 = vpop.f32.mrb[24].mxu0  ;;  %4377 = vmatpush3.bf16.msra.mxu1 %v1443_v32  ;;  %v3979_v32 = vld [vmem:[%s5799_s8 + $0x78] sm:$0xff] }
 0x7bf   : > { %v4372_v37 = vpop.f32.mrb[25].mxu0  ;;  %4390 = vmatprep.subr.bf16.mxu1 %v4734_v1  ;;  %v1767_v33 = vpack.c.bf16 %v3979_v32, %v3978_v31 }
 0x7c0   : > { %v1434_v40 = vpop.f32.mrb[26].mxu0  ;;  %v3992_v37 = vld [vmem:[%s5803_s4 + $0x70] sm:$0xff] }
 0x7c1   : > { %v4373_v41 = vpop.f32.mrb[27].mxu0  ;;  %4379 = vmatmul.mubr.msk.bf16.vlgmr.msra.gmra.mrb[24].mxu1 %vm807_vm3, %v4933_v29  ;;  %v1877_v39 = vpack.c.bf16 %v3993_v38, %v3992_v37  ;;  %v3983_v40 = vld [vmem:[%s5800_s6 + $0x60] sm:$0xff] }
 0x7c2   : > { %4391 = vmatpush3.bf16.msra.mxu1 %v1552_v36  ;;  %4394 = vmatprep.mubr.msk.bf16.mxu1 %vm4735_vm1, %v4734_v1  ;;  %v3984_v41 = vld [vmem:[%s5800_s6 + $0x68] sm:$0xff] }
 0x7c3   : > { %4392 = vmatprep.subr.bf16.mxu1 %v4734_v1 }
 0x7c6   : > { %v1541_v44 = vpop.f32.mrb[28].mxu0  ;;  %4393 = vmatpush3.bf16.msra.mxu1 %v1553_v42 }
 0x7c7   : > { %v1542_v45 = vadd.f32 %v3963_v43, %v1541_v44  ;;  %v4388_v46 = vpop.f32.mrb[29].mxu0  ;;  %4404 = vmatprep.subr.bf16.mxu1 %v4734_v1  ;;  %v1821_v43 = vpack.c.bf16 %v3984_v41, %v3983_v40  ;;  %v4001_v41 = vld [vmem:[%s5766_s11] ss:$0 sm:$0xff] }
 0x7c8   : > { %v1544_v47 = vpop.f32.mrb[30].mxu0  ;;  %v3985_v46 = vld [vmem:[%s5800_s6 + $0x70] sm:$0xff] }
 0x7c9   : > { %v1603_v48 = vpack.c.bf16 %v1542_v45, %v1542_v45  ;;  %v4389_v49 = vpop.f32.mrb[31].mxu0  ;;  %4395 = vmatmul.mubr.msk.bf16.vlgmr.msra.gmra.mrb[28].mxu1 %vm807_vm3, %v4933_v29  ;;  %v3986_v47 = vld [vmem:[%s5800_s6 + $0x78] sm:$0xff] }
 0x7ca   : > { %4406 = vmatprep.mubr.msk.bf16.mxu1 %vm4735_vm1, %v4734_v1 }
 0x7cb   : > { %v1608_v50 = vsel %vm743_vm2, %v1603_v48, 0 }
 0x7cc   : > { %4399 = vmatpush3.bf16.xpose.msra.mxu0 %v1608_v50  ;;  %v1822_v50 = vpack.c.bf16 %v3986_v47, %v3985_v46 }
 0x7cd   : > { %4410 = vmatprep.subr.bf16.mxu0 %v4734_v1 }
 0x88c   : > { %v1385_v51 = vpop.f32.mrb[20].mxu1 }
 0x88d   : > { %v5126_v52 = vadd.f32 %v1431_v35, %v1385_v51  ;;  %v4366_v53 = vpop.f32.mrb[21].mxu1  ;;  %v3991_v35 = vld [vmem:[%s5803_s4 + $0x68] sm:$0xff] }
 0x88e   : > { %v1388_v54 = vpop.f32.mrb[22].mxu1  ;;  %v1876_v36 = vpack.c.bf16 %v3991_v35, %v3990_v34 }
 0x88f   : > { %v4367_v55 = vpop.f32.mrb[23].mxu1 }
 0x894   : > { %v1486_v57 = vpop.f32.mrb[24].mxu1 }
 0x895   : > { %v1487_v58 = vadd.f32 %v3956_v56, %v1486_v57  ;;  %v4380_v59 = vpop.f32.mrb[25].mxu1  ;;  %v3995_v56 = vld [vmem:[%s5764_s9 + $0x3] ss:$0 sm:$0xff] }
 0x896   : > { %v1489_v60 = vpop.f32.mrb[26].mxu1 }
 0x897   : > { %v1602_v61 = vpack.c.bf16 %v1487_v58, %v1487_v58  ;;  %v4381_v62 = vpop.f32.mrb[27].mxu1 }
 0x899   : > { %4401 = vmatmul.mubr.msk.bf16.vlgmr.msra.gmra.mrb[32].mxu0 %vm743_vm2, %v1602_v61 }
 0x89a   : > { %4412 = vmatprep.mubr.msk.bf16.mxu0 %vm4735_vm1, %v4734_v1  ;;  %4411 = vmatpush3.bf16.msra.mxu0 %v1718_v21 }
 0x89b   : > { %4424 = vmatprep.subr.bf16.mxu0 %v4734_v1 }
 0x89c   : > { %v1596_v0 = vpop.f32.mrb[28].mxu1 }
 0x89d   : > { %v1597_v2 = vadd.f32 %v3970_v63, %v1596_v0  ;;  %v4396_v3 = vpop.f32.mrb[29].mxu1 }
 0x89e   : > { %v1599_v4 = vpop.f32.mrb[30].mxu1 }
 0x89f   : > { %v1663_v5 = vpack.c.bf16 %v1597_v2, %v1597_v2  ;;  %v4397_v6 = vpop.f32.mrb[31].mxu1 }
 0x8a1   : > { %v1668_v7 = vsel %vm747_vm0, %v1663_v5, 0  ;;  %v3988_v5 = vld [vmem:[%s5804_s3 + $0x3] ss:$0 sm:$0xff] }
 0x8a2   : > { %4405 = vmatpush3.bf16.msra.mxu1 %v1668_v7 }
 0x8a3   : > { %4416 = vmatprep.subr.bf16.mxu1 %v4734_v1 }
 0x96c   : > { %v1644_v8 = vpop.f32.mrb[32].mxu0 }
 0x96d   : > { %v1650_v9 = vmul.f32 0.35355338, %v1644_v8  ;;  %v4402_v10 = vpop.f32.mrb[33].mxu0 }
 0x96e   : > { %v1647_v11 = vpop.f32.mrb[34].mxu0 }
 0x96f   : > { %v4403_v12 = vpop.f32.mrb[35].mxu0  ;;  %v1651_v13 = vsel %vm743_vm2, %v1650_v9, -inf }
 0x970   : > { %1652 = vmax.xlane.f32.xlu0 %v1651_v13  ;;  %v3981_v12 = vld [vmem:[%s5805_s27 + $0x3] ss:$0 sm:$0xff] }
 0x9fd   : > { %v1653_v14 = vpop.xlane.xlu0 %1652 }
 0x9fe   : > { %v1654_v15 = vsub.f32 %v1650_v9, %v1653_v14 }
 0xa00   : > { %v1655_v16 = vmul.f32 1.442695, %v1654_v15 }
 0xa02   : > { %4692 = vpow2.f32 %v1655_v16 }
 0xa0c   : > { %v4693_v17 = vpop.eup %4692 }
 0xa0d   : > { %v1657_v18 = vsel %vm743_vm2, %v4693_v17, 0.0 }
 0xa0e   : > { %1658 = vadd.xlane.f32.xlu1 %v1657_v18 }
 0xa9b   : > { %v1659_v22 = vpop.xlane.xlu1 %1658 }
 0xa9c   : > { %4694 = vrcp.f32 %v1659_v22 }
 0xaa6   : > { %v4695_v25 = vpop.eup %4694 }
 0xaa7   : > { %v1661_v27 = vmul.f32 %v4695_v25, %v4693_v17 }
 0xaa9   : > { %v1662_v30 = vpack.c.bf16 %v1661_v27, %v1661_v27  ;;  %v3999_v27 = vld [vmem:[%s5765_s10 + $0x18] sm:$0xff] }
 0xaab   : > { %4407 = vmatmul.mubr.msk.bf16.vlgmr.msra.gmra.mrb[32].mxu1 %vm743_vm2, %v1662_v30 }
 0xaac   : > { %4417 = vmatpush3.bf16.msra.mxu1 %v1766_v28  ;;  %4420 = vmatprep.mubr.msk.bf16.mxu1 %vm4735_vm1, %v4734_v1  ;;  %v2037_v28 = vpack.c.bf16 %v3999_v27, %v3999_v27 }
 0xaad   : > { %4418 = vmatprep.subr.bf16.mxu1 %v4734_v1 }
 0xaae   : > { %v2042_v30 = vsel %vm747_vm0, %v2037_v28, 0 }
 0xab0   : > { %4419 = vmatpush3.bf16.msra.mxu1 %v1767_v33 }
 0xab1   : > { %4432 = vmatprep.subr.bf16.mxu1 %v4734_v1 }
 0xab3   : > { %4421 = vmatmul.mubr.msk.bf16.vlgmr.msra.gmra.mrb[36].mxu1 %vm807_vm3, %v4933_v29 }
 0xab4   : > { %4433 = vmatpush3.bf16.msra.mxu1 %v1876_v36  ;;  %4436 = vmatprep.mubr.msk.bf16.mxu1 %vm4735_vm1, %v4734_v1 }
 0xab5   : > { %4434 = vmatprep.subr.bf16.mxu1 %v4734_v1 }
 0xab8   : > { %4435 = vmatpush3.bf16.msra.mxu1 %v1877_v39 }
 0xab9   : > { %4446 = vmatprep.subr.bf16.mxu1 %v4734_v1 }
 0xabb   : > { %4437 = vmatmul.mubr.msk.bf16.vlgmr.msra.gmra.mrb[40].mxu1 %vm807_vm3, %v4933_v29 }
 0xabc   : > { %4448 = vmatprep.mubr.msk.bf16.mxu1 %vm4735_vm1, %v4734_v1 }
 0xb7e   : > { %v1704_v42 = vpop.f32.mrb[32].mxu1 }
 0xb7f   : > { %v1712_v44 = vpack.c.bf16 %v1704_v42, %v1704_v42  ;;  %v4408_v45 = vpop.f32.mrb[33].mxu1 }
 0xb80   : > { %v1707_v48 = vpop.f32.mrb[34].mxu1 }
 0xb81   : > { %v4409_v49 = vpop.f32.mrb[35].mxu1  ;;  %4413 = vmatmul.mubr.msk.bf16.vlgmr.msra.gmra.mrb[36].mxu0 %vm743_vm2, %v1712_v44 }
 0xb82   : > { %4425 = vmatpush3.bf16.msra.mxu0 %v1821_v43  ;;  %4428 = vmatprep.mubr.msk.bf16.mxu0 %vm4735_vm1, %v4734_v1 }
 0xb83   : > { %4426 = vmatprep.subr.bf16.mxu0 %v4734_v1 }
 0xb86   : > { %v1810_v51 = vpop.f32.mrb[36].mxu1  ;;  %4427 = vmatpush3.bf16.msra.mxu0 %v1822_v50 }
 0xb87   : > { %v4422_v53 = vpop.f32.mrb[37].mxu1  ;;  %4440 = vmatprep.subr.bf16.mxu0 %v4734_v1 }
 0xb88   : > { %v1813_v54 = vpop.f32.mrb[38].mxu1 }
 0xb89   : > { %v4423_v55 = vpop.f32.mrb[39].mxu1  ;;  %4429 = vmatmul.mubr.msk.bf16.vlgmr.msra.gmra.mrb[40].mxu0 %vm807_vm3, %v4933_v29 }
 0xb8a   : > { %4442 = vmatprep.mubr.msk.bf16.mxu0 %vm4735_vm1, %v4734_v1  ;;  %v2124_v55 = vld [vmem:[%s5767_s12] sm:$0xff] }
 0xb8e   : > { %v1920_v57 = vpop.f32.mrb[40].mxu1 }
 0xb8f   : > { %v1921_v58 = vadd.f32 %v3995_v56, %v1920_v57  ;;  %v4438_v59 = vpop.f32.mrb[41].mxu1  ;;  %v2125_v56 = vld [vmem:[%s5767_s12 + $0x8] sm:$0xff] }
 0xb90   : > { %v1923_v60 = vpop.f32.mrb[42].mxu1  ;;  %v2129_v57 = vpack.c.bf16 %v2125_v56, %v2124_v55 }
 0xb91   : > { %v1987_v61 = vpack.c.bf16 %v1921_v58, %v1921_v58  ;;  %v4439_v62 = vpop.f32.mrb[43].mxu1  ;;  %v2127_v58 = vld [vmem:[%s5767_s12 + $0x18] sm:$0xff]  ;;  %v2182_v60 = vld [vmem:[%s5769_s14] sm:$0xff] }
 0xb92   : > { %v2184_v62 = vld [vmem:[%s5769_s14 + $0x10] sm:$0xff] }
 0xb93   : > { %v1992_v63 = vsel %vm747_vm0, %v1987_v61, 0  ;;  %v2183_v61 = vld [vmem:[%s5769_s14 + $0x8] sm:$0xff] }
 0xb94   : > { %4447 = vmatpush3.bf16.msra.mxu1 %v1992_v63  ;;  %v2191_v63 = vpack.c.bf16 %v2183_v61, %v2182_v60  ;;  %v4017_v60 = vld [vmem:[%s5800_s6 + $0x80] sm:$0xff]  ;;  %v4018_v61 = vld [vmem:[%s5800_s6 + $0x88] sm:$0xff] }
 0xb95   : > { %4458 = vmatprep.subr.bf16.mxu1 %v4734_v1 }
 0xc54   : > { %v1754_v0 = vpop.f32.mrb[36].mxu0 }
 0xc55   : > { %v1760_v29 = vadd.f32 %v1754_v0, %v5126_v52  ;;  %v4414_v2 = vpop.f32.mrb[37].mxu0  ;;  %v1811_v52 = vadd.f32 %v3981_v12, %v1810_v51  ;;  %v2185_v0 = vld [vmem:[%s5769_s14 + $0x18] sm:$0xff]  ;;  %v2186_v12 = vld [vmem:[%s5769_s14 + $0x20] sm:$0xff] }
 0xc56   : > { %v1757_v3 = vpop.f32.mrb[38].mxu0 }
 0xc57   : > { %v4415_v4 = vpop.f32.mrb[39].mxu0  ;;  %v1926_v14 = vpack.c.bf16 %v1811_v52, %v1811_v52 }
 0xc5c   : > { %v1865_v6 = vpop.f32.mrb[40].mxu0 }
 0xc5d   : > { %v1866_v7 = vadd.f32 %v3988_v5, %v1865_v6  ;;  %v4430_v8 = vpop.f32.mrb[41].mxu0  ;;  %v4002_v6 = vld [vmem:[%s5771_s16] ss:$0 sm:$0xff] }
 0xc5e   : > { %v1868_v9 = vpop.f32.mrb[42].mxu0  ;;  %v4003_v8 = vld [vmem:[%s5772_s17] ss:$0 sm:$0xff] }
 0xc5f   : > { %v1927_v10 = vpack.c.bf16 %v1866_v7, %v1866_v7  ;;  %v4431_v11 = vpop.f32.mrb[43].mxu0 }
 0xc61   : > { %v1932_v13 = vsel %vm743_vm2, %v1927_v10, 0 }
 0xc62   : > { %4441 = vmatpush3.bf16.xpose.msra.mxu0 %v1932_v13  ;;  %v2187_v13 = vld [vmem:[%s5769_s14 + $0x28] sm:$0xff] }
 0xc63   : > { %4452 = vmatprep.subr.bf16.mxu0 %v4734_v1  ;;  %v2193_v52 = vpack.c.bf16 %v2187_v13, %v2186_v12 }
 0xc69   : > { %4443 = vmatmul.mubr.msk.bf16.vlgmr.msra.gmra.mrb[44].mxu0 %vm743_vm2, %v1926_v14  ;;  %v2188_v14 = vld [vmem:[%s5769_s14 + $0x30] sm:$0xff] }
 0xc6a   : > { %4454 = vmatprep.mubr.msk.bf16.mxu0 %vm4735_vm1, %v4734_v1  ;;  %4453 = vmatpush3.bf16.msra.mxu0 %v2042_v30 }
 0xc6b   : > { %4466 = vmatprep.subr.bf16.mxu0 %v4734_v1 }
 0xd3c   : > { %v1968_v15 = vpop.f32.mrb[44].mxu0 }
 0xd3d   : > { %v1974_v16 = vmul.f32 0.35355338, %v1968_v15  ;;  %v4444_v17 = vpop.f32.mrb[45].mxu0  ;;  %v2189_v15 = vld [vmem:[%s5769_s14 + $0x38] sm:$0xff] }
 0xd3e   : > { %v1971_v18 = vpop.f32.mrb[46].mxu0  ;;  %v4004_v17 = vld [vmem:[%s5768_s13] ss:$0 sm:$0xff] }
 0xd3f   : > { %v4445_v19 = vpop.f32.mrb[47].mxu0  ;;  %v1975_v20 = vsel %vm743_vm2, %v1974_v16, -inf }
 0xd40   : > { %1976 = vmax.xlane.f32.xlu0 %v1975_v20 }
 0xdcd   : > { %v1977_v21 = vpop.xlane.xlu0 %1976 }
 0xdce   : > { %v1978_v22 = vsub.f32 %v1974_v16, %v1977_v21  ;;  %v2194_v16 = vpack.c.bf16 %v2189_v15, %v2188_v14  ;;  %v4022_v15 = vld [vmem:[%s5804_s3 + $0x4] ss:$0 sm:$0xff] }
 0xdd0   : > { %v1979_v23 = vmul.f32 1.442695, %v1978_v22 }
 0xdd2   : > { %4696 = vpow2.f32 %v1979_v23 }
 0xddc   : > { %v4697_v24 = vpop.eup %4696 }
 0xddd   : > { %v1981_v25 = vsel %vm743_vm2, %v4697_v24, 0.0 }
 0xdde   : > { %1982 = vadd.xlane.f32.xlu1 %v1981_v25  ;;  %v4006_v25 = vld [vmem:[%s5770_s15] ss:$0 sm:$0xff] }
 0xe6b   : > { %v1983_v31 = vpop.xlane.xlu1 %1982 }
 0xe6c   : > { %4698 = vrcp.f32 %v1983_v31 }
 0xe76   : > { %v4699_v32 = vpop.eup %4698 }
 0xe77   : > { %v1985_v33 = vmul.f32 %v4699_v32, %v4697_v24 }
 0xe79   : > { %v1986_v34 = vpack.c.bf16 %v1985_v33, %v1985_v33 }
 0xe7b   : > { %4449 = vmatmul.mubr.msk.bf16.vlgmr.msra.gmra.mrb[44].mxu1 %vm743_vm2, %v1986_v34 }
 0xe7c   : > { %4462 = vmatprep.mubr.msk.bf16.mxu1 %vm4735_vm1, %v4734_v1  ;;  %4459 = vmatpush3.bf16.msra.mxu1 %v2129_v57  ;;  %v4008_v57 = vld [vmem:[%s5773_s18] ss:$0 sm:$0xff] }
 0xe7d   : > { %4460 = vmatprep.subr.bf16.mxu1 %v4734_v1 }
 0xf4e   : > { %v2028_v35 = vpop.f32.mrb[44].mxu1 }
 0xf4f   : > { %v2036_v36 = vpack.c.bf16 %v2028_v35, %v2028_v35  ;;  %v4450_v37 = vpop.f32.mrb[45].mxu1 }
 0xf50   : > { %v2031_v38 = vpop.f32.mrb[46].mxu1 }
 0xf51   : > { %v4451_v39 = vpop.f32.mrb[47].mxu1  ;;  %4455 = vmatmul.mubr.msk.bf16.vlgmr.msra.gmra.mrb[48].mxu0 %vm743_vm2, %v2036_v36 }
 0xf52   : > { %4474 = vmatprep.mubr.msk.bf16.mxu0 %vm4735_vm1, %v4734_v1  ;;  %4467 = vmatpush3.bf16.msra.mxu0 %v2191_v63  ;;  %v2340_v63 = vpack.c.bf16 %v4018_v61, %v4017_v60 }
 0xf53   : > { %4468 = vmatprep.subr.bf16.mxu0 %v4734_v1 }
0x1024   : > { %v2078_v40 = vpop.f32.mrb[48].mxu0 }
0x1025   : > { %v2084_v42 = vadd.f32 %v2078_v40, %v1760_v29  ;;  %v4456_v43 = vpop.f32.mrb[49].mxu0  ;;  %v2192_v29 = vpack.c.bf16 %v2185_v0, %v2184_v62  ;;  %v4010_v40 = vld [vmem:[%s5799_s8 + $0x80] sm:$0xff] }
0x1026   : > { %v2081_v44 = vpop.f32.mrb[50].mxu0 }
0x1027   : > { %v2092_v45 = vadd.f32 %v4001_v41, %v2084_v42  ;;  %v4457_v46 = vpop.f32.mrb[51].mxu0  ;;  %4469 = vmatpush3.bf16.msra.mxu0 %v2192_v29  ;;  %v4011_v41 = vld [vmem:[%s5799_s8 + $0x88] sm:$0xff]  ;;  %v4024_v42 = vld [vmem:[%s5803_s4 + $0x80] sm:$0xff]  ;;  %v4019_v29 = vld [vmem:[%s5800_s6 + $0x90] sm:$0xff] }
0x1028   : > { %4470 = vmatprep.subr.bf16.mxu0 %v4734_v1  ;;  %v2282_v43 = vpack.c.bf16 %v4011_v41, %v4010_v40  ;;  %v4025_v44 = vld [vmem:[%s5803_s4 + $0x88] sm:$0xff]  ;;  %v4012_v46 = vld [vmem:[%s5799_s8 + $0x90] sm:$0xff] }
0x1029   : > { %v2093_v47 = vadd.f32 %v2092_v45, %v4929_v26  ;;  %v2126_v26 = vld [vmem:[%s5767_s12 + $0x10] sm:$0xff]  ;;  %v2395_v45 = vpack.c.bf16 %v4025_v44, %v4024_v42 }
0x102a   : > { %v2130_v59 = vpack.c.bf16 %v2127_v58, %v2126_v26  ;;  %v4009_v58 = vld [vmem:[%s5774_s19] ss:$0 sm:$0xff] }
0x102b   : > { %v2096_v48 = vsel %vm807_vm3, %v2093_v47, 0.0  ;;  %4471 = vmatpush3.bf16.msra.mxu0 %v2193_v52 }
0x102c   : > { %2097 = vadd.xlane.f32.xlu0 %v2096_v48  ;;  %4461 = vmatpush3.bf16.msra.mxu1 %v2130_v59  ;;  %v4026_v48 = vld [vmem:[%s5803_s4 + $0x90] sm:$0xff] }
0x102d   : > { %4478 = vmatprep.subr.bf16.mxu1 %v4734_v1  ;;  %4472 = vmatprep.subr.bf16.mxu0 %v4734_v1 }
0x102f   : > { %4473 = vmatpush3.bf16.msra.mxu0 %v2194_v16 }
0x1030   : > { %4494 = vmatprep.subr.bf16.mxu0 %v4734_v1 }
0x10b9   : > { %v2098_v49 = vpop.xlane.xlu0 %2097 }
0x10ba   : > { %v2100_v50 = vmul.f32 0.03125, %v2098_v49 }
0x10bc   : > { %v2101_v51 = vsub.f32 %v2093_v47, %v2100_v50  ;;  %v4013_v47 = vld [vmem:[%s5799_s8 + $0x98] sm:$0xff] }
0x10bd   : > { %v2283_v49 = vpack.c.bf16 %v4013_v47, %v4012_v46  ;;  %v4027_v50 = vld [vmem:[%s5803_s4 + $0x98] sm:$0xff] }
0x10be   : > { %v2102_v53 = vmul.f32 %v2101_v51, %v2101_v51 }
0x10c0   : > { %v2103_v54 = vsel %vm807_vm3, %v2102_v53, 0.0 }
0x10c1   : > { %2104 = vadd.xlane.f32.xlu1 %v2103_v54 }
0x114e   : > { %v2105_v2 = vpop.xlane.xlu1 %2104 }
0x114f   : > { %v2106_v3 = vmul.f32 0.03125, %v2105_v2  ;;  %v4020_v2 = vld [vmem:[%s5800_s6 + $0x98] sm:$0xff] }
0x1151   : > { %v2107_v4 = vadd.f32 1e-05, %v2106_v3  ;;  %v2341_v3 = vpack.c.bf16 %v4020_v2, %v4019_v29  ;;  %v4041_v2 = vld [vmem:[%s5800_s6 + $0xa0] sm:$0xff] }
0x1153   : > { %4700 = vrsqrt.f32 %v2107_v4  ;;  %v4029_v4 = vld [vmem:[%s5764_s9 + $0x4] ss:$0 sm:$0xff] }
0x115d   : > { %v4701_v5 = vpop.eup %4700 }
0x115e   : > { %v2109_v7 = vmul.f32 %v4701_v5, %v2101_v51  ;;  %v2396_v51 = vpack.c.bf16 %v4027_v50, %v4026_v48  ;;  %v4053_v50 = vld [vmem:[%s5764_s9 + $0x5] ss:$0 sm:$0xff] }
0x1160   : > { %v2116_v9 = vmul.f32 %v4002_v6, %v2109_v7 }
0x1162   : > { %v2123_v10 = vadd.f32 %v4003_v8, %v2116_v9 }
0x1164   : > { %v2128_v11 = vpack.c.bf16 %v2123_v10, %v2123_v10 }
0x1166   : > { %4463 = vmatmul.mubr.msk.bf16.vlgmr.msra.gmra.mrb[48].mxu1 %vm807_vm3, %v2128_v11 }
0x1167   : > { %4482 = vmatprep.mubr.msk.bf16.mxu1 %vm4735_vm1, %v4734_v1  ;;  %4479 = vmatpush3.bf16.msra.mxu1 %v2282_v43 }
0x1168   : > { %4480 = vmatprep.subr.bf16.mxu1 %v4734_v1 }
0x116b   : > { %4481 = vmatpush3.bf16.msra.mxu1 %v2283_v49 }
0x116c   : > { %4486 = vmatprep.subr.bf16.mxu1 %v4734_v1 }
0x1239   : > { %v2175_v18 = vpop.f32.mrb[48].mxu1 }
0x123a   : > { %v2176_v19 = vadd.f32 %v4004_v17, %v2175_v18  ;;  %v4464_v20 = vpop.f32.mrb[49].mxu1 }
0x123b   : > { %v2178_v21 = vpop.f32.mrb[50].mxu1 }
0x123c   : > { %v2181_v22 = vmax.f32 %v2176_v19, 0.0  ;;  %v4465_v23 = vpop.f32.mrb[51].mxu1 }
0x123e   : > { %v2190_v24 = vpack.c.bf16 %v2181_v22, %v2181_v22  ;;  %v4015_v22 = vld [vmem:[%s5805_s27 + $0x4] ss:$0 sm:$0xff] }
0x1240   : > { %4475 = vmatmul.mubr.msk.bf16.vlgmr.msra.gmra.mrb[52].mxu0 %vm2202_vm4, %v2190_v24 }
0x1241   : > { %4498 = vmatprep.mubr.msk.bf16.mxu0 %vm4735_vm1, %v4734_v1  ;;  %4495 = vmatpush3.bf16.msra.mxu0 %v2395_v45 }
0x1242   : > { %4496 = vmatprep.subr.bf16.mxu0 %v4734_v1 }
0x1245   : > { %4497 = vmatpush3.bf16.msra.mxu0 %v2396_v51 }
0x1246   : > { %4508 = vmatprep.subr.bf16.mxu0 %v4734_v1 }
0x1313   : > { %v2240_v27 = vpop.f32.mrb[52].mxu0 }
0x1314   : > { %v2241_v28 = vadd.f32 %v4006_v25, %v2240_v27  ;;  %v4476_v30 = vpop.f32.mrb[53].mxu0  ;;  %v4034_v25 = vld [vmem:[%s5799_s8 + $0xa0] sm:$0xff]  ;;  %v4035_v27 = vld [vmem:[%s5799_s8 + $0xa8] sm:$0xff] }
0x1315   : > { %v2243_v31 = vpop.f32.mrb[54].mxu0 }
0x1316   : > { %v4477_v32 = vpop.f32.mrb[55].mxu0  ;;  %v2246_v33 = vadd.f32 %v2241_v28, %v2123_v10  ;;  %v2562_v28 = vpack.c.bf16 %v4035_v27, %v4034_v25  ;;  %v4036_v31 = vld [vmem:[%s5799_s8 + $0xb0] sm:$0xff] }
0x1317   : > { %v4037_v32 = vld [vmem:[%s5799_s8 + $0xb8] sm:$0xff] }
0x1318   : > { %v2249_v34 = vsel %vm807_vm3, %v2246_v33, 0.0 }
0x1319   : > { %2250 = vadd.xlane.f32.xlu0 %v2249_v34  ;;  %v4048_v34 = vld [vmem:[%s5803_s4 + $0xa0] sm:$0xff] }
0x13a6   : > { %v2251_v35 = vpop.xlane.xlu0 %2250 }
0x13a7   : > { %v2252_v36 = vmul.f32 0.03125, %v2251_v35  ;;  %v4049_v35 = vld [vmem:[%s5803_s4 + $0xa8] sm:$0xff] }
0x13a9   : > { %v2253_v37 = vsub.f32 %v2246_v33, %v2252_v36  ;;  %v2563_v33 = vpack.c.bf16 %v4037_v32, %v4036_v31  ;;  %v2672_v36 = vpack.c.bf16 %v4049_v35, %v4048_v34 }
0x13ab   : > { %v2254_v38 = vmul.f32 %v2253_v37, %v2253_v37 }
0x13ad   : > { %v2255_v39 = vsel %vm807_vm3, %v2254_v38, 0.0  ;;  %v4051_v38 = vld [vmem:[%s5803_s4 + $0xb8] sm:$0xff] }
0x13ae   : > { %2256 = vadd.xlane.f32.xlu1 %v2255_v39 }
0x143b   : > { %v2257_v53 = vpop.xlane.xlu1 %2256 }
0x143c   : > { %v2258_v54 = vmul.f32 0.03125, %v2257_v53 }
0x143e   : > { %v2259_v55 = vadd.f32 1e-05, %v2258_v54 }
0x1440   : > { %4702 = vrsqrt.f32 %v2259_v55 }
0x144a   : > { %v4703_v56 = vpop.eup %4702 }
0x144b   : > { %v2261_v26 = vmul.f32 %v4703_v56, %v2253_v37  ;;  %v4050_v37 = vld [vmem:[%s5803_s4 + $0xb0] sm:$0xff] }
0x144c   : > { %v2673_v39 = vpack.c.bf16 %v4051_v38, %v4050_v37  ;;  %v4057_v38 = vld [vmem:[%s5765_s10 + $0x28] sm:$0xff] }
0x144d   : > { %v2268_v59 = vmul.f32 %v4008_v57, %v2261_v26 }
0x144f   : > { %v5344_v62 = vadd.f32 %v4009_v58, %v2268_v59 }
0x1451   : > { %v5348_v0 = vpack.c.bf16 %v5344_v62, %v5344_v62 }
0x1453   : > { %4483 = vmatmul.mubr.msk.bf16.vlgmr.msra.gmra.mrb[52].mxu1 %vm807_vm3, %v5348_v0  ;;  %4499 = vmatmul.mubr.msk.bf16.vlgmr.msra.gmra.mrb[56].mxu0 %vm807_vm3, %v5348_v0 }
0x1454   : > { %4487 = vmatpush3.bf16.msra.mxu1 %v2340_v63  ;;  %4490 = vmatprep.mubr.msk.bf16.mxu1 %vm4735_vm1, %v4734_v1 }
0x1455   : > { %4488 = vmatprep.subr.bf16.mxu1 %v4734_v1  ;;  %4510 = vmatprep.mubr.msk.bf16.mxu0 %vm4735_vm1, %v4734_v1 }
0x1458   : > { %4489 = vmatpush3.bf16.msra.mxu1 %v2341_v3  ;;  %v4042_v3 = vld [vmem:[%s5800_s6 + $0xa8] sm:$0xff] }
0x1459   : > { %4502 = vmatprep.subr.bf16.mxu1 %v4734_v1 }
0x145b   : > { %4491 = vmatmul.mubr.msk.bf16.vlgmr.msra.gmra.mrb[56].mxu1 %vm807_vm3, %v5348_v0 }
0x145c   : > { %4504 = vmatprep.mubr.msk.bf16.mxu1 %vm4735_vm1, %v4734_v1 }
0x1526   : > { %v2329_v5 = vpop.f32.mrb[52].mxu1  ;;  %v2439_v6 = vpop.f32.mrb[56].mxu0 }
0x1527   : > { %v2440_v7 = vadd.f32 %v4029_v4, %v2439_v6  ;;  %v4484_v8 = vpop.f32.mrb[53].mxu1  ;;  %v4500_v9 = vpop.f32.mrb[57].mxu0  ;;  %v2330_v24 = vadd.f32 %v4015_v22, %v2329_v5  ;;  %v2617_v6 = vpack.c.bf16 %v4042_v3, %v4041_v2 }
0x1528   : > { %v2332_v10 = vpop.f32.mrb[54].mxu1  ;;  %v2442_v11 = vpop.f32.mrb[58].mxu0  ;;  %v4043_v8 = vld [vmem:[%s5800_s6 + $0xb0] sm:$0xff]  ;;  %v4044_v9 = vld [vmem:[%s5800_s6 + $0xb8] sm:$0xff] }
0x1529   : > { %v2506_v12 = vpack.c.bf16 %v2440_v7, %v2440_v7  ;;  %v4485_v13 = vpop.f32.mrb[55].mxu1  ;;  %v4501_v52 = vpop.f32.mrb[59].mxu0  ;;  %v2445_v30 = vpack.c.bf16 %v2330_v24, %v2330_v24  ;;  %v2618_v10 = vpack.c.bf16 %v4044_v9, %v4043_v8  ;;  %v4076_v9 = vld [vmem:[%s5803_s4 + $0xd0] sm:$0xff] }
0x152b   : > { %v2511_v14 = vsel %vm747_vm0, %v2506_v12, 0 }
0x152c   : > { %4509 = vmatpush3.bf16.msra.mxu0 %v2511_v14  ;;  %v4046_v14 = vld [vmem:[%s5804_s3 + $0x5] ss:$0 sm:$0xff] }
0x152d   : > { %4522 = vmatprep.subr.bf16.mxu0 %v4734_v1 }
0x152e   : > { %v2384_v16 = vpop.f32.mrb[56].mxu1 }
0x152f   : > { %v2385_v17 = vadd.f32 %v4022_v15, %v2384_v16  ;;  %v4492_v18 = vpop.f32.mrb[57].mxu1 }
0x1530   : > { %v2387_v19 = vpop.f32.mrb[58].mxu1 }
0x1531   : > { %v2446_v20 = vpack.c.bf16 %v2385_v17, %v2385_v17  ;;  %v4493_v21 = vpop.f32.mrb[59].mxu1 }
0x1532   : > { %v4039_v21 = vld [vmem:[%s5805_s27 + $0x5] ss:$0 sm:$0xff] }
0x1533   : > { %v2451_v23 = vsel %vm743_vm2, %v2446_v20, 0 }
0x1534   : > { %4503 = vmatpush3.bf16.xpose.msra.mxu1 %v2451_v23 }
0x1535   : > { %4514 = vmatprep.subr.bf16.mxu1 %v4734_v1 }
0x153b   : > { %4505 = vmatmul.mubr.msk.bf16.vlgmr.msra.gmra.mrb[60].mxu1 %vm743_vm2, %v2445_v30 }
0x153c   : > { %4515 = vmatpush3.bf16.msra.mxu1 %v2562_v28  ;;  %4518 = vmatprep.mubr.msk.bf16.mxu1 %vm4735_vm1, %v4734_v1 }
0x153d   : > { %4516 = vmatprep.subr.bf16.mxu1 %v4734_v1 }
0x1540   : > { %4517 = vmatpush3.bf16.msra.mxu1 %v2563_v33 }
0x1541   : > { %4530 = vmatprep.subr.bf16.mxu1 %v4734_v1 }
0x1543   : > { %4519 = vmatmul.mubr.msk.bf16.vlgmr.msra.gmra.mrb[64].mxu1 %vm807_vm3, %v5348_v0 }
0x1544   : > { %4531 = vmatpush3.bf16.msra.mxu1 %v2672_v36  ;;  %4534 = vmatprep.mubr.msk.bf16.mxu1 %vm4735_vm1, %v4734_v1 }
0x1545   : > { %4532 = vmatprep.subr.bf16.mxu1 %v4734_v1 }
0x1548   : > { %4533 = vmatpush3.bf16.msra.mxu1 %v2673_v39  ;;  %v2833_v39 = vpack.c.bf16 %v4057_v38, %v4057_v38 }
0x1549   : > { %4544 = vmatprep.subr.bf16.mxu1 %v4734_v1 }
0x154b   : > { %4535 = vmatmul.mubr.msk.bf16.vlgmr.msra.gmra.mrb[68].mxu1 %vm807_vm3, %v5348_v0 }
0x154c   : > { %4546 = vmatprep.mubr.msk.bf16.mxu1 %vm4735_vm1, %v4734_v1 }
0x160e   : > { %v2487_v40 = vpop.f32.mrb[60].mxu1 }
0x160f   : > { %v2493_v41 = vmul.f32 0.35355338, %v2487_v40  ;;  %v4506_v42 = vpop.f32.mrb[61].mxu1  ;;  %v2838_v40 = vsel %vm747_vm0, %v2833_v39, 0 }
0x1610   : > { %v2490_v43 = vpop.f32.mrb[62].mxu1  ;;  %v4033_v42 = vld [vmem:[%s5765_s10 + $0x20] sm:$0xff] }
0x1611   : > { %v4507_v44 = vpop.f32.mrb[63].mxu1  ;;  %v2494_v45 = vsel %vm743_vm2, %v2493_v41, -inf  ;;  %v2556_v43 = vpack.c.bf16 %v4033_v42, %v4033_v42 }
0x1612   : > { %2495 = vmax.xlane.f32.xlu0 %v2494_v45 }
0x1616   : > { %v2606_v46 = vpop.f32.mrb[64].mxu1 }
0x1617   : > { %v4520_v47 = vpop.f32.mrb[65].mxu1  ;;  %v2607_v23 = vadd.f32 %v4039_v21, %v2606_v46 }
0x1618   : > { %v2609_v48 = vpop.f32.mrb[66].mxu1  ;;  %v2884_v47 = vsel %vm747_vm0, %v2556_v43, 0 }
0x1619   : > { %v4521_v49 = vpop.f32.mrb[67].mxu1  ;;  %v2722_v24 = vpack.c.bf16 %v2607_v23, %v2607_v23  ;;  %v4067_v48 = vld [vmem:[%s5800_s6 + $0xc0] sm:$0xff] }
0x161a   : > { %v4068_v49 = vld [vmem:[%s5800_s6 + $0xc8] sm:$0xff] }
0x161e   : > { %v2716_v51 = vpop.f32.mrb[68].mxu1 }
0x161f   : > { %v2717_v53 = vadd.f32 %v4053_v50, %v2716_v51  ;;  %v4536_v54 = vpop.f32.mrb[69].mxu1  ;;  %v2986_v50 = vpack.c.bf16 %v4068_v49, %v4067_v48 }
0x1620   : > { %v2719_v55 = vpop.f32.mrb[70].mxu1  ;;  %v4070_v54 = vld [vmem:[%s5800_s6 + $0xd8] sm:$0xff] }
0x1621   : > { %v2783_v56 = vpack.c.bf16 %v2717_v53, %v2717_v53  ;;  %v4537_v57 = vpop.f32.mrb[71].mxu1  ;;  %v4069_v53 = vld [vmem:[%s5800_s6 + $0xd0] sm:$0xff] }
0x1622   : > { %v2987_v55 = vpack.c.bf16 %v4070_v54, %v4069_v53  ;;  %v4061_v57 = vld [vmem:[%s5799_s8 + $0xc8] sm:$0xff] }
0x1623   : > { %v2788_v26 = vsel %vm747_vm0, %v2783_v56, 0  ;;  %v4060_v56 = vld [vmem:[%s5799_s8 + $0xc0] sm:$0xff] }
0x1624   : > { %4545 = vmatpush3.bf16.msra.mxu1 %v2788_v26 }
0x1625   : > { %4556 = vmatprep.subr.bf16.mxu1 %v4734_v1 }
0x169f   : > { %v2496_v58 = vpop.xlane.xlu0 %2495 }
0x16a0   : > { %v2497_v59 = vsub.f32 %v2493_v41, %v2496_v58  ;;  %v2931_v58 = vpack.c.bf16 %v4061_v57, %v4060_v56 }
0x16a2   : > { %v2498_v60 = vmul.f32 1.442695, %v2497_v59 }
0x16a4   : > { %4704 = vpow2.f32 %v2498_v60 }
0x16ae   : > { %v4705_v61 = vpop.eup %4704 }
0x16af   : > { %v2500_v63 = vsel %vm743_vm2, %v4705_v61, 0.0 }
0x16b0   : > { %2501 = vadd.xlane.f32.xlu1 %v2500_v63  ;;  %v4063_v63 = vld [vmem:[%s5799_s8 + $0xd8] sm:$0xff] }
0x173d   : > { %v2502_v29 = vpop.xlane.xlu1 %2501 }
0x173e   : > { %4706 = vrcp.f32 %v2502_v29 }
0x1748   : > { %v4707_v4 = vpop.eup %4706 }
0x1749   : > { %v2504_v5 = vmul.f32 %v4707_v4, %v4705_v61  ;;  %v4062_v61 = vld [vmem:[%s5799_s8 + $0xd0] sm:$0xff]  ;;  %v4074_v4 = vld [vmem:[%s5803_s4 + $0xc0] sm:$0xff] }
0x174a   : > { %v2932_v3 = vpack.c.bf16 %v4063_v63, %v4062_v61 }
0x174b   : > { %v2505_v7 = vpack.c.bf16 %v2504_v5, %v2504_v5  ;;  %v4075_v5 = vld [vmem:[%s5803_s4 + $0xc8] sm:$0xff] }
0x174d   : > { %4511 = vmatmul.mubr.msk.bf16.vlgmr.msra.gmra.mrb[60].mxu0 %vm743_vm2, %v2505_v7  ;;  %v3041_v7 = vpack.c.bf16 %v4075_v5, %v4074_v4  ;;  %v4099_v5 = vld [vmem:[%s5803_s4 + $0xe0] sm:$0xff] }
0x174e   : > { %4523 = vmatpush3.bf16.msra.mxu0 %v2617_v6  ;;  %4526 = vmatprep.mubr.msk.bf16.mxu0 %vm4735_vm1, %v4734_v1 }
0x174f   : > { %4524 = vmatprep.subr.bf16.mxu0 %v4734_v1 }
0x1752   : > { %4525 = vmatpush3.bf16.msra.mxu0 %v2618_v10  ;;  %v4077_v10 = vld [vmem:[%s5803_s4 + $0xd8] sm:$0xff] }
0x1753   : > { %4538 = vmatprep.subr.bf16.mxu0 %v4734_v1 }
0x1755   : > { %4527 = vmatmul.mubr.msk.bf16.vlgmr.msra.gmra.mrb[64].mxu0 %vm807_vm3, %v5348_v0 }
0x1756   : > { %4540 = vmatprep.mubr.msk.bf16.mxu0 %vm4735_vm1, %v4734_v1 }
0x1820   : > { %v2547_v11 = vpop.f32.mrb[60].mxu0 }
0x1821   : > { %v4512_v12 = vpop.f32.mrb[61].mxu0  ;;  %v2555_v51 = vpack.c.bf16 %v2547_v11, %v2547_v11 }
0x1822   : > { %v2550_v13 = vpop.f32.mrb[62].mxu0 }
0x1823   : > { %v4513_v52 = vpop.f32.mrb[63].mxu0  ;;  %v3042_v13 = vpack.c.bf16 %v4077_v10, %v4076_v9  ;;  %v4102_v9 = vld [vmem:[%s5803_s4 + $0xf8] sm:$0xff] }
0x1824   : > { %v4072_v52 = vld [vmem:[%s5804_s3 + $0x6] ss:$0 sm:$0xff] }
0x1828   : > { %v2661_v15 = vpop.f32.mrb[64].mxu0 }
0x1829   : > { %v2662_v16 = vadd.f32 %v4046_v14, %v2661_v15  ;;  %v4528_v17 = vpop.f32.mrb[65].mxu0 }
0x182a   : > { %v2664_v18 = vpop.f32.mrb[66].mxu0 }
0x182b   : > { %v2723_v19 = vpack.c.bf16 %v2662_v16, %v2662_v16  ;;  %v4529_v20 = vpop.f32.mrb[67].mxu0 }
0x182d   : > { %v2728_v22 = vsel %vm743_vm2, %v2723_v19, 0 }
0x182e   : > { %4539 = vmatpush3.bf16.xpose.msra.mxu0 %v2728_v22 }
0x182f   : > { %4550 = vmatprep.subr.bf16.mxu0 %v4734_v1 }
0x1835   : > { %4541 = vmatmul.mubr.msk.bf16.vlgmr.msra.gmra.mrb[68].mxu0 %vm743_vm2, %v2722_v24 }
0x1836   : > { %4552 = vmatprep.mubr.msk.bf16.mxu0 %vm4735_vm1, %v4734_v1  ;;  %4551 = vmatpush3.bf16.msra.mxu0 %v2838_v40 }
0x1837   : > { %4562 = vmatprep.subr.bf16.mxu0 %v4734_v1 }
0x1908   : > { %v2764_v25 = vpop.f32.mrb[68].mxu0 }
0x1909   : > { %v2770_v27 = vmul.f32 0.35355338, %v2764_v25  ;;  %v4542_v28 = vpop.f32.mrb[69].mxu0 }
0x190a   : > { %v2767_v30 = vpop.f32.mrb[70].mxu0 }
0x190b   : > { %v4543_v31 = vpop.f32.mrb[71].mxu0  ;;  %v2771_v32 = vsel %vm743_vm2, %v2770_v27, -inf }
0x190c   : > { %2772 = vmax.xlane.f32.xlu0 %v2771_v32 }
0x1999   : > { %v2773_v33 = vpop.xlane.xlu0 %2772 }
0x199a   : > { %v2774_v34 = vsub.f32 %v2770_v27, %v2773_v33  ;;  %v4065_v27 = vld [vmem:[%s5805_s27 + $0x6] ss:$0 sm:$0xff] }
0x199c   : > { %v2775_v35 = vmul.f32 1.442695, %v2774_v34 }
0x199e   : > { %4708 = vpow2.f32 %v2775_v35  ;;  %v4079_v35 = vld [vmem:[%s5764_s9 + $0x6] ss:$0 sm:$0xff] }
0x19a8   : > { %v4709_v36 = vpop.eup %4708 }
0x19a9   : > { %v2777_v37 = vsel %vm743_vm2, %v4709_v36, 0.0 }
0x19aa   : > { %2778 = vadd.xlane.f32.xlu1 %v2777_v37 }
0x1a37   : > { %v2779_v41 = vpop.xlane.xlu1 %2778 }
0x1a38   : > { %4710 = vrcp.f32 %v2779_v41 }
0x1a42   : > { %v4711_v44 = vpop.eup %4710 }
0x1a43   : > { %v2781_v45 = vmul.f32 %v4711_v44, %v4709_v36 }
0x1a45   : > { %v2782_v46 = vpack.c.bf16 %v2781_v45, %v2781_v45 }
0x1a47   : > { %4547 = vmatmul.mubr.msk.bf16.vlgmr.msra.gmra.mrb[72].mxu1 %vm743_vm2, %v2782_v46 }
0x1a48   : > { %4557 = vmatpush3.bf16.msra.mxu1 %v2884_v47  ;;  %4558 = vmatprep.mubr.msk.bf16.mxu1 %vm4735_vm1, %v4734_v1 }
0x1a49   : > { %4570 = vmatprep.subr.bf16.mxu1 %v4734_v1 }
0x1a4f   : > { %4559 = vmatmul.mubr.msk.bf16.vlgmr.msra.gmra.mrb[76].mxu1 %vm743_vm2, %v2555_v51 }
0x1a50   : > { %4571 = vmatpush3.bf16.msra.mxu1 %v2986_v50  ;;  %4574 = vmatprep.mubr.msk.bf16.mxu1 %vm4735_vm1, %v4734_v1 }
0x1a51   : > { %4572 = vmatprep.subr.bf16.mxu1 %v4734_v1 }
0x1a54   : > { %4573 = vmatpush3.bf16.msra.mxu1 %v2987_v55  ;;  %v4083_v55 = vld [vmem:[%s5765_s10 + $0x30] sm:$0xff] }
0x1a55   : > { %4586 = vmatprep.subr.bf16.mxu1 %v4734_v1  ;;  %v3202_v56 = vpack.c.bf16 %v4083_v55, %v4083_v55 }
0x1a57   : > { %4575 = vmatmul.mubr.msk.bf16.vlgmr.msra.gmra.mrb[80].mxu1 %vm807_vm3, %v5348_v0  ;;  %v3207_v57 = vsel %vm747_vm0, %v3202_v56, 0 }
0x1a58   : > { %4588 = vmatprep.mubr.msk.bf16.mxu1 %vm4735_vm1, %v4734_v1 }
0x1b1a   : > { %v2824_v26 = vpop.f32.mrb[72].mxu1 }
0x1b1b   : > { %v2832_v59 = vpack.c.bf16 %v2824_v26, %v2824_v26  ;;  %v4548_v60 = vpop.f32.mrb[73].mxu1 }
0x1b1c   : > { %v2827_v29 = vpop.f32.mrb[74].mxu1 }
0x1b1d   : > { %v4549_v2 = vpop.f32.mrb[75].mxu1  ;;  %4553 = vmatmul.mubr.msk.bf16.vlgmr.msra.gmra.mrb[72].mxu0 %vm743_vm2, %v2832_v59  ;;  %v4086_v59 = vld [vmem:[%s5799_s8 + $0xe8] sm:$0xff] }
0x1b1e   : > { %4563 = vmatpush3.bf16.msra.mxu0 %v2931_v58  ;;  %4566 = vmatprep.mubr.msk.bf16.mxu0 %vm4735_vm1, %v4734_v1  ;;  %v4085_v58 = vld [vmem:[%s5799_s8 + $0xe0] sm:$0xff]  ;;  %v4087_v2 = vld [vmem:[%s5799_s8 + $0xf0] sm:$0xff] }
0x1b1f   : > { %4564 = vmatprep.subr.bf16.mxu0 %v4734_v1  ;;  %v3255_v63 = vpack.c.bf16 %v4086_v59, %v4085_v58 }
0x1b22   : > { %v2920_v6 = vpop.f32.mrb[76].mxu1  ;;  %4565 = vmatpush3.bf16.msra.mxu0 %v2932_v3  ;;  %v4088_v3 = vld [vmem:[%s5799_s8 + $0xf8] sm:$0xff] }
0x1b23   : > { %v4560_v8 = vpop.f32.mrb[77].mxu1  ;;  %4578 = vmatprep.subr.bf16.mxu0 %v4734_v1  ;;  %v3256_v4 = vpack.c.bf16 %v4088_v3, %v4087_v2 }
0x1b24   : > { %v2923_v11 = vpop.f32.mrb[78].mxu1  ;;  %v4101_v8 = vld [vmem:[%s5803_s4 + $0xf0] sm:$0xff] }
0x1b25   : > { %v4561_v12 = vpop.f32.mrb[79].mxu1  ;;  %4567 = vmatmul.mubr.msk.bf16.vlgmr.msra.gmra.mrb[76].mxu0 %vm807_vm3, %v5348_v0  ;;  %v3366_v10 = vpack.c.bf16 %v4102_v9, %v4101_v8  ;;  %v4092_v11 = vld [vmem:[%s5800_s6 + $0xe0] sm:$0xff] }
0x1b26   : > { %4579 = vmatpush3.bf16.msra.mxu0 %v3041_v7  ;;  %4582 = vmatprep.mubr.msk.bf16.mxu0 %vm4735_vm1, %v4734_v1  ;;  %v4093_v12 = vld [vmem:[%s5800_s6 + $0xe8] sm:$0xff] }
0x1b27   : > { %4580 = vmatprep.subr.bf16.mxu0 %v4734_v1 }
0x1b2a   : > { %v3030_v14 = vpop.f32.mrb[80].mxu1  ;;  %4581 = vmatpush3.bf16.msra.mxu0 %v3042_v13 }
0x1b2b   : > { %v3031_v15 = vadd.f32 %v4072_v52, %v3030_v14  ;;  %v4576_v16 = vpop.f32.mrb[81].mxu1  ;;  %4592 = vmatprep.subr.bf16.mxu0 %v4734_v1  ;;  %v3310_v52 = vpack.c.bf16 %v4093_v12, %v4092_v11  ;;  %v4111_v12 = vld [vmem:[%s5766_s11 + $0x1] ss:$0 sm:$0xff] }
0x1b2c   : > { %v3033_v17 = vpop.f32.mrb[82].mxu1  ;;  %v4094_v16 = vld [vmem:[%s5800_s6 + $0xf0] sm:$0xff] }
0x1b2d   : > { %v3092_v18 = vpack.c.bf16 %v3031_v15, %v3031_v15  ;;  %v4577_v19 = vpop.f32.mrb[83].mxu1  ;;  %4583 = vmatmul.mubr.msk.bf16.vlgmr.msra.gmra.mrb[80].mxu0 %vm807_vm3, %v5348_v0  ;;  %v4095_v17 = vld [vmem:[%s5800_s6 + $0xf8] sm:$0xff] }
0x1b2e   : > { %4594 = vmatprep.mubr.msk.bf16.mxu0 %vm4735_vm1, %v4734_v1 }
0x1b2f   : > { %v3097_v20 = vsel %vm743_vm2, %v3092_v18, 0 }
0x1b30   : > { %4587 = vmatpush3.bf16.xpose.msra.mxu1 %v3097_v20  ;;  %v3311_v20 = vpack.c.bf16 %v4095_v17, %v4094_v16 }
0x1b31   : > { %4598 = vmatprep.subr.bf16.mxu1 %v4734_v1 }
0x1bf0   : > { %v2874_v21 = vpop.f32.mrb[72].mxu0 }
0x1bf1   : > { %v5541_v22 = vadd.f32 %v2920_v6, %v2874_v21  ;;  %v4554_v23 = vpop.f32.mrb[73].mxu0  ;;  %v4100_v6 = vld [vmem:[%s5803_s4 + $0xe8] sm:$0xff] }
0x1bf2   : > { %v2877_v24 = vpop.f32.mrb[74].mxu0  ;;  %v3365_v7 = vpack.c.bf16 %v4100_v6, %v4099_v5 }
0x1bf3   : > { %v4555_v25 = vpop.f32.mrb[75].mxu0 }
0x1bf8   : > { %v2975_v28 = vpop.f32.mrb[76].mxu0 }
0x1bf9   : > { %v2976_v30 = vadd.f32 %v4065_v27, %v2975_v28  ;;  %v4568_v31 = vpop.f32.mrb[77].mxu0  ;;  %v4104_v27 = vld [vmem:[%s5764_s9 + $0x7] ss:$0 sm:$0xff] }
0x1bfa   : > { %v2978_v32 = vpop.f32.mrb[78].mxu0 }
0x1bfb   : > { %v3091_v33 = vpack.c.bf16 %v2976_v30, %v2976_v30  ;;  %v4569_v34 = vpop.f32.mrb[79].mxu0 }
0x1bfd   : > { %4589 = vmatmul.mubr.msk.bf16.vlgmr.msra.gmra.mrb[84].mxu1 %vm743_vm2, %v3091_v33 }
0x1bfe   : > { %4600 = vmatprep.mubr.msk.bf16.mxu1 %vm4735_vm1, %v4734_v1  ;;  %4599 = vmatpush3.bf16.msra.mxu1 %v3207_v57 }
0x1bff   : > { %4612 = vmatprep.subr.bf16.mxu1 %v4734_v1 }
0x1c00   : > { %v3085_v36 = vpop.f32.mrb[80].mxu0 }
0x1c01   : > { %v3086_v37 = vadd.f32 %v4079_v35, %v3085_v36  ;;  %v4584_v38 = vpop.f32.mrb[81].mxu0 }
0x1c02   : > { %v3088_v39 = vpop.f32.mrb[82].mxu0 }
0x1c03   : > { %v3152_v40 = vpack.c.bf16 %v3086_v37, %v3086_v37  ;;  %v4585_v41 = vpop.f32.mrb[83].mxu0 }
0x1c05   : > { %v3157_v42 = vsel %vm747_vm0, %v3152_v40, 0  ;;  %v4097_v40 = vld [vmem:[%s5804_s3 + $0x7] ss:$0 sm:$0xff] }
0x1c06   : > { %4593 = vmatpush3.bf16.msra.mxu0 %v3157_v42 }
0x1c07   : > { %4604 = vmatprep.subr.bf16.mxu0 %v4734_v1 }
0x1cd0   : > { %v3133_v43 = vpop.f32.mrb[84].mxu1 }
0x1cd1   : > { %v3139_v44 = vmul.f32 0.35355338, %v3133_v43  ;;  %v4590_v45 = vpop.f32.mrb[85].mxu1 }
0x1cd2   : > { %v3136_v46 = vpop.f32.mrb[86].mxu1 }
0x1cd3   : > { %v4591_v47 = vpop.f32.mrb[87].mxu1  ;;  %v3140_v48 = vsel %vm743_vm2, %v3139_v44, -inf }
0x1cd4   : > { %3141 = vmax.xlane.f32.xlu0 %v3140_v48  ;;  %v4090_v47 = vld [vmem:[%s5805_s27 + $0x7] ss:$0 sm:$0xff] }
0x1d61   : > { %v3142_v49 = vpop.xlane.xlu0 %3141 }
0x1d62   : > { %v3143_v50 = vsub.f32 %v3139_v44, %v3142_v49 }
0x1d64   : > { %v3144_v51 = vmul.f32 1.442695, %v3143_v50 }
0x1d66   : > { %4712 = vpow2.f32 %v3144_v51 }
0x1d70   : > { %v4713_v53 = vpop.eup %4712 }
0x1d71   : > { %v3146_v54 = vsel %vm743_vm2, %v4713_v53, 0.0 }
0x1d72   : > { %3147 = vadd.xlane.f32.xlu1 %v3146_v54 }
0x1dff   : > { %v3148_v26 = vpop.xlane.xlu1 %3147 }
0x1e00   : > { %4714 = vrcp.f32 %v3148_v26 }
0x1e0a   : > { %v4715_v60 = vpop.eup %4714 }
0x1e0b   : > { %v3150_v61 = vmul.f32 %v4715_v60, %v4713_v53 }
0x1e0d   : > { %v3151_v29 = vpack.c.bf16 %v3150_v61, %v3150_v61  ;;  %v4108_v61 = vld [vmem:[%s5765_s10 + $0x38] sm:$0xff] }
0x1e0f   : > { %4595 = vmatmul.mubr.msk.bf16.vlgmr.msra.gmra.mrb[84].mxu0 %vm743_vm2, %v3151_v29 }
0x1e10   : > { %4605 = vmatpush3.bf16.msra.mxu0 %v3255_v63  ;;  %4608 = vmatprep.mubr.msk.bf16.mxu0 %vm4735_vm1, %v4734_v1  ;;  %v3526_v63 = vpack.c.bf16 %v4108_v61, %v4108_v61 }
0x1e11   : > { %4606 = vmatprep.subr.bf16.mxu0 %v4734_v1 }
0x1e12   : > { %v3531_v29 = vsel %vm747_vm0, %v3526_v63, 0 }
0x1e14   : > { %4607 = vmatpush3.bf16.msra.mxu0 %v3256_v4 }
0x1e15   : > { %4620 = vmatprep.subr.bf16.mxu0 %v4734_v1 }
0x1e17   : > { %4609 = vmatmul.mubr.msk.bf16.vlgmr.msra.gmra.mrb[88].mxu0 %vm807_vm3, %v5348_v0 }
0x1e18   : > { %4621 = vmatpush3.bf16.msra.mxu0 %v3365_v7  ;;  %4624 = vmatprep.mubr.msk.bf16.mxu0 %vm4735_vm1, %v4734_v1 }
0x1e19   : > { %4622 = vmatprep.subr.bf16.mxu0 %v4734_v1 }
0x1e1c   : > { %4623 = vmatpush3.bf16.msra.mxu0 %v3366_v10 }
0x1e1d   : > { %4634 = vmatprep.subr.bf16.mxu0 %v4734_v1 }
0x1e1f   : > { %4625 = vmatmul.mubr.msk.bf16.vlgmr.msra.gmra.mrb[92].mxu0 %vm807_vm3, %v5348_v0 }
0x1e20   : > { %4636 = vmatprep.mubr.msk.bf16.mxu0 %vm4735_vm1, %v4734_v1 }
0x1ee2   : > { %v3193_v13 = vpop.f32.mrb[84].mxu0 }
0x1ee3   : > { %v3201_v14 = vpack.c.bf16 %v3193_v13, %v3193_v13  ;;  %v4596_v15 = vpop.f32.mrb[85].mxu0 }
0x1ee4   : > { %v3196_v18 = vpop.f32.mrb[86].mxu0 }
0x1ee5   : > { %v4597_v19 = vpop.f32.mrb[87].mxu0  ;;  %4601 = vmatmul.mubr.msk.bf16.vlgmr.msra.gmra.mrb[88].mxu1 %vm743_vm2, %v3201_v14 }
0x1ee6   : > { %4613 = vmatpush3.bf16.msra.mxu1 %v3310_v52  ;;  %4616 = vmatprep.mubr.msk.bf16.mxu1 %vm4735_vm1, %v4734_v1 }
0x1ee7   : > { %4614 = vmatprep.subr.bf16.mxu1 %v4734_v1 }
0x1eea   : > { %v3299_v21 = vpop.f32.mrb[88].mxu0  ;;  %4615 = vmatpush3.bf16.msra.mxu1 %v3311_v20 }
0x1eeb   : > { %v4610_v23 = vpop.f32.mrb[89].mxu0  ;;  %4628 = vmatprep.subr.bf16.mxu1 %v4734_v1 }
0x1eec   : > { %v3302_v24 = vpop.f32.mrb[90].mxu0 }
0x1eed   : > { %v4611_v25 = vpop.f32.mrb[91].mxu0  ;;  %4617 = vmatmul.mubr.msk.bf16.vlgmr.msra.gmra.mrb[92].mxu1 %vm807_vm3, %v5348_v0 }
0x1eee   : > { %4630 = vmatprep.mubr.msk.bf16.mxu1 %vm4735_vm1, %v4734_v1  ;;  %v4116_v25 = vld [vmem:[%s5767_s12 + $0x20] sm:$0xff] }
0x1ef2   : > { %v3409_v28 = vpop.f32.mrb[92].mxu0 }
0x1ef3   : > { %v3410_v30 = vadd.f32 %v4104_v27, %v3409_v28  ;;  %v4626_v31 = vpop.f32.mrb[93].mxu0  ;;  %v4117_v27 = vld [vmem:[%s5767_s12 + $0x28] sm:$0xff] }
0x1ef4   : > { %v3412_v32 = vpop.f32.mrb[94].mxu0  ;;  %v3621_v28 = vpack.c.bf16 %v4117_v27, %v4116_v25  ;;  %v3810_v27 = vld [vmem:[%s5777_s22] sm:$0xff] }
0x1ef5   : > { %v3476_v33 = vpack.c.bf16 %v3410_v30, %v3410_v30  ;;  %v4627_v34 = vpop.f32.mrb[95].mxu0  ;;  %v4119_v30 = vld [vmem:[%s5767_s12 + $0x38] sm:$0xff]  ;;  %v4123_v32 = vld [vmem:[%s5769_s14 + $0x40] sm:$0xff] }
0x1ef6   : > { %v4125_v34 = vld [vmem:[%s5769_s14 + $0x50] sm:$0xff] }
0x1ef7   : > { %v3481_v35 = vsel %vm747_vm0, %v3476_v33, 0  ;;  %v4124_v33 = vld [vmem:[%s5769_s14 + $0x48] sm:$0xff] }
0x1ef8   : > { %4635 = vmatpush3.bf16.msra.mxu0 %v3481_v35  ;;  %v3685_v35 = vpack.c.bf16 %v4124_v33, %v4123_v32 }
0x1ef9   : > { %4646 = vmatprep.subr.bf16.mxu0 %v4734_v1 }
0x1fb8   : > { %v3243_v36 = vpop.f32.mrb[88].mxu1 }
0x1fb9   : > { %v3249_v0 = vadd.f32 %v3243_v36, %v5541_v22  ;;  %v4602_v37 = vpop.f32.mrb[89].mxu1  ;;  %v3300_v22 = vadd.f32 %v4090_v47, %v3299_v21  ;;  %v4126_v36 = vld [vmem:[%s5769_s14 + $0x58] sm:$0xff]  ;;  %v4127_v47 = vld [vmem:[%s5769_s14 + $0x60] sm:$0xff] }
0x1fba   : > { %v3246_v38 = vpop.f32.mrb[90].mxu1 }
0x1fbb   : > { %v4603_v39 = vpop.f32.mrb[91].mxu1  ;;  %v3415_v49 = vpack.c.bf16 %v3300_v22, %v3300_v22 }
0x1fc0   : > { %v3354_v41 = vpop.f32.mrb[92].mxu1 }
0x1fc1   : > { %v3355_v42 = vadd.f32 %v4097_v40, %v3354_v41  ;;  %v4618_v43 = vpop.f32.mrb[93].mxu1  ;;  %v4114_v41 = vld [vmem:[%s5771_s16 + $0x1] ss:$0 sm:$0xff] }
0x1fc2   : > { %v3357_v44 = vpop.f32.mrb[94].mxu1  ;;  %v4115_v43 = vld [vmem:[%s5772_s17 + $0x1] ss:$0 sm:$0xff] }
0x1fc3   : > { %v3416_v45 = vpack.c.bf16 %v3355_v42, %v3355_v42  ;;  %v4619_v46 = vpop.f32.mrb[95].mxu1 }
0x1fc5   : > { %v3421_v48 = vsel %vm743_vm2, %v3416_v45, 0 }
0x1fc6   : > { %4629 = vmatpush3.bf16.xpose.msra.mxu1 %v3421_v48  ;;  %v4128_v48 = vld [vmem:[%s5769_s14 + $0x68] sm:$0xff] }
0x1fc7   : > { %4640 = vmatprep.subr.bf16.mxu1 %v4734_v1  ;;  %v3687_v22 = vpack.c.bf16 %v4128_v48, %v4127_v47 }
0x1fcd   : > { %4631 = vmatmul.mubr.msk.bf16.vlgmr.msra.gmra.mrb[96].mxu1 %vm743_vm2, %v3415_v49  ;;  %v4129_v49 = vld [vmem:[%s5769_s14 + $0x70] sm:$0xff] }
0x1fce   : > { %4642 = vmatprep.mubr.msk.bf16.mxu1 %vm4735_vm1, %v4734_v1  ;;  %4641 = vmatpush3.bf16.msra.mxu1 %v3531_v29 }
0x1fcf   : > { %4654 = vmatprep.subr.bf16.mxu1 %v4734_v1 }
0x20a0   : > { %v3457_v50 = vpop.f32.mrb[96].mxu1 }
0x20a1   : > { %v3463_v51 = vmul.f32 0.35355338, %v3457_v50  ;;  %v4632_v53 = vpop.f32.mrb[97].mxu1  ;;  %v4130_v50 = vld [vmem:[%s5769_s14 + $0x78] sm:$0xff] }
0x20a2   : > { %v3460_v54 = vpop.f32.mrb[98].mxu1  ;;  %v4121_v53 = vld [vmem:[%s5768_s13 + $0x1] ss:$0 sm:$0xff] }
0x20a3   : > { %v4633_v55 = vpop.f32.mrb[99].mxu1  ;;  %v3464_v56 = vsel %vm743_vm2, %v3463_v51, -inf }
0x20a4   : > { %3465 = vmax.xlane.f32.xlu0 %v3464_v56 }
0x2131   : > { %v3466_v57 = vpop.xlane.xlu0 %3465 }
0x2132   : > { %v3467_v26 = vsub.f32 %v3463_v51, %v3466_v57  ;;  %v3688_v51 = vpack.c.bf16 %v4130_v50, %v4129_v49 }
0x2134   : > { %v3468_v58 = vmul.f32 1.442695, %v3467_v26 }
0x2136   : > { %4716 = vpow2.f32 %v3468_v58 }
0x2140   : > { %v4717_v59 = vpop.eup %4716 }
0x2141   : > { %v3470_v60 = vsel %vm743_vm2, %v4717_v59, 0.0 }
0x2142   : > { %3471 = vadd.xlane.f32.xlu1 %v3470_v60  ;;  %v4132_v60 = vld [vmem:[%s5770_s15 + $0x1] ss:$0 sm:$0xff] }
0x21cf   : > { %v3472_v2 = vpop.xlane.xlu1 %3471 }
0x21d0   : > { %4718 = vrcp.f32 %v3472_v2 }
0x21da   : > { %v4719_v3 = vpop.eup %4718 }
0x21db   : > { %v3474_v4 = vmul.f32 %v4719_v3, %v4717_v59 }
0x21dd   : > { %v3475_v5 = vpack.c.bf16 %v3474_v4, %v3474_v4 }
0x21df   : > { %4637 = vmatmul.mubr.msk.bf16.vlgmr.msra.gmra.mrb[96].mxu0 %vm743_vm2, %v3475_v5 }
0x21e0   : > { %4650 = vmatprep.mubr.msk.bf16.mxu0 %vm4735_vm1, %v4734_v1  ;;  %4647 = vmatpush3.bf16.msra.mxu0 %v3621_v28  ;;  %v3811_v28 = vld [vmem:[%s5777_s22 + $0x8] sm:$0xff] }
0x21e1   : > { %4648 = vmatprep.subr.bf16.mxu0 %v4734_v1 }
0x22b2   : > { %v3517_v6 = vpop.f32.mrb[96].mxu0 }
0x22b3   : > { %v3525_v7 = vpack.c.bf16 %v3517_v6, %v3517_v6  ;;  %v4638_v8 = vpop.f32.mrb[97].mxu0 }
0x22b4   : > { %v3520_v9 = vpop.f32.mrb[98].mxu0 }
0x22b5   : > { %v4639_v10 = vpop.f32.mrb[99].mxu0  ;;  %4643 = vmatmul.mubr.msk.bf16.vlgmr.msra.gmra.mrb[100].mxu1 %vm743_vm2, %v3525_v7 }
0x22b6   : > { %4662 = vmatprep.mubr.msk.bf16.mxu1 %vm4735_vm1, %v4734_v1  ;;  %4655 = vmatpush3.bf16.msra.mxu1 %v3685_v35 }
0x22b7   : > { %4656 = vmatprep.subr.bf16.mxu1 %v4734_v1 }
0x2388   : > { %v3567_v11 = vpop.f32.mrb[100].mxu1 }
0x2389   : > { %v3573_v13 = vadd.f32 %v3567_v11, %v3249_v0  ;;  %v4644_v52 = vpop.f32.mrb[101].mxu1  ;;  %v3686_v0 = vpack.c.bf16 %v4126_v36, %v4125_v34 }
0x238a   : > { %v3570_v14 = vpop.f32.mrb[102].mxu1 }
0x238b   : > { %v3582_v15 = vadd.f32 %v4111_v12, %v3573_v13  ;;  %v4645_v16 = vpop.f32.mrb[103].mxu1  ;;  %4657 = vmatpush3.bf16.msra.mxu1 %v3686_v0  ;;  %v4136_v14 = vld [vmem:[%s5773_s18 + $0x1] ss:$0 sm:$0xff]  ;;  %v4138_v0 = vld [vmem:[%s5775_s20] ss:$0 sm:$0xff] }
0x238c   : > { %4658 = vmatprep.subr.bf16.mxu1 %v4734_v1  ;;  %v4137_v16 = vld [vmem:[%s5774_s19 + $0x1] ss:$0 sm:$0xff] }
0x238d   : > { %v3583_v17 = vadd.f32 %v3582_v15, %v5344_v62  ;;  %v4118_v62 = vld [vmem:[%s5767_s12 + $0x30] sm:$0xff] }
0x238e   : > { %v3622_v31 = vpack.c.bf16 %v4119_v30, %v4118_v62  ;;  %v3812_v62 = vld [vmem:[%s5777_s22 + $0x10] sm:$0xff]  ;;  %v3815_v30 = vpack.c.bf16 %v3811_v28, %v3810_v27 }
0x238f   : > { %v3588_v18 = vsel %vm807_vm3, %v3583_v17, 0.0  ;;  %4659 = vmatpush3.bf16.msra.mxu1 %v3687_v22  ;;  %v3817_v22 = vld [vmem:[%s5778_s23] sm:$0x1] }
0x2390   : > { %3589 = vadd.xlane.f32.xlu0 %v3588_v18  ;;  %4649 = vmatpush3.bf16.msra.mxu0 %v3622_v31  ;;  %v3813_v31 = vld [vmem:[%s5777_s22 + $0x18] sm:$0xff] }
0x2391   : > { %4666 = vmatprep.subr.bf16.mxu0 %v4734_v1  ;;  %4660 = vmatprep.subr.bf16.mxu1 %v4734_v1  ;;  %v3816_v32 = vpack.c.bf16 %v3813_v31, %v3812_v62 }
0x2393   : > { %4661 = vmatpush3.bf16.msra.mxu1 %v3688_v51 }
0x241d   : > { %v3590_v19 = vpop.xlane.xlu0 %3589 }
0x241e   : > { %v3591_v20 = vmul.f32 0.03125, %v3590_v19 }
0x2420   : > { %v3592_v21 = vsub.f32 %v3583_v17, %v3591_v20 }
0x2422   : > { %v3593_v23 = vmul.f32 %v3592_v21, %v3592_v21 }
0x2424   : > { %v3594_v24 = vsel %vm807_vm3, %v3593_v23, 0.0 }
0x2425   : > { %3595 = vadd.xlane.f32.xlu1 %v3594_v24 }
0x24b2   : > { %v3596_v37 = vpop.xlane.xlu1 %3595 }
0x24b3   : > { %v3597_v38 = vmul.f32 0.03125, %v3596_v37 }
0x24b5   : > { %v3598_v39 = vadd.f32 1e-05, %v3597_v38  ;;  %v4139_v38 = vld [vmem:[%s5776_s21] ss:$0 sm:$0xff] }
0x24b7   : > { %4720 = vrsqrt.f32 %v3598_v39 }
0x24c1   : > { %v4721_v40 = vpop.eup %4720 }
0x24c2   : > { %v3600_v42 = vmul.f32 %v4721_v40, %v3592_v21 }
0x24c4   : > { %v3607_v44 = vmul.f32 %v4114_v41, %v3600_v42 }
0x24c6   : > { %v3614_v45 = vadd.f32 %v4115_v43, %v3607_v44 }
0x24c8   : > { %v3620_v46 = vpack.c.bf16 %v3614_v45, %v3614_v45 }
0x24ca   : > { %4651 = vmatmul.mubr.msk.bf16.vlgmr.msra.gmra.mrb[100].mxu0 %vm807_vm3, %v3620_v46 }
0x24cb   : > { %4670 = vmatprep.mubr.msk.bf16.mxu0 %vm4735_vm1, %v4734_v1  ;;  %4667 = vmatpush3.bf16.msra.mxu0 %v3815_v30 }
0x24cc   : > { %4668 = vmatprep.subr.bf16.mxu0 %v4734_v1 }
0x24cf   : > { %4669 = vmatpush3.bf16.msra.mxu0 %v3816_v32 }
0x259d   : > { %v3668_v54 = vpop.f32.mrb[100].mxu0 }
0x259e   : > { %v3669_v55 = vadd.f32 %v4121_v53, %v3668_v54  ;;  %v4652_v56 = vpop.f32.mrb[101].mxu0 }
0x259f   : > { %v3671_v57 = vpop.f32.mrb[102].mxu0 }
0x25a0   : > { %v3674_v26 = vmax.f32 %v3669_v55, 0.0  ;;  %v4653_v58 = vpop.f32.mrb[103].mxu0 }
0x25a2   : > { %v3684_v59 = vpack.c.bf16 %v3674_v26, %v3674_v26 }
0x25a4   : > { %4663 = vmatmul.mubr.msk.bf16.vlgmr.msra.gmra.mrb[104].mxu1 %vm2202_vm4, %v3684_v59 }
0x2677   : > { %v3734_v61 = vpop.f32.mrb[104].mxu1 }
0x2678   : > { %v3735_v63 = vadd.f32 %v4132_v60, %v3734_v61  ;;  %v4664_v29 = vpop.f32.mrb[105].mxu1 }
0x2679   : > { %v3737_v2 = vpop.f32.mrb[106].mxu1 }
0x267a   : > { %v4665_v3 = vpop.f32.mrb[107].mxu1  ;;  %v3740_v4 = vadd.f32 %v3735_v63, %v3614_v45 }
0x267c   : > { %v3745_v5 = vsel %vm807_vm3, %v3740_v4, 0.0 }
0x267d   : > { %3746 = vadd.xlane.f32.xlu0 %v3745_v5 }
0x270a   : > { %v3747_v6 = vpop.xlane.xlu0 %3746 }
0x270b   : > { %v3748_v7 = vmul.f32 0.03125, %v3747_v6 }
0x270d   : > { %v3749_v8 = vsub.f32 %v3740_v4, %v3748_v7 }
0x270f   : > { %v3750_v9 = vmul.f32 %v3749_v8, %v3749_v8 }
0x2711   : > { %v3751_v10 = vsel %vm807_vm3, %v3750_v9, 0.0 }
0x2712   : > { %3752 = vadd.xlane.f32.xlu1 %v3751_v10 }
0x279f   : > { %v3753_v11 = vpop.xlane.xlu1 %3752 }
0x27a0   : > { %v3754_v12 = vmul.f32 0.03125, %v3753_v11 }
0x27a2   : > { %v3755_v13 = vadd.f32 1e-05, %v3754_v12 }
0x27a4   : > { %4722 = vrsqrt.f32 %v3755_v13 }
0x27ae   : > { %v4723_v52 = vpop.eup %4722 }
0x27af   : > { %v3757_v15 = vmul.f32 %v4723_v52, %v3749_v8 }
0x27b1   : > { %v3764_v17 = vmul.f32 %v4136_v14, %v3757_v15 }
0x27b3   : > { %v3771_v18 = vadd.f32 %v4137_v16, %v3764_v17 }
0x27b5   : > { %v3774_v19 = vsel %vm807_vm3, %v3771_v18, 0.0 }
0x27b6   : > { %3775 = vadd.xlane.f32.xlu0 %v3774_v19 }
0x2843   : > { %v3776_v20 = vpop.xlane.xlu0 %3775 }
0x2844   : > { %v3777_v21 = vmul.f32 0.03125, %v3776_v20 }
0x2846   : > { %v3778_v23 = vsub.f32 %v3771_v18, %v3777_v21 }
0x2848   : > { %v3779_v24 = vmul.f32 %v3778_v23, %v3778_v23 }
0x284a   : > { %v3780_v25 = vsel %vm807_vm3, %v3779_v24, 0.0 }
0x284b   : > { %3781 = vadd.xlane.f32.xlu1 %v3780_v25 }
0x28d8   : > { %v3782_v33 = vpop.xlane.xlu1 %3781 }
0x28d9   : > { %v3783_v34 = vmul.f32 0.03125, %v3782_v33 }
0x28db   : > { %v3784_v35 = vadd.f32 1e-05, %v3783_v34 }
0x28dd   : > { %4724 = vrsqrt.f32 %v3784_v35 }
0x28e7   : > { %v4725_v36 = vpop.eup %4724 }
0x28e8   : > { %v3786_v37 = vmul.f32 %v4725_v36, %v3778_v23 }
0x28ea   : > { %v3793_v39 = vmul.f32 %v4138_v0, %v3786_v37 }
0x28ec   : > { %v3800_v40 = vadd.f32 %v4139_v38, %v3793_v39 }
0x28ee   : > { %v3801_v1 = vsel %vm807_vm3, %v3800_v40, 0.0 }
0x28ef   : > { %v3802_v41 = vrot.slane %v3801_v1, 4 }
0x28f1   : > { %v3803_v42 = vadd.f32 %v3802_v41, %v3801_v1 }
0x28f3   : > { %v3804_v43 = vrot.slane %v3803_v42, 2 }
0x28f5   : > { %v3805_v44 = vadd.f32 %v3804_v43, %v3803_v42 }
0x28f7   : > { %v3806_v45 = vrot.slane %v3805_v44, 1 }
0x28f9   : > { %v3807_v46 = vadd.f32 %v3806_v45, %v3805_v44 }
0x28fb   : > { %v3809_v47 = vmul.f32 0.125, %v3807_v46 }
0x28fd   : > { %v3814_v48 = vpack.c.bf16 %v3809_v47, %v3809_v47 }
0x28ff   : > { %4671 = vmatmul.mubr.msk.bf16.vlgmr.msra.gmra.mrb[104].mxu0 %vm807_vm3, %v3814_v48 }
0x29d2   : > { %v3855_v49 = vpop.f32.mrb[104].mxu0 }
0x29d3   : > { %v3856_v50 = vadd.f32 %v3855_v49, %v3817_v22  ;;  %v4672_v51 = vpop.f32.mrb[105].mxu0 }
0x29d4   : > { %v3858_v53 = vpop.f32.mrb[106].mxu0 }
0x29d5   : > { %3861 = vst [vmem:[%s730_s30] sm:$0x1] %v3856_v50  ;;  %v4673_v54 = vpop.f32.mrb[107].mxu0 }
0x29d6 PF: > { %s5807_s25 = sld [smem:[#allocation2_spill]] }
0x29dc   : > { %s34_s5 = sadd.s32 1, %s5807_s25  }
0x29dd   : > { %p31_p4 = scmp.ge.s32.totalorder %s34_s5, 4  }
0x29df   :  { %33 = sbr.rel (!%p31_p4) target bundleno = 11 (0xb), region = 204 }

</bundles_post_ra>
